<compile_context>
chip_gen: v5e
topology: v5e:2x2
jax: 0.10.0
libtpu: 0.0.40
codegen_flags: <defaults>
</compile_context>

<pallas_src>
import functools

import jax
import jax.numpy as jnp
from jax import lax
from jax.experimental import pallas as pl
from jax.experimental.pallas import tpu as pltpu


LEAKY_SLOPE = 0.2
LANE = 128


def _round_up(x, m):
    return (x + m - 1) // m * m


@functools.lru_cache(maxsize=None)
def _vmem_limit_bytes():
    """Generation-aware VMEM limit: ~80% of physical per-core VMEM."""
    try:
        cap = int(pltpu.get_tpu_info().vmem_capacity_bytes)
    except Exception:
        cap = 0
    if cap <= 0:
        cap = 64 * 1024 * 1024          # conservative fallback (v7x physical)
    return int(cap * 0.8)


# ----------------------------------------------------------------------------
# Kernel: 3x3 same-padded conv (NHWC, one image per grid step).
#   * inputs is a list of channel groups (the channel concat of the skip
#     connection happens here when each group is lane-aligned)
#   * optional fused BN affine + LeakyReLU on the input path (used by conv2)
#   * conv = 9 accumulated MXU matmuls per group (no im2col materialization)
#   * emits per-image BatchNorm partials: channel sums and centered
#     sums-of-squares (combined across the batch in the wrapper)
# ----------------------------------------------------------------------------
def _conv3x3_kernel(*refs, H, W, cins, cins_p, Cout, fuse_input_act,
                    compute_dtype):
    n_in = len(cins)
    pos = 0
    x_refs = refs[pos:pos + n_in]; pos += n_in
    if fuse_input_act:
        scale_ref, shift_ref = refs[pos], refs[pos + 1]; pos += 2
    w_refs = refs[pos:pos + n_in]; pos += n_in
    y_ref, s_ref, ssd_ref = refs[pos:pos + 3]; pos += 3
    xp_refs = refs[pos:pos + n_in]

    # ---- stage each input group into its zero-bordered VMEM scratch -------
    for i in range(n_in):
        C, Cp = cins[i], cins_p[i]
        xp = xp_refs[i]
        # Scratch persists across grid steps (and is per-core under megacore),
        # so zero just the 1-pixel border every step -- NOT the whole scratch.
        xp[0:1, :, :] = jnp.zeros((1, W + 2, Cp), compute_dtype)
        xp[H + 1:H + 2, :, :] = jnp.zeros((1, W + 2, Cp), compute_dtype)
        xp[1:H + 1, 0:1, :] = jnp.zeros((H, 1, Cp), compute_dtype)
        xp[1:H + 1, W + 1:W + 2, :] = jnp.zeros((H, 1, Cp), compute_dtype)
        if Cp > C:
            # lane-pad strip only exists when C is not a multiple of 128
            # (tiny toy shapes); real UNet channel counts skip this store.
            xp[1:H + 1, 1:W + 1, :] = jnp.zeros((H, W, Cp), compute_dtype)

        x = x_refs[i][0]                                    # (H, W, C)
        if fuse_input_act and i == 0:
            xf = x.astype(jnp.float32)
            z = (xf * scale_ref[...].reshape(1, 1, C)
                 + shift_ref[...].reshape(1, 1, C))
            x = jnp.where(z >= 0, z, LEAKY_SLOPE * z)
        xp[1:H + 1, 1:W + 1, 0:C] = x.astype(compute_dtype)

    # ---- 3x3 conv: 9 accumulated MXU matmuls per channel group ------------
    acc = None
    for i in range(n_in):
        Cp = cins_p[i]
        xp, w = xp_refs[i], w_refs[i]
        for dy in range(3):
            for dx in range(3):
                patch = xp[dy:dy + H, dx:dx + W, :].reshape(H * W, Cp)
                part = jnp.dot(patch, w[3 * dy + dx],
                               preferred_element_type=jnp.float32)
                acc = part if acc is None else acc + part

    # ---- per-image BatchNorm partials (centered -> numerically stable) ----
    s = jnp.sum(acc, axis=0, keepdims=True)                 # (1, Cout)
    mu = s * (1.0 / float(H * W))
    cen = acc - mu
    ssd = jnp.sum(cen * cen, axis=0, keepdims=True)

    y_ref[...] = acc.reshape(1, H, W, Cout).astype(y_ref.dtype)
    s_ref[...] = s.reshape(1, 1, Cout)
    ssd_ref[...] = ssd.reshape(1, 1, Cout)


def conv3x3_block(inputs, weights, *, in_scale=None, in_shift=None,
                  compute_dtype=jnp.bfloat16, out_dtype=None):
    """3x3 'same' conv over channel-concat(inputs) + per-image BN partials.

    inputs  : list of NHWC arrays (same N,H,W); treated as one channel concat.
    weights : list of (9, Cin_p_i, Cout) arrays (pre-padded), one per input.
    """
    out_dtype = out_dtype or compute_dtype
    N, H, W = inputs[0].shape[:3]
    cins = tuple(int(x.shape[-1]) for x in inputs)
    cins_p = tuple(int(w.shape[1]) for w in weights)
    Cout = int(weights[0].shape[-1])
    assert len(inputs) == len(weights) and Cout % LANE == 0
    fuse = in_scale is not None

    kernel = functools.partial(
        _conv3x3_kernel, H=H, W=W, cins=cins, cins_p=cins_p, Cout=Cout,
        fuse_input_act=fuse, compute_dtype=compute_dtype)

    in_specs = [pl.BlockSpec((1, H, W, c), lambda n: (n, 0, 0, 0))
                for c in cins]
    args = [x.astype(compute_dtype) for x in inputs]
    if fuse:
        C0 = cins[0]
        in_specs += [pl.BlockSpec((1, C0), lambda n: (0, 0)),
                     pl.BlockSpec((1, C0), lambda n: (0, 0))]
        args += [in_scale.reshape(1, C0).astype(jnp.float32),
                 in_shift.reshape(1, C0).astype(jnp.float32)]
    in_specs += [pl.BlockSpec((9, cp, Cout), lambda n: (0, 0, 0))
                 for cp in cins_p]
    args += [w.astype(compute_dtype) for w in weights]

    y, s, ssd = pl.pallas_call(
        kernel,
        out_shape=(
            jax.ShapeDtypeStruct((N, H, W, Cout), out_dtype),
            jax.ShapeDtypeStruct((N, 1, Cout), jnp.float32),
            jax.ShapeDtypeStruct((N, 1, Cout), jnp.float32),
        ),
        grid=(N,),
        in_specs=in_specs,
        out_specs=(
            pl.BlockSpec((1, H, W, Cout), lambda n: (n, 0, 0, 0)),
            pl.BlockSpec((1, 1, Cout), lambda n: (n, 0, 0)),
            pl.BlockSpec((1, 1, Cout), lambda n: (n, 0, 0)),
        ),
        scratch_shapes=[pltpu.VMEM((H + 2, W + 2, cp), compute_dtype)
                        for cp in cins_p],
        compiler_params=pltpu.CompilerParams(
            dimension_semantics=("parallel",),
            vmem_limit_bytes=_vmem_limit_bytes()),
    )(*args)
    return y, s, ssd


# ----------------------------------------------------------------------------
# Glue: fold BN batch statistics into a per-channel affine (f32, wrapper side).
# Per-image (sum, centered-sum-of-squares) partials are combined with the
# parallel-variance formula (exact, stable).
# ----------------------------------------------------------------------------
def _bn_affine(s, ssd, hw, gamma, beta, eps=1e-5):
    n = s.shape[0]
    mu_n = s[:, 0, :] / hw                                  # (N, C) per-image
    mu = jnp.mean(mu_n, axis=0)                             # (C,) batch mean
    var = (jnp.sum(ssd[:, 0, :], axis=0)
           + hw * jnp.sum((mu_n - mu) ** 2, axis=0)) / (n * hw)
    var = jnp.maximum(var, 0.0)
    scale = gamma * lax.rsqrt(var + eps)
    shift = beta - mu * scale
    return scale, shift


def _prep_weight(w_hwio, cin_splits, cout_p):
    """Split an HWIO weight along input channels; pad each split's cin to a
    lane multiple and cout to cout_p; reshape each to (9, cin_p, cout_p)."""
    kh, kw, cin, cout = w_hwio.shape
    assert kh == 3 and kw == 3 and cin == sum(cin_splits)
    out, off = [], 0
    for c in cin_splits:
        cp = _round_up(c, LANE)
        wp = jnp.zeros((3, 3, cp, cout_p), jnp.float32)
        wp = wp.at[:, :, :c, :cout].set(w_hwio[:, :, off:off + c, :])
        out.append(wp.reshape(9, cp, cout_p))
        off += c
    return out


def double_conv_forward(inputs, params, out_ch, compute_dtype=jnp.bfloat16):
    """inputs: list of NHWC tensors forming the channel-concat conv1 input."""
    N, H, W = inputs[0].shape[:3]
    Cp = _round_up(out_ch, LANE)
    cin_splits = [int(x.shape[-1]) for x in inputs]
    hw = float(H * W)

    def prep_vec(v):
        return jnp.zeros((Cp,), jnp.float32).at[:v.shape[0]].set(v)

    # NOTE: conv biases b1/b2 are intentionally NOT applied -- the
    # training-mode BatchNorm right after each conv subtracts the batch mean,
    # which cancels any per-channel constant exactly.
    w1 = [w.astype(compute_dtype)
          for w in _prep_weight(params["w1"], cin_splits, Cp)]
    w2 = [w.astype(compute_dtype)
          for w in _prep_weight(params["w2"], [int(params["w2"].shape[2])], Cp)]
    g1, be1 = prep_vec(params["g1"]), prep_vec(params["be1"])
    g2, be2 = prep_vec(params["g2"]), prep_vec(params["be2"])

    inputs = [x.astype(compute_dtype) for x in inputs]

    # conv1: raw inputs (channel concat + zero pad happen inside the kernel)
    y1, s1, ssd1 = conv3x3_block(inputs, w1, compute_dtype=compute_dtype)
    sc1, sh1 = _bn_affine(s1, ssd1, hw, g1, be1)

    # conv2: layer-1 BN affine + LeakyReLU fused into its input path;
    # y1 stays in compute_dtype (bf16) in HBM.
    y2, s2, ssd2 = conv3x3_block([y1], w2, in_scale=sc1, in_shift=sh1,
                                 compute_dtype=compute_dtype)
    sc2, sh2 = _bn_affine(s2, ssd2, hw, g2, be2)

    # Final BN affine + LeakyReLU + channel slice: cheap elementwise epilogue
    # left to XLA so it fuses with the NHWC->NCHW transpose (one HBM pass).
    z = (y2.astype(jnp.float32) * sc2.reshape(1, 1, 1, Cp)
         + sh2.reshape(1, 1, 1, Cp))
    z = jnp.where(z >= 0, z, LEAKY_SLOPE * z)
    return z[..., :out_ch]


# ----------------------------------------------------------------------------
# Bilinear 2x upsample (align_corners=True) -- XLA einsums with dense
# interpolation matrices (pure data movement, see TODO at top).
# ----------------------------------------------------------------------------
def _interp_matrix_1d(n_in, n_out):
    if n_in == 1:
        return jnp.ones((n_out, 1), jnp.float32)
    pos = jnp.arange(n_out, dtype=jnp.float32) * (n_in - 1) / (n_out - 1)
    lo = jnp.clip(jnp.floor(pos).astype(jnp.int32), 0, n_in - 2)
    frac = pos - lo.astype(jnp.float32)
    rows = jnp.arange(n_out)
    m = jnp.zeros((n_out, n_in), jnp.float32)
    m = m.at[rows, lo].add(1.0 - frac)
    m = m.at[rows, lo + 1].add(frac)
    return m


def _bilinear_up2x(x_nhwc):
    N, H, W, C = x_nhwc.shape
    mh = _interp_matrix_1d(H, 2 * H)
    mw = _interp_matrix_1d(W, 2 * W)
    x = jnp.einsum("ih,nhwc->niwc", mh, x_nhwc)
    x = jnp.einsum("jw,niwc->nijc", mw, x)
    return x


def up_forward(x1_nchw, x2_nchw, params, out_ch, compute_dtype=jnp.bfloat16):
    """Pallas implementation of up.forward (bilinear=True)."""
    x1 = jnp.transpose(x1_nchw, (0, 2, 3, 1)).astype(jnp.float32)
    x1 = _bilinear_up2x(x1)
    if x2_nchw is not None:
        x2 = jnp.transpose(x2_nchw, (0, 2, 3, 1)).astype(jnp.float32)
        dy = x2.shape[1] - x1.shape[1]
        dx = x2.shape[2] - x1.shape[2]
        if dy or dx:
            x1 = jnp.pad(x1, ((0, 0), (dy // 2, dy - dy // 2),
                              (dx // 2, dx - dx // 2), (0, 0)))
        # torch.cat([x2, x1], dim=1): when both channel counts are
        # lane-aligned the concat happens inside the conv1 kernel (each source
        # gets its own lane-aligned scratch group), avoiding an HBM pass.
        if x2.shape[-1] % LANE == 0 and x1.shape[-1] % LANE == 0:
            inputs = [x2, x1]
        else:
            inputs = [jnp.concatenate([x2, x1], axis=-1)]
    else:
        inputs = [x1]
    y = double_conv_forward(inputs, params, out_ch, compute_dtype=compute_dtype)
    return jnp.transpose(y, (0, 3, 1, 2))


# ----------------------------------------------------------------------------
# Pure-JAX reference (correctness check only) -- includes the conv biases.
# ----------------------------------------------------------------------------
def ref_up_forward(x1_nchw, x2_nchw, params, out_ch):
    x1 = jnp.transpose(x1_nchw, (0, 2, 3, 1)).astype(jnp.float32)
    x1 = _bilinear_up2x(x1)
    if x2_nchw is not None:
        x2 = jnp.transpose(x2_nchw, (0, 2, 3, 1)).astype(jnp.float32)
        dy = x2.shape[1] - x1.shape[1]
        dx = x2.shape[2] - x1.shape[2]
        x1 = jnp.pad(x1, ((0, 0), (dy // 2, dy - dy // 2),
                          (dx // 2, dx - dx // 2), (0, 0)))
        x = jnp.concatenate([x2, x1], axis=-1)
    else:
        x = x1

    def block(x, w, b, g, be):
        y = lax.conv_general_dilated(
            x, w, window_strides=(1, 1), padding="SAME",
            dimension_numbers=("NHWC", "HWIO", "NHWC"),
            precision=lax.Precision.HIGHEST) + b
        mean = jnp.mean(y, axis=(0, 1, 2))
        var = jnp.var(y, axis=(0, 1, 2))
        yh = (y - mean) / jnp.sqrt(var + 1e-5) * g + be
        return jnp.where(yh >= 0, yh, LEAKY_SLOPE * yh)

    x = block(x, params["w1"], params["b1"], params["g1"], params["be1"])
    x = block(x, params["w2"], params["b2"], params["g2"], params["be2"])
    return jnp.transpose(x, (0, 3, 1, 2))


if __name__ == "__main__":
    # ---- case 1: up(8, 8) -- tiny, non-lane-aligned channels (4 + 4) ------
    key = jax.random.PRNGKey(0)
    in_ch, out_ch = 8, 8
    N, H, W = 2, 8, 8                     # x1 spatial; x2 is the 2x skip (16x16)
    ks = jax.random.split(key, 6)
    x1 = jax.random.normal(ks[0], (N, in_ch // 2, H, W), jnp.float32)
    x2 = jax.random.normal(ks[1], (N, in_ch // 2, 2 * H, 2 * W), jnp.float32)
    params = {
        "w1": jax.random.normal(ks[2], (3, 3, in_ch, out_ch), jnp.float32) * 0.1,
        "b1": jax.random.normal(ks[3], (out_ch,), jnp.float32) * 0.1,
        "g1": jnp.ones((out_ch,), jnp.float32),
        "be1": jnp.zeros((out_ch,), jnp.float32),
        "w2": jax.random.normal(ks[4], (3, 3, out_ch, out_ch), jnp.float32) * 0.1,
        "b2": jax.random.normal(ks[5], (out_ch,), jnp.float32) * 0.1,
        "g2": jnp.ones((out_ch,), jnp.float32),
        "be2": jnp.zeros((out_ch,), jnp.float32),
    }

    ref = jax.block_until_ready(ref_up_forward(x1, x2, params, out_ch))
    assert ref.shape == (N, out_ch, 2 * H, 2 * W), ref.shape

    out_f32 = jax.block_until_ready(
        up_forward(x1, x2, params, out_ch, compute_dtype=jnp.float32))
    assert out_f32.shape == ref.shape, out_f32.shape
    err32 = float(jnp.max(jnp.abs(out_f32 - ref)))
    assert err32 < 1e-2, f"case1 f32 path max abs err {err32}"

    out_bf16 = jax.block_until_ready(
        up_forward(x1, x2, params, out_ch, compute_dtype=jnp.bfloat16))
    errbf = float(jnp.max(jnp.abs(out_bf16 - ref)))
    assert errbf < 1.5e-1, f"case1 bf16 vs ref max abs err {errbf}"
    errpp = float(jnp.max(jnp.abs(out_bf16 - out_f32)))
    assert errpp < 1.5e-1, f"case1 bf16 vs f32 Pallas max abs err {errpp}"

    # ---- case 2: lane-aligned skip channels (128 + 128) -> exercises the
    # fused in-kernel channel concat path ------------------------------------
    in_ch2, out_ch2 = 256, 128
    N2, H2, W2 = 1, 4, 4
    ks2 = jax.random.split(jax.random.PRNGKey(1), 6)
    x1b = jax.random.normal(ks2[0], (N2, in_ch2 // 2, H2, W2), jnp.float32)
    x2b = jax.random.normal(ks2[1], (N2, in_ch2 // 2, 2 * H2, 2 * W2),
                            jnp.float32)
    params2 = {
        "w1": jax.random.normal(ks2[2], (3, 3, in_ch2, out_ch2),
                                jnp.float32) * 0.05,
        "b1": jax.random.normal(ks2[3], (out_ch2,), jnp.float32) * 0.1,
        "g1": jnp.ones((out_ch2,), jnp.float32),
        "be1": jnp.zeros((out_ch2,), jnp.float32),
        "w2": jax.random.normal(ks2[4], (3, 3, out_ch2, out_ch2),
                                jnp.float32) * 0.05,
        "b2": jax.random.normal(ks2[5], (out_ch2,), jnp.float32) * 0.1,
        "g2": jnp.ones((out_ch2,), jnp.float32),
        "be2": jnp.zeros((out_ch2,), jnp.float32),
    }
    ref2 = jax.block_until_ready(ref_up_forward(x1b, x2b, params2, out_ch2))
    out2 = jax.block_until_ready(
        up_forward(x1b, x2b, params2, out_ch2, compute_dtype=jnp.float32))
    assert out2.shape == ref2.shape, out2.shape
    err2 = float(jnp.max(jnp.abs(out2 - ref2)))
    assert err2 < 1e-2, f"case2 f32 path max abs err {err2}"

    print("KERNEL_OK")
</pallas_src>

<mosaic_0001>
module attributes {stable_mosaic.version = 11 : i64} {
  func.func @_conv3x3_kernel(%arg0: i32, %arg1: memref<1x16x16x8xf32, #tpu.memory_space<vmem>>, %arg2: memref<9x128x128xf32, #tpu.memory_space<vmem>>, %arg3: memref<1x16x16x128xf32, #tpu.memory_space<vmem>>, %arg4: memref<1x1x128xf32, #tpu.memory_space<vmem>>, %arg5: memref<1x1x128xf32, #tpu.memory_space<vmem>>, %arg6: memref<18x18x128xf32, #tpu.memory_space<vmem>>) attributes {dimension_semantics = [#tpu.dimension_semantics<parallel>], iteration_bounds = array<i64: 2>, scalar_prefetch = 0 : i64, scratch_operands = 1 : i64, tpu.core_type = #tpu.core_type<tc>, window_params = [{transform_indices = @transform_0, window_bounds = array<i64: 1, 16, 16, 8>}, {pipeline_mode = #tpu.pipeline_mode<synchronous>, transform_indices = @transform_1, window_bounds = array<i64: 9, 128, 128>}, {transform_indices = @transform_2, window_bounds = array<i64: 1, 16, 16, 128>}, {transform_indices = @transform_3, window_bounds = array<i64: 1, 1, 128>}, {transform_indices = @transform_4, window_bounds = array<i64: 1, 1, 128>}]} {
    %cst = arith.constant 0.000000e+00 : f32
    %0 = vector.broadcast %cst : f32 to vector<1x18x128xf32>
    %c0 = arith.constant 0 : index
    %c0_0 = arith.constant 0 : index
    %c0_1 = arith.constant 0 : index
    %1 = vector.load %arg6[%c0, %c0_0, %c0_1] : memref<18x18x128xf32, #tpu.memory_space<vmem>>, vector<1x18x128xf32>
    tpu.vector_store %arg6[%c0, %c0_0, %c0_1], %0 {strides = array<i32>} : memref<18x18x128xf32, #tpu.memory_space<vmem>>, vector<1x18x128xf32>,
    %cst_2 = arith.constant 0.000000e+00 : f32
    %2 = vector.broadcast %cst_2 : f32 to vector<1x18x128xf32>
    %c17 = arith.constant 17 : index
    %c0_3 = arith.constant 0 : index
    %c0_4 = arith.constant 0 : index
    %3 = vector.load %arg6[%c17, %c0_3, %c0_4] : memref<18x18x128xf32, #tpu.memory_space<vmem>>, vector<1x18x128xf32>
    tpu.vector_store %arg6[%c17, %c0_3, %c0_4], %2 {strides = array<i32>} : memref<18x18x128xf32, #tpu.memory_space<vmem>>, vector<1x18x128xf32>,
    %cst_5 = arith.constant 0.000000e+00 : f32
    %4 = vector.broadcast %cst_5 : f32 to vector<16x1x128xf32>
    %c1 = arith.constant 1 : index
    %c0_6 = arith.constant 0 : index
    %c0_7 = arith.constant 0 : index
    %5 = vector.load %arg6[%c1, %c0_6, %c0_7] : memref<18x18x128xf32, #tpu.memory_space<vmem>>, vector<16x1x128xf32>
    tpu.vector_store %arg6[%c1, %c0_6, %c0_7], %4 {strides = array<i32>} : memref<18x18x128xf32, #tpu.memory_space<vmem>>, vector<16x1x128xf32>,
    %cst_8 = arith.constant 0.000000e+00 : f32
    %6 = vector.broadcast %cst_8 : f32 to vector<16x1x128xf32>
    %c1_9 = arith.constant 1 : index
    %c17_10 = arith.constant 17 : index
    %c0_11 = arith.constant 0 : index
    %7 = vector.load %arg6[%c1_9, %c17_10, %c0_11] : memref<18x18x128xf32, #tpu.memory_space<vmem>>, vector<16x1x128xf32>
    tpu.vector_store %arg6[%c1_9, %c17_10, %c0_11], %6 {strides = array<i32>} : memref<18x18x128xf32, #tpu.memory_space<vmem>>, vector<16x1x128xf32>,
    %cst_12 = arith.constant 0.000000e+00 : f32
    %8 = vector.broadcast %cst_12 : f32 to vector<16x16x128xf32>
    %c1_13 = arith.constant 1 : index
    %c1_14 = arith.constant 1 : index
    %c0_15 = arith.constant 0 : index
    %9 = vector.load %arg6[%c1_13, %c1_14, %c0_15] : memref<18x18x128xf32, #tpu.memory_space<vmem>>, vector<16x16x128xf32>
    tpu.vector_store %arg6[%c1_13, %c1_14, %c0_15], %8 {strides = array<i32>} : memref<18x18x128xf32, #tpu.memory_space<vmem>>, vector<16x16x128xf32>,
    %c0_16 = arith.constant 0 : index
    %c0_17 = arith.constant 0 : index
    %c0_18 = arith.constant 0 : index
    %c0_19 = arith.constant 0 : index
    %10 = vector.load %arg1[%c0_16, %c0_17, %c0_18, %c0_19] : memref<1x16x16x8xf32, #tpu.memory_space<vmem>>, vector<1x16x16x8xf32>
    %11 = vector.shape_cast %10 : vector<1x16x16x8xf32> to vector<16x16x8xf32>
    %c1_20 = arith.constant 1 : index
    %c1_21 = arith.constant 1 : index
    %c0_22 = arith.constant 0 : index
    %12 = vector.load %arg6[%c1_20, %c1_21, %c0_22] : memref<18x18x128xf32, #tpu.memory_space<vmem>>, vector<16x16x8xf32>
    tpu.vector_store %arg6[%c1_20, %c1_21, %c0_22], %11 {strides = array<i32>} : memref<18x18x128xf32, #tpu.memory_space<vmem>>, vector<16x16x8xf32>,
    %c0_23 = arith.constant 0 : index
    %c0_24 = arith.constant 0 : index
    %c0_25 = arith.constant 0 : index
    %13 = vector.load %arg6[%c0_23, %c0_24, %c0_25] : memref<18x18x128xf32, #tpu.memory_space<vmem>>, vector<16x16x128xf32>
    %14 = vector.shape_cast %13 : vector<16x16x128xf32> to vector<256x128xf32>
    %c0_26 = arith.constant 0 : index
    %c0_27 = arith.constant 0 : index
    %c0_28 = arith.constant 0 : index
    %15 = vector.load %arg2[%c0_26, %c0_27, %c0_28] : memref<9x128x128xf32, #tpu.memory_space<vmem>>, vector<1x128x128xf32>
    %16 = vector.shape_cast %15 : vector<1x128x128xf32> to vector<128x128xf32>
    %cst_29 = arith.constant dense<0.000000e+00> : vector<256x128xf32>
    %17 = tpu.matmul %14, %16, %cst_29 {dimension_numbers = #tpu.dot_dimension_numbers<[1], [0], [0], [1], [0, 0, 1, 1], [], []>} : vector<256x128xf32>, vector<128x128xf32>, vector<256x128xf32> -> vector<256x128xf32>
    %c0_30 = arith.constant 0 : index
    %c1_31 = arith.constant 1 : index
    %c0_32 = arith.constant 0 : index
    %18 = vector.load %arg6[%c0_30, %c1_31, %c0_32] : memref<18x18x128xf32, #tpu.memory_space<vmem>>, vector<16x16x128xf32>
    %19 = vector.shape_cast %18 : vector<16x16x128xf32> to vector<256x128xf32>
    %c1_33 = arith.constant 1 : index
    %c0_34 = arith.constant 0 : index
    %c0_35 = arith.constant 0 : index
    %20 = vector.load %arg2[%c1_33, %c0_34, %c0_35] : memref<9x128x128xf32, #tpu.memory_space<vmem>>, vector<1x128x128xf32>
    %21 = vector.shape_cast %20 : vector<1x128x128xf32> to vector<128x128xf32>
    %cst_36 = arith.constant dense<0.000000e+00> : vector<256x128xf32>
    %22 = tpu.matmul %19, %21, %cst_36 {dimension_numbers = #tpu.dot_dimension_numbers<[1], [0], [0], [1], [0, 0, 1, 1], [], []>} : vector<256x128xf32>, vector<128x128xf32>, vector<256x128xf32> -> vector<256x128xf32>
    %23 = arith.addf %17, %22 : vector<256x128xf32>
    %c0_37 = arith.constant 0 : index
    %c2 = arith.constant 2 : index
    %c0_38 = arith.constant 0 : index
    %24 = vector.load %arg6[%c0_37, %c2, %c0_38] : memref<18x18x128xf32, #tpu.memory_space<vmem>>, vector<16x16x128xf32>
    %25 = vector.shape_cast %24 : vector<16x16x128xf32> to vector<256x128xf32>
    %c2_39 = arith.constant 2 : index
    %c0_40 = arith.constant 0 : index
    %c0_41 = arith.constant 0 : index
    %26 = vector.load %arg2[%c2_39, %c0_40, %c0_41] : memref<9x128x128xf32, #tpu.memory_space<vmem>>, vector<1x128x128xf32>
    %27 = vector.shape_cast %26 : vector<1x128x128xf32> to vector<128x128xf32>
    %cst_42 = arith.constant dense<0.000000e+00> : vector<256x128xf32>
    %28 = tpu.matmul %25, %27, %cst_42 {dimension_numbers = #tpu.dot_dimension_numbers<[1], [0], [0], [1], [0, 0, 1, 1], [], []>} : vector<256x128xf32>, vector<128x128xf32>, vector<256x128xf32> -> vector<256x128xf32>
    %29 = arith.addf %23, %28 : vector<256x128xf32>
    %c1_43 = arith.constant 1 : index
    %c0_44 = arith.constant 0 : index
    %c0_45 = arith.constant 0 : index
    %30 = vector.load %arg6[%c1_43, %c0_44, %c0_45] : memref<18x18x128xf32, #tpu.memory_space<vmem>>, vector<16x16x128xf32>
    %31 = vector.shape_cast %30 : vector<16x16x128xf32> to vector<256x128xf32>
    %c3 = arith.constant 3 : index
    %c0_46 = arith.constant 0 : index
    %c0_47 = arith.constant 0 : index
    %32 = vector.load %arg2[%c3, %c0_46, %c0_47] : memref<9x128x128xf32, #tpu.memory_space<vmem>>, vector<1x128x128xf32>
    %33 = vector.shape_cast %32 : vector<1x128x128xf32> to vector<128x128xf32>
    %cst_48 = arith.constant dense<0.000000e+00> : vector<256x128xf32>
    %34 = tpu.matmul %31, %33, %cst_48 {dimension_numbers = #tpu.dot_dimension_numbers<[1], [0], [0], [1], [0, 0, 1, 1], [], []>} : vector<256x128xf32>, vector<128x128xf32>, vector<256x128xf32> -> vector<256x128xf32>
    %35 = arith.addf %29, %34 : vector<256x128xf32>
    %c1_49 = arith.constant 1 : index
    %c1_50 = arith.constant 1 : index
    %c0_51 = arith.constant 0 : index
    %36 = vector.load %arg6[%c1_49, %c1_50, %c0_51] : memref<18x18x128xf32, #tpu.memory_space<vmem>>, vector<16x16x128xf32>
    %37 = vector.shape_cast %36 : vector<16x16x128xf32> to vector<256x128xf32>
    %c4 = arith.constant 4 : index
    %c0_52 = arith.constant 0 : index
    %c0_53 = arith.constant 0 : index
    %38 = vector.load %arg2[%c4, %c0_52, %c0_53] : memref<9x128x128xf32, #tpu.memory_space<vmem>>, vector<1x128x128xf32>
    %39 = vector.shape_cast %38 : vector<1x128x128xf32> to vector<128x128xf32>
    %cst_54 = arith.constant dense<0.000000e+00> : vector<256x128xf32>
    %40 = tpu.matmul %37, %39, %cst_54 {dimension_numbers = #tpu.dot_dimension_numbers<[1], [0], [0], [1], [0, 0, 1, 1], [], []>} : vector<256x128xf32>, vector<128x128xf32>, vector<256x128xf32> -> vector<256x128xf32>
    %41 = arith.addf %35, %40 : vector<256x128xf32>
    %c1_55 = arith.constant 1 : index
    %c2_56 = arith.constant 2 : index
    %c0_57 = arith.constant 0 : index
    %42 = vector.load %arg6[%c1_55, %c2_56, %c0_57] : memref<18x18x128xf32, #tpu.memory_space<vmem>>, vector<16x16x128xf32>
    %43 = vector.shape_cast %42 : vector<16x16x128xf32> to vector<256x128xf32>
    %c5 = arith.constant 5 : index
    %c0_58 = arith.constant 0 : index
    %c0_59 = arith.constant 0 : index
    %44 = vector.load %arg2[%c5, %c0_58, %c0_59] : memref<9x128x128xf32, #tpu.memory_space<vmem>>, vector<1x128x128xf32>
    %45 = vector.shape_cast %44 : vector<1x128x128xf32> to vector<128x128xf32>
    %cst_60 = arith.constant dense<0.000000e+00> : vector<256x128xf32>
    %46 = tpu.matmul %43, %45, %cst_60 {dimension_numbers = #tpu.dot_dimension_numbers<[1], [0], [0], [1], [0, 0, 1, 1], [], []>} : vector<256x128xf32>, vector<128x128xf32>, vector<256x128xf32> -> vector<256x128xf32>
    %47 = arith.addf %41, %46 : vector<256x128xf32>
    %c2_61 = arith.constant 2 : index
    %c0_62 = arith.constant 0 : index
    %c0_63 = arith.constant 0 : index
    %48 = vector.load %arg6[%c2_61, %c0_62, %c0_63] : memref<18x18x128xf32, #tpu.memory_space<vmem>>, vector<16x16x128xf32>
    %49 = vector.shape_cast %48 : vector<16x16x128xf32> to vector<256x128xf32>
    %c6 = arith.constant 6 : index
    %c0_64 = arith.constant 0 : index
    %c0_65 = arith.constant 0 : index
    %50 = vector.load %arg2[%c6, %c0_64, %c0_65] : memref<9x128x128xf32, #tpu.memory_space<vmem>>, vector<1x128x128xf32>
    %51 = vector.shape_cast %50 : vector<1x128x128xf32> to vector<128x128xf32>
    %cst_66 = arith.constant dense<0.000000e+00> : vector<256x128xf32>
    %52 = tpu.matmul %49, %51, %cst_66 {dimension_numbers = #tpu.dot_dimension_numbers<[1], [0], [0], [1], [0, 0, 1, 1], [], []>} : vector<256x128xf32>, vector<128x128xf32>, vector<256x128xf32> -> vector<256x128xf32>
    %53 = arith.addf %47, %52 : vector<256x128xf32>
    %c2_67 = arith.constant 2 : index
    %c1_68 = arith.constant 1 : index
    %c0_69 = arith.constant 0 : index
    %54 = vector.load %arg6[%c2_67, %c1_68, %c0_69] : memref<18x18x128xf32, #tpu.memory_space<vmem>>, vector<16x16x128xf32>
    %55 = vector.shape_cast %54 : vector<16x16x128xf32> to vector<256x128xf32>
    %c7 = arith.constant 7 : index
    %c0_70 = arith.constant 0 : index
    %c0_71 = arith.constant 0 : index
    %56 = vector.load %arg2[%c7, %c0_70, %c0_71] : memref<9x128x128xf32, #tpu.memory_space<vmem>>, vector<1x128x128xf32>
    %57 = vector.shape_cast %56 : vector<1x128x128xf32> to vector<128x128xf32>
    %cst_72 = arith.constant dense<0.000000e+00> : vector<256x128xf32>
    %58 = tpu.matmul %55, %57, %cst_72 {dimension_numbers = #tpu.dot_dimension_numbers<[1], [0], [0], [1], [0, 0, 1, 1], [], []>} : vector<256x128xf32>, vector<128x128xf32>, vector<256x128xf32> -> vector<256x128xf32>
    %59 = arith.addf %53, %58 : vector<256x128xf32>
    %c2_73 = arith.constant 2 : index
    %c2_74 = arith.constant 2 : index
    %c0_75 = arith.constant 0 : index
    %60 = vector.load %arg6[%c2_73, %c2_74, %c0_75] : memref<18x18x128xf32, #tpu.memory_space<vmem>>, vector<16x16x128xf32>
    %61 = vector.shape_cast %60 : vector<16x16x128xf32> to vector<256x128xf32>
    %c8 = arith.constant 8 : index
    %c0_76 = arith.constant 0 : index
    %c0_77 = arith.constant 0 : index
    %62 = vector.load %arg2[%c8, %c0_76, %c0_77] : memref<9x128x128xf32, #tpu.memory_space<vmem>>, vector<1x128x128xf32>
    %63 = vector.shape_cast %62 : vector<1x128x128xf32> to vector<128x128xf32>
    %cst_78 = arith.constant dense<0.000000e+00> : vector<256x128xf32>
    %64 = tpu.matmul %61, %63, %cst_78 {dimension_numbers = #tpu.dot_dimension_numbers<[1], [0], [0], [1], [0, 0, 1, 1], [], []>} : vector<256x128xf32>, vector<128x128xf32>, vector<256x128xf32> -> vector<256x128xf32>
    %65 = arith.addf %59, %64 : vector<256x128xf32>
    %cst_79 = arith.constant dense<0.000000e+00> : vector<128xf32>
    %66 = vector.multi_reduction <add>, %65, %cst_79 [0] : vector<256x128xf32> to vector<128xf32>
    %67 = vector.shape_cast %66 : vector<128xf32> to vector<1x128xf32>
    %cst_80 = arith.constant 3.906250e-03 : f32
    %68 = vector.broadcast %cst_80 : f32 to vector<1x128xf32>
    %69 = arith.mulf %67, %68 : vector<1x128xf32>
    %70 = vector.broadcast %69 : vector<1x128xf32> to vector<256x128xf32>
    %71 = arith.subf %65, %70 : vector<256x128xf32>
    %72 = arith.mulf %71, %71 : vector<256x128xf32>
    %cst_81 = arith.constant dense<0.000000e+00> : vector<128xf32>
    %73 = vector.multi_reduction <add>, %72, %cst_81 [0] : vector<256x128xf32> to vector<128xf32>
    %74 = vector.shape_cast %73 : vector<128xf32> to vector<1x128xf32>
    %75 = vector.shape_cast %65 : vector<256x128xf32> to vector<1x16x16x128xf32>
    %c0_82 = arith.constant 0 : index
    %c0_83 = arith.constant 0 : index
    %c0_84 = arith.constant 0 : index
    %c0_85 = arith.constant 0 : index
    %76 = vector.load %arg3[%c0_82, %c0_83, %c0_84, %c0_85] : memref<1x16x16x128xf32, #tpu.memory_space<vmem>>, vector<1x16x16x128xf32>
    tpu.vector_store %arg3[%c0_82, %c0_83, %c0_84, %c0_85], %75 {strides = array<i32>} : memref<1x16x16x128xf32, #tpu.memory_space<vmem>>, vector<1x16x16x128xf32>,
    %77 = vector.shape_cast %67 : vector<1x128xf32> to vector<1x1x128xf32>
    %c0_86 = arith.constant 0 : index
    %c0_87 = arith.constant 0 : index
    %c0_88 = arith.constant 0 : index
    %78 = vector.load %arg4[%c0_86, %c0_87, %c0_88] : memref<1x1x128xf32, #tpu.memory_space<vmem>>, vector<1x1x128xf32>
    tpu.vector_store %arg4[%c0_86, %c0_87, %c0_88], %77 {strides = array<i32>} : memref<1x1x128xf32, #tpu.memory_space<vmem>>, vector<1x1x128xf32>,
    %79 = vector.shape_cast %74 : vector<1x128xf32> to vector<1x1x128xf32>
    %c0_89 = arith.constant 0 : index
    %c0_90 = arith.constant 0 : index
    %c0_91 = arith.constant 0 : index
    %80 = vector.load %arg5[%c0_89, %c0_90, %c0_91] : memref<1x1x128xf32, #tpu.memory_space<vmem>>, vector<1x1x128xf32>
    tpu.vector_store %arg5[%c0_89, %c0_90, %c0_91], %79 {strides = array<i32>} : memref<1x1x128xf32, #tpu.memory_space<vmem>>, vector<1x1x128xf32>,
    return
  }
  func.func @transform_0(%arg0: i32) -> (i32, i32, i32, i32) {
    %c0_i32 = arith.constant 0 : i32
    %c0_i32_0 = arith.constant 0 : i32
    %c0_i32_1 = arith.constant 0 : i32
    %c0_i32_2 = arith.constant 0 : i32
    return %arg0, %c0_i32, %c0_i32_0, %c0_i32_1 : i32, i32, i32, i32
  }
  func.func @transform_1(%arg0: i32) -> (i32, i32, i32) {
    %c0_i32 = arith.constant 0 : i32
    %c0_i32_0 = arith.constant 0 : i32
    %c0_i32_1 = arith.constant 0 : i32
    %c0_i32_2 = arith.constant 0 : i32
    return %c0_i32, %c0_i32_0, %c0_i32_1 : i32, i32, i32
  }
  func.func @transform_2(%arg0: i32) -> (i32, i32, i32, i32) {
    %c0_i32 = arith.constant 0 : i32
    %c0_i32_0 = arith.constant 0 : i32
    %c0_i32_1 = arith.constant 0 : i32
    %c0_i32_2 = arith.constant 0 : i32
    return %arg0, %c0_i32, %c0_i32_0, %c0_i32_1 : i32, i32, i32, i32
  }
  func.func @transform_3(%arg0: i32) -> (i32, i32, i32) {
    %c0_i32 = arith.constant 0 : i32
    %c0_i32_0 = arith.constant 0 : i32
    %c0_i32_1 = arith.constant 0 : i32
    return %arg0, %c0_i32, %c0_i32_0 : i32, i32, i32
  }
  func.func @transform_4(%arg0: i32) -> (i32, i32, i32) {
    %c0_i32 = arith.constant 0 : i32
    %c0_i32_0 = arith.constant 0 : i32
    %c0_i32_1 = arith.constant 0 : i32
    return %arg0, %c0_i32, %c0_i32_0 : i32, i32, i32
  }
}

</mosaic_0001>

<bundles_post_ra>
// kernel: tpu_custom_call.1
= control target key start
LH: loop header
LB: loop body
LE: loop exit
PB: predicated region body
PF: predicated region fallthrough
CT: control target
= control target key end

     0   :  { %10 = vsyncpa [#allocation4], 0  ;;  %s3598_s0 = inlined_call_operand.vmem [shape: f32[2,16,16,8], index: 0, kind: input, shape index: {}]   ;;  %s3599_s1 = inlined_call_operand.hbm [shape: f32[9,128,128], index: 1, kind: input, shape index: {}]   ;;  %s3600_s2 = inlined_call_operand.hbm [shape: f32[2,16,16,128], index: 2, kind: output, shape index: {0}]   ;;  %s3601_s3 = inlined_call_operand.hbm [shape: f32[2,1,128], index: 3, kind: output, shape index: {1}]   ;;  %s3602_s4 = inlined_call_operand.hbm [shape: f32[2,1,128], index: 4, kind: output, shape index: {2}]  }
   0x1   :  { %11 = vsyncpa [#allocation5], 0 }
   0x2   :  { %13 = vsyncpa [#allocation5 + $0x1], 0 }
   0x3   :  { %14 = vsyncpa [#allocation8], 0 }
   0x4   :  { %16 = vsyncpa [#allocation8 + $0x1], 0  ;;  %s2717_s15 = smov 0   ;;  %s2719_s16 = smov 0  }
   0x5   :  { %s2721_s17 = smov 0   ;;  %s2723_s18 = smov 0  }
   0x6 LB: > { %s2738_s19 = sadd.s32 4294967295, %s2684_s18   ;;  %s2398_s20 = sadd.s32 4294967294, %s2684_s18   ;;  %s2684_s18 = sphi %s2723_s18, %s3631_s18   ;;  %s2680_s17 = sphi %s2721_s17, %s3630_s17   ;;  %s2676_s16 = sphi %s2719_s16, %s3629_s16   ;;  %s2672_s15 = sphi %s2717_s15, %s3628_s15  }
   0x7   : > { %s2742_s21 = sadd.s32 1, %s2684_s18   ;;  %s76_s22 = sadd.s32 1, %s2680_s17 }
   0x8   : > { %s73_s23 = ssub.s32 %s2684_s18, %s2742_s21  ;;  %p86_p0 = scmp.ne.s32.totalorder %s2680_s17, %s2676_s16 }
   0x9   : > { %p74_p1 = scmp.eq.s32.totalorder %s73_s23, 0  ;;  %p87_p2 = scmp.eq.s32.totalorder %s2738_s19, 1 }
   0xa   : > { %p92_p3 = scmp.ne.s32.totalorder %s2676_s16, %s2672_s15  ;;  %p93_p4 = scmp.eq.s32.totalorder %s2398_s20, 1 }
   0xb   : > { %s2755_s24 = scalar_select %p74_p1, %s2680_s17, %s76_s22  }
   0xc   : > { %p2757_p5 = por %p87_p2, %p86_p0  ;;  %p2761_p6 = por %p93_p4, %p92_p3 }
   0xd   : > { %p2399_p7 = scmp.ge.s32.totalorder %s2684_s18, 1  ;;  %p152_p8 = scmp.lt.s32.totalorder %s2684_s18, 3 }
   0xe   : > { %p2486_p9 = scmp.eq.s32.totalorder %s2738_s19, 0  ;;  %s163_s29 = sshll.u32 %s3599_s1, 4  ;;  %s164_s29 = int_to_ptr.hbm [resolvable:$true] %s163_s29 }
   0xf   : > { %p153_p10 = pnand %p2399_p7, %p152_p8  ;;  %s2686_s30 = smov [#allocation3]  }
  0x10   : > { %s165_s5 = sshll.u32 %s2686_s30, 4  ;;  %s2687_s6 = smov 128   ;;  %s166_s5 = int_to_ptr.vmem [resolvable:$true] %s165_s5 }
  0x11   : > { %p2472_p11 = pneg %p153_p10  ;;  %s2688_s7 = smov 8  }
  0x12   : > { %189 = sbr.rel (%p153_p10) target bundleno = 912 (0x390), region = 28 }
  0x13   : > { %p2473_p12 = pnand %p2486_p9, %p2472_p11 }
  0x15   : > { %2475 = dma.hbm_to_vmem [thread:$0]  (!%p2473_p12), %s164_s29, 18432, %s166_s5, [#allocation4], %s2687_s6, %s2687_s6, %s2688_s7  }
  0x17   : > { %2659 = dma.done.wait (%p2486_p9), [#allocation4], 18432  }
  0x18   : > { %2661 = vsyncadd (%p2486_p9), [#allocation4], 4294948864  ;;  %p224_p13 = scmp.lt.s32.totalorder %s2738_s19, 1  ;;  %v2689_v0 = vmov 0.0   ;;  %v462_v1 = vld [vmem:[#allocation3 + $0xf8] sm:$0xff]  ;;  %v461_v2 = vld [vmem:[#allocation3 + $0xf0] sm:$0xff] }
  0x19   : > { %275 = vst [vmem:[#allocation2 + $0x61] sm:$0xff] %v2689_v0  ;;  %2414 = vmatpush.msra.mxu1 %v462_v1  ;;  %2415 = vmatpush.msra.mxu2 %v462_v1  ;;  %v460_v3 = vld [vmem:[#allocation3 + $0xe8] sm:$0xff]  ;;  %vm333_vm0 = vcmask 64512   ;;  %v459_v4 = vld [vmem:[#allocation3 + $0xe0] sm:$0xff]  ;;  %v458_v6 = vld [vmem:[#allocation3 + $0xd8] sm:$0xff]  ;;  %s3226_s13 = sand.u32 1, %s2676_s16  }
  0x1a   : > { %s225_s8 = scalar_select %p224_p13, %s2738_s19, 1  ;;  %229 = vst [vmem:[#allocation2] sm:$0xff] %v2689_v0  ;;  %2416 = vmatpush.msra.mxu3 %v462_v1  ;;  %463 = vmatpush.msra.mxu0 %v462_v1  ;;  %v457_v7 = vld [vmem:[#allocation3 + $0xd0] sm:$0xff]  ;;  %v456_v8 = vld [vmem:[#allocation3 + $0xc8] sm:$0xff]  ;;  %v455_v9 = vld [vmem:[#allocation3 + $0xc0] sm:$0xff] }
  0x1b   : > { %230 = vst [vmem:[#allocation2 + $0x8] sm:$0xff] %v2689_v0  ;;  %2417 = vmatpush.msra.mxu1 %v461_v2  ;;  %2418 = vmatpush.msra.mxu2 %v461_v2  ;;  %v454_v10 = vld [vmem:[#allocation3 + $0xb8] sm:$0xff]  ;;  %v453_v11 = vld [vmem:[#allocation3 + $0xb0] sm:$0xff]  ;;  %v452_v12 = vld [vmem:[#allocation3 + $0xa8] sm:$0xff]  ;;  %s2404_s14 = sshll.u32 %s3226_s13, 8  ;;  %s2413_s23 = sshll.u32 %s2738_s19, 8 }
  0x1c   : > { %231 = vst [vmem:[#allocation2 + $0x10] sm:$0x3] %v2689_v0  ;;  %s2412_s9 = sshll.u32 %s225_s8, 8  ;;  %2419 = vmatpush.msra.mxu3 %v461_v2  ;;  %464 = vmatpush.msra.mxu0 %v461_v2  ;;  %v451_v13 = vld [vmem:[#allocation3 + $0xa0] sm:$0xff]  ;;  %v450_v14 = vld [vmem:[#allocation3 + $0x98] sm:$0xff]  ;;  %v449_v15 = vld [vmem:[#allocation3 + $0x90] sm:$0xff]  ;;  %s2241_s29 = scalar_lea.hbm %s3600_s2, %s2413_s23 }
  0x1d   : > { %233 = vst [vmem:[#allocation2 + $0x198] sm:$0xff] %v2689_v0  ;;  %s2790_s12 = scalar_lea.vmem %s3598_s0, %s2412_s9  ;;  %2420 = vmatpush.msra.mxu1 %v460_v3  ;;  %2421 = vmatpush.msra.mxu2 %v460_v3  ;;  %v448_v16 = vld [vmem:[#allocation3 + $0x88] sm:$0xff]  ;;  %v447_v17 = vld [vmem:[#allocation3 + $0x80] sm:$0xff]  ;;  %v737_v19 = vld [vmem:[#allocation3 + $0x178] sm:$0xff]  ;;  %s3233_s22 = scalar_lea.vmem [#allocation6], %s2404_s14 }
  0x1e   : > { %234 = vst [vmem:[#allocation2 + $0x1a0] sm:$0xff] %v2689_v0  ;;  %v307_v5 = vld [vmem:[%s2790_s12 + $0x30] sm:$0xff]  ;;  %2422 = vmatpush.msra.mxu3 %v460_v3  ;;  %465 = vmatpush.msra.mxu0 %v460_v3  ;;  %v931_v20 = vld [vmem:[#allocation3 + $0x1f8] sm:$0xff]  ;;  %v736_v22 = vld [vmem:[#allocation3 + $0x170] sm:$0xff]  ;;  %s2242_s30 = sshll.u32 %s3233_s22, 4  ;;  %s2244_s5 = sshll.u32 %s2241_s29, 4  ;;  %s2243_s30 = int_to_ptr.vmem [resolvable:$true] %s2242_s30  ;;  %s2245_s5 = int_to_ptr.hbm [resolvable:$true] %s2244_s5 }
  0x1f   : > { %235 = vst [vmem:[#allocation2 + $0x1a8] sm:$0x3] %v2689_v0  ;;  %2423 = vmatpush.msra.mxu1 %v459_v4  ;;  %2424 = vmatpush.msra.mxu2 %v459_v4  ;;  %v413_v21 = vld [vmem:[#allocation3 + $0x78] sm:$0xff]  ;;  %v930_v23 = vld [vmem:[#allocation3 + $0x1f0] sm:$0xff]  ;;  %v735_v25 = vld [vmem:[#allocation3 + $0x168] sm:$0xff]  ;;  %s2222_s6 = scalar_lea.sflag [#allocation5], %s3226_s13 }
  0x20   : > { %237 = vst [vmem:[#allocation2 + $0x18] sm:$0x1] %v2689_v0  ;;  %2425 = vmatpush.msra.mxu3 %v459_v4  ;;  %466 = vmatpush.msra.mxu0 %v459_v4  ;;  %v412_v24 = vld [vmem:[#allocation3 + $0x70] sm:$0xff]  ;;  %v929_v27 = vld [vmem:[#allocation3 + $0x1e8] sm:$0xff]  ;;  %v1125_v28 = vld [vmem:[#allocation3 + $0x278] sm:$0xff]  ;;  %s2572_s7 = sshra.s32 %s2245_s5, 4  ;;  %s2573_s7 = int_to_ptr.hbm [resolvable:$true] %s2572_s7 }
  0x21   : > { %238 = vst [vmem:[#allocation2 + $0x30] sm:$0x1] %v2689_v0  ;;  %2426 = vmatpush.msra.mxu1 %v458_v6  ;;  %2427 = vmatpush.msra.mxu2 %v458_v6  ;;  %v411_v29 = vld [vmem:[#allocation3 + $0x68] sm:$0xff]  ;;  %v734_v30 = vld [vmem:[#allocation3 + $0x160] sm:$0xff]  ;;  %v1124_v32 = vld [vmem:[#allocation3 + $0x270] sm:$0xff]  ;;  %s2574_s8 = scalar_lea.hbm %s2573_s7, 256  ;;  %p2579_p3 = scmp.lt.s32.totalorder %s2573_s7, %s3600_s2 }
  0x22   : > { %239 = vst [vmem:[#allocation2 + $0x48] sm:$0x1] %v2689_v0  ;;  %2428 = vmatpush.msra.mxu3 %v458_v6  ;;  %467 = vmatpush.msra.mxu0 %v458_v6  ;;  %v414_v26 = vld [vmem:[#allocation2 + $0x1] sm:$0xff]  ;;  %v928_v31 = vld [vmem:[#allocation3 + $0x1e0] sm:$0xff]  ;;  %v1123_v37 = vld [vmem:[#allocation3 + $0x268] sm:$0xff]  ;;  %p2575_p0 = scmp.ne.s32.totalorder %s2573_s7, %s2574_s8  ;;  %s2578_s11 = scalar_lea.hbm %s3600_s2, 512 }
  0x23   : > { %240 = vst [vmem:[#allocation2 + $0x60] sm:$0x1] %v2689_v0  ;;  %2429 = vmatpush.msra.mxu1 %v457_v7  ;;  %2430 = vmatpush.msra.mxu2 %v457_v7  ;;  %v410_v33 = vld [vmem:[#allocation3 + $0x60] sm:$0xff]  ;;  %v733_v34 = vld [vmem:[#allocation3 + $0x158] sm:$0xff]  ;;  %v732_v39 = vld [vmem:[#allocation3 + $0x150] sm:$0xff]  ;;  %p2580_p4 = scmp.lt.s32.totalorder %s2578_s11, %s2574_s8 }
  0x24   : > { %241 = vst [vmem:[#allocation2 + $0x78] sm:$0x1] %v2689_v0  ;;  %2431 = vmatpush.msra.mxu3 %v457_v7  ;;  %468 = vmatpush.msra.mxu0 %v457_v7  ;;  %v415_v35 = vld [vmem:[#allocation2 + $0x9] sm:$0xff]  ;;  %v926_v40 = vld [vmem:[#allocation3 + $0x1d0] sm:$0xff]  ;;  %v308_v44 = vld [vmem:[%s2790_s12 + $0x38] sm:$0xff]  ;;  %p2576_p1 = pnand %p2575_p0, %p2757_p5 }
  0x25   : > { %340 = vst.msk [vmem:[#allocation2 + $0x61] sm:$0xff] %vm333_vm0, %v307_v5  ;;  %2432 = vmatpush.msra.mxu1 %v456_v8  ;;  %2433 = vmatpush.msra.mxu2 %v456_v8  ;;  %v927_v36 = vld [vmem:[#allocation3 + $0x1d8] sm:$0xff]  ;;  %v1122_v41 = vld [vmem:[#allocation3 + $0x260] sm:$0xff]  ;;  %v316_v45 = vld [vmem:[%s2790_s12 + $0x78] sm:$0xff]  ;;  %p2581_p7 = por %p2580_p4, %p2579_p3 }
  0x26   : > { %242 = vst [vmem:[#allocation2 + $0x90] sm:$0x1] %v2689_v0  ;;  %2434 = vmatpush.msra.mxu3 %v456_v8  ;;  %469 = vmatpush.msra.mxu0 %v456_v8  ;;  %v409_v38 = vld [vmem:[#allocation3 + $0x58] sm:$0xff]  ;;  %v315_v42 = vld [vmem:[%s2790_s12 + $0x70] sm:$0xff]  ;;  %v324_v46 = vld [vmem:[%s2790_s12 + $0xb8] sm:$0xff]  ;;  %p2577_p2 = pneg %p2576_p1 }
  0x27   : > { %243 = vst [vmem:[#allocation2 + $0xa8] sm:$0x1] %v2689_v0  ;;  %2435 = vmatpush.msra.mxu1 %v455_v9  ;;  %2436 = vmatpush.msra.mxu2 %v455_v9  ;;  %v323_v43 = vld [vmem:[%s2790_s12 + $0xb0] sm:$0xff]  ;;  %v309_v47 = vld [vmem:[%s2790_s12 + $0x40] sm:$0xff]  ;;  %v731_v49 = vld [vmem:[#allocation3 + $0x148] sm:$0xff] }
  0x28   : > { %244 = vst [vmem:[#allocation2 + $0xc0] sm:$0x1] %v2689_v0  ;;  %2437 = vmatpush.msra.mxu3 %v455_v9  ;;  %470 = vmatpush.msra.mxu0 %v455_v9  ;;  %v408_v48 = vld [vmem:[#allocation3 + $0x50] sm:$0xff]  ;;  %v925_v50 = vld [vmem:[#allocation3 + $0x1c8] sm:$0xff]  ;;  %v1121_v51 = vld [vmem:[#allocation3 + $0x258] sm:$0xff]  ;;  %p2582_p8 = pnand %p2581_p7, %p2577_p2 }
  0x29   : > { %245 = vst [vmem:[#allocation2 + $0xd8] sm:$0x1] %v2689_v0  ;;  %2438 = vmatpush.msra.mxu1 %v454_v10  ;;  %2439 = vmatpush.msra.mxu2 %v454_v10  ;;  %v407_v52 = vld [vmem:[#allocation3 + $0x48] sm:$0xff]  ;;  %v730_v53 = vld [vmem:[#allocation3 + $0x140] sm:$0xff]  ;;  %v1120_v55 = vld [vmem:[#allocation3 + $0x250] sm:$0xff] }
  0x2a   : > { %246 = vst [vmem:[#allocation2 + $0xf0] sm:$0x1] %v2689_v0  ;;  %2440 = vmatpush.msra.mxu3 %v454_v10  ;;  %471 = vmatpush.msra.mxu0 %v454_v10  ;;  %v924_v54 = vld [vmem:[#allocation3 + $0x1c0] sm:$0xff]  ;;  %v317_v56 = vld [vmem:[%s2790_s12 + $0x80] sm:$0xff]  ;;  %v310_v58 = vld [vmem:[%s2790_s12 + $0x48] sm:$0xff] }
  0x2b   : > { %247 = vst [vmem:[#allocation2 + $0x108] sm:$0x1] %v2689_v0  ;;  %2441 = vmatpush.msra.mxu1 %v453_v11  ;;  %2442 = vmatpush.msra.mxu2 %v453_v11  ;;  %v325_v57 = vld [vmem:[%s2790_s12 + $0xc0] sm:$0xff]  ;;  %v318_v59 = vld [vmem:[%s2790_s12 + $0x88] sm:$0xff]  ;;  %v311_v63 = vld [vmem:[%s2790_s12 + $0x50] sm:$0xff] }
  0x2c   : > { %248 = vst [vmem:[#allocation2 + $0x120] sm:$0x1] %v2689_v0  ;;  %2443 = vmatpush.msra.mxu3 %v453_v11  ;;  %472 = vmatpush.msra.mxu0 %v453_v11  ;;  %v2820_v18 = vld [vmem:[#allocation2 + $0x61] sm:$0xff]  ;;  %v406_v2 = vld [vmem:[#allocation3 + $0x40] sm:$0xff]  ;;  %v1119_v6 = vld [vmem:[#allocation3 + $0x248] sm:$0xff] }
  0x2d   : > { %249 = vst [vmem:[#allocation2 + $0x138] sm:$0x1] %v2689_v0  ;;  %2444 = vmatpush.msra.mxu1 %v452_v12  ;;  %2445 = vmatpush.msra.mxu2 %v452_v12  ;;  %v301_v60 = vld [vmem:[%s2790_s12] sm:$0xff]  ;;  %v326_v62 = vld [vmem:[%s2790_s12 + $0xc8] sm:$0xff]  ;;  %v319_v7 = vld [vmem:[%s2790_s12 + $0x90] sm:$0xff] }
  0x2e   : > { %250 = vst [vmem:[#allocation2 + $0x150] sm:$0x1] %v2689_v0  ;;  %2446 = vmatpush.msra.mxu3 %v452_v12  ;;  %473 = vmatpush.msra.mxu0 %v452_v12  ;;  %v729_v3 = vld [vmem:[#allocation3 + $0x138] sm:$0xff]  ;;  %v728_v9 = vld [vmem:[#allocation3 + $0x130] sm:$0xff]  ;;  %v1118_v12 = vld [vmem:[#allocation3 + $0x240] sm:$0xff] }
  0x2f   : > { %251 = vst [vmem:[#allocation2 + $0x168] sm:$0x1] %v2689_v0  ;;  %2447 = vmatpush.msra.mxu1 %v451_v13  ;;  %2448 = vmatpush.msra.mxu2 %v451_v13  ;;  %v923_v5 = vld [vmem:[#allocation3 + $0x1b8] sm:$0xff]  ;;  %v922_v11 = vld [vmem:[#allocation3 + $0x1b0] sm:$0xff] }
  0x30   : > { %252 = vst [vmem:[#allocation2 + $0x180] sm:$0x1] %v2689_v0  ;;  %2449 = vmatpush.msra.mxu3 %v451_v13  ;;  %474 = vmatpush.msra.mxu0 %v451_v13  ;;  %v405_v8 = vld [vmem:[#allocation3 + $0x38] sm:$0xff]  ;;  %v327_v13 = vld [vmem:[%s2790_s12 + $0xd0] sm:$0xff] }
  0x31   : > { %253 = vst [vmem:[#allocation2 + $0x29] sm:$0x1] %v2689_v0  ;;  %2450 = vmatpush.msra.mxu1 %v450_v14  ;;  %2451 = vmatpush.msra.mxu2 %v450_v14  ;;  %v302_v10 = vld [vmem:[%s2790_s12 + $0x8] sm:$0xff] }
  0x32   : > { %254 = vst [vmem:[#allocation2 + $0x41] sm:$0x1] %v2689_v0  ;;  %2452 = vmatpush.msra.mxu3 %v450_v14  ;;  %475 = vmatpush.msra.mxu0 %v450_v14 }
  0x33   : > { %255 = vst [vmem:[#allocation2 + $0x59] sm:$0x1] %v2689_v0  ;;  %2453 = vmatpush.msra.mxu1 %v449_v15  ;;  %2454 = vmatpush.msra.mxu2 %v449_v15 }
  0x34   : > { %256 = vst [vmem:[#allocation2 + $0x71] sm:$0x1] %v2689_v0  ;;  %2455 = vmatpush.msra.mxu3 %v449_v15  ;;  %476 = vmatpush.msra.mxu0 %v449_v15  ;;  %v312_v15 = vld [vmem:[%s2790_s12 + $0x58] sm:$0xff] }
  0x35   : > { %257 = vst [vmem:[#allocation2 + $0x89] sm:$0x1] %v2689_v0  ;;  %2456 = vmatpush.msra.mxu1 %v448_v16  ;;  %2457 = vmatpush.msra.mxu2 %v448_v16 }
  0x36   : > { %258 = vst [vmem:[#allocation2 + $0xa1] sm:$0x1] %v2689_v0  ;;  %2458 = vmatpush.msra.mxu3 %v448_v16  ;;  %477 = vmatpush.msra.mxu0 %v448_v16 }
  0x37   : > { %259 = vst [vmem:[#allocation2 + $0xb9] sm:$0x1] %v2689_v0  ;;  %2459 = vmatpush.msra.mxu1 %v447_v17  ;;  %2460 = vmatpush.msra.mxu2 %v447_v17 }
  0x38   : > { %260 = vst [vmem:[#allocation2 + $0xd1] sm:$0x1] %v2689_v0  ;;  %503 = vmatmul.f32.vlgmr.msra.gmra.mxu1 %v2820_v18  ;;  %2461 = vmatpush.msra.mxu3 %v447_v17 }
  0x39   : > { %261 = vst [vmem:[#allocation2 + $0xe9] sm:$0x1] %v2689_v0  ;;  %478 = vmatpush.msra.mxu0 %v447_v17  ;;  %738 = vmatpush.msrb.mxu2 %v737_v19  ;;  %v320_v17 = vld [vmem:[%s2790_s12 + $0x98] sm:$0xff] }
  0x3a   : > { %262 = vst [vmem:[#allocation2 + $0x101] sm:$0x1] %v2689_v0  ;;  %932 = vmatpush.msrb.mxu3 %v931_v20  ;;  %576 = vmatpush.msrb.mxu1 %v413_v21  ;;  %v303_v20 = vld [vmem:[%s2790_s12 + $0x10] sm:$0xff]  ;;  %v328_v21 = vld [vmem:[%s2790_s12 + $0xd8] sm:$0xff] }
  0x3b   : > { %263 = vst [vmem:[#allocation2 + $0x119] sm:$0x1] %v2689_v0  ;;  %739 = vmatpush.msrb.mxu2 %v736_v22  ;;  %479 = vmatmul.f32.vlgmr.msra.gmra.mxu0 %v414_v26  ;;  %v404_v22 = vld [vmem:[#allocation3 + $0x30] sm:$0xff]  ;;  %v921_v26 = vld [vmem:[#allocation3 + $0x1a8] sm:$0xff] }
  0x3c   : > { %264 = vst [vmem:[#allocation2 + $0x131] sm:$0x1] %v2689_v0  ;;  %933 = vmatpush.msrb.mxu3 %v930_v23  ;;  %577 = vmatpush.msrb.mxu1 %v412_v24  ;;  %v727_v23 = vld [vmem:[#allocation3 + $0x128] sm:$0xff]  ;;  %v313_v24 = vld [vmem:[%s2790_s12 + $0x60] sm:$0xff] }
  0x3d   : > { %265 = vst [vmem:[#allocation2 + $0x149] sm:$0x1] %v2689_v0  ;;  %740 = vmatpush.msrb.mxu2 %v735_v25  ;;  %1126 = vmatpush.msrb.mxu0 %v1125_v28  ;;  %v403_v28 = vld [vmem:[#allocation3 + $0x28] sm:$0xff] }
  0x3e   : > { %266 = vst [vmem:[#allocation2 + $0x161] sm:$0x1] %v2689_v0  ;;  %934 = vmatpush.msrb.mxu3 %v929_v27  ;;  %578 = vmatpush.msrb.mxu1 %v411_v29  ;;  %v1117_v27 = vld [vmem:[#allocation3 + $0x238] sm:$0xff]  ;;  %v726_v29 = vld [vmem:[#allocation3 + $0x120] sm:$0xff] }
  0x3f   : > { %267 = vst [vmem:[#allocation2 + $0x179] sm:$0x1] %v2689_v0  ;;  %741 = vmatpush.msrb.mxu2 %v734_v30  ;;  %1127 = vmatpush.msrb.mxu0 %v1124_v32  ;;  %v321_v30 = vld [vmem:[%s2790_s12 + $0xa0] sm:$0xff] }
  0x40   : > { %268 = vst [vmem:[#allocation2 + $0x191] sm:$0x1] %v2689_v0  ;;  %935 = vmatpush.msrb.mxu3 %v928_v31  ;;  %579 = vmatpush.msrb.mxu1 %v410_v33  ;;  %v920_v31 = vld [vmem:[#allocation3 + $0x1a0] sm:$0xff]  ;;  %v1116_v32 = vld [vmem:[#allocation3 + $0x230] sm:$0xff]  ;;  %v304_v33 = vld [vmem:[%s2790_s12 + $0x18] sm:$0xff] }
  0x41   : > { %269 = vst [vmem:[#allocation2 + $0x19] sm:$0xff] %v2689_v0  ;;  %742 = vmatpush.msrb.mxu2 %v733_v34  ;;  %1128 = vmatpush.msrb.mxu0 %v1123_v37  ;;  %v329_v34 = vld [vmem:[%s2790_s12 + $0xe0] sm:$0xff] }
  0x42   : > { %270 = vst [vmem:[#allocation2 + $0x21] sm:$0xff] %v2689_v0  ;;  %936 = vmatpush.msrb.mxu3 %v927_v36  ;;  %580 = vmatpush.msrb.mxu1 %v409_v38 }
  0x43   : > { %271 = vst [vmem:[#allocation2 + $0x31] sm:$0xff] %v2689_v0  ;;  %482 = vmatmul.f32.gmra.mxu0 %v415_v35  ;;  %743 = vmatpush.msrb.mxu2 %v732_v39  ;;  %v314_v39 = vld [vmem:[%s2790_s12 + $0x68] sm:$0xff] }
  0x44   : > { %272 = vst [vmem:[#allocation2 + $0x39] sm:$0xff] %v2689_v0  ;;  %937 = vmatpush.msrb.mxu3 %v926_v40  ;;  %1129 = vmatpush.msrb.mxu0 %v1122_v41  ;;  %v322_v40 = vld [vmem:[%s2790_s12 + $0xa8] sm:$0xff]  ;;  %v402_v41 = vld [vmem:[#allocation3 + $0x20] sm:$0xff] }
  0x45   : > { %273 = vst [vmem:[#allocation2 + $0x49] sm:$0xff] %v2689_v0  ;;  %581 = vmatpush.msrb.mxu1 %v408_v48  ;;  %744 = vmatpush.msrb.mxu2 %v731_v49  ;;  %v1114_v48 = vld [vmem:[#allocation3 + $0x220] sm:$0xff]  ;;  %v305_v49 = vld [vmem:[%s2790_s12 + $0x20] sm:$0xff] }
  0x46   : > { %274 = vst [vmem:[#allocation2 + $0x51] sm:$0xff] %v2689_v0  ;;  %938 = vmatpush.msrb.mxu3 %v925_v50  ;;  %1130 = vmatpush.msrb.mxu0 %v1121_v51  ;;  %v330_v50 = vld [vmem:[%s2790_s12 + $0xe8] sm:$0xff] }
  0x47   : > { %276 = vst [vmem:[#allocation2 + $0x69] sm:$0xff] %v2689_v0  ;;  %582 = vmatpush.msrb.mxu1 %v407_v52  ;;  %745 = vmatpush.msrb.mxu2 %v730_v53 }
  0x48   : > { %277 = vst [vmem:[#allocation2 + $0x79] sm:$0xff] %v2689_v0  ;;  %939 = vmatpush.msrb.mxu3 %v924_v54  ;;  %1131 = vmatpush.msrb.mxu0 %v1120_v55  ;;  %v400_v55 = vld [vmem:[#allocation3 + $0x10] sm:$0xff] }
  0x49   : > { %278 = vst [vmem:[#allocation2 + $0x81] sm:$0xff] %v2689_v0  ;;  %583 = vmatpush.msrb.mxu1 %v406_v2  ;;  %746 = vmatpush.msrb.mxu2 %v729_v3  ;;  %v306_v2 = vld [vmem:[%s2790_s12 + $0x28] sm:$0xff] }
  0x4a   : > { %279 = vst [vmem:[#allocation2 + $0x91] sm:$0xff] %v2689_v0  ;;  %940 = vmatpush.msrb.mxu3 %v923_v5  ;;  %1132 = vmatpush.msrb.mxu0 %v1119_v6 }
  0x4b   : > { %280 = vst [vmem:[#allocation2 + $0x99] sm:$0xff] %v2689_v0  ;;  %584 = vmatpush.msrb.mxu1 %v405_v8  ;;  %747 = vmatpush.msrb.mxu2 %v728_v9  ;;  %v1514_v8 = vld [vmem:[#allocation3 + $0x378] sm:$0xff]  ;;  %v1111_v9 = vld [vmem:[#allocation3 + $0x208] sm:$0xff] }
  0x4c   : > { %281 = vst [vmem:[#allocation2 + $0xa9] sm:$0xff] %v2689_v0  ;;  %941 = vmatpush.msrb.mxu3 %v922_v11  ;;  %1133 = vmatpush.msrb.mxu0 %v1118_v12  ;;  %v1319_v11 = vld [vmem:[#allocation3 + $0x2f8] sm:$0xff]  ;;  %v1110_v12 = vld [vmem:[#allocation3 + $0x200] sm:$0xff] }
  0x4d   : > { %282 = vst [vmem:[#allocation2 + $0xb1] sm:$0xff] %v2689_v0  ;;  %585 = vmatpush.msrb.mxu1 %v404_v22  ;;  %748 = vmatpush.msrb.mxu2 %v727_v23 }
  0x4e   : > { %283 = vst [vmem:[#allocation2 + $0xc1] sm:$0xff] %v2689_v0  ;;  %942 = vmatpush.msrb.mxu3 %v921_v26  ;;  %1134 = vmatpush.msrb.mxu0 %v1117_v27  ;;  %v1513_v26 = vld [vmem:[#allocation3 + $0x370] sm:$0xff] }
  0x4f   : > { %284 = vst [vmem:[#allocation2 + $0xc9] sm:$0xff] %v2689_v0  ;;  %586 = vmatpush.msrb.mxu1 %v403_v28  ;;  %749 = vmatpush.msrb.mxu2 %v726_v29  ;;  %v1707_v27 = vld [vmem:[#allocation3 + $0x3f0] sm:$0xff] }
  0x50   : > { %285 = vst [vmem:[#allocation2 + $0xd9] sm:$0xff] %v2689_v0  ;;  %943 = vmatpush.msrb.mxu3 %v920_v31  ;;  %1135 = vmatpush.msrb.mxu0 %v1116_v32  ;;  %v1318_v28 = vld [vmem:[#allocation3 + $0x2f0] sm:$0xff] }
  0x51   : > { %286 = vst [vmem:[#allocation2 + $0xe1] sm:$0xff] %v2689_v0  ;;  %587 = vmatpush.msrb.mxu1 %v402_v41  ;;  %v1901_v31 = vld [vmem:[#allocation3 + $0x470] sm:$0xff] }
  0x52   : > { %287 = vst [vmem:[#allocation2 + $0xf1] sm:$0xff] %v2689_v0  ;;  %v689_v32 = vld [vmem:[#allocation2 + $0x2] sm:$0xff] }
  0x53   : > { %288 = vst [vmem:[#allocation2 + $0xf9] sm:$0xff] %v2689_v0 }
  0x54   : > { %289 = vst [vmem:[#allocation2 + $0x109] sm:$0xff] %v2689_v0 }
  0x55   : > { %290 = vst [vmem:[#allocation2 + $0x111] sm:$0xff] %v2689_v0 }
  0x56   : > { %291 = vst [vmem:[#allocation2 + $0x121] sm:$0xff] %v2689_v0 }
  0x57   : > { %292 = vst [vmem:[#allocation2 + $0x129] sm:$0xff] %v2689_v0 }
  0x58   : > { %293 = vst [vmem:[#allocation2 + $0x139] sm:$0xff] %v2689_v0 }
  0x59   : > { %294 = vst [vmem:[#allocation2 + $0x141] sm:$0xff] %v2689_v0 }
  0x5a   : > { %295 = vst [vmem:[#allocation2 + $0x151] sm:$0xff] %v2689_v0 }
  0x5b   : > { %296 = vst [vmem:[#allocation2 + $0x159] sm:$0xff] %v2689_v0 }
  0x5c   : > { %297 = vst [vmem:[#allocation2 + $0x169] sm:$0xff] %v2689_v0 }
  0x5d   : > { %298 = vst [vmem:[#allocation2 + $0x171] sm:$0xff] %v2689_v0 }
  0x5e   : > { %299 = vst [vmem:[#allocation2 + $0x181] sm:$0xff] %v2689_v0 }
  0x5f   : > { %300 = vst [vmem:[#allocation2 + $0x189] sm:$0xff] %v2689_v0 }
  0x60   : > { %348 = vst.msk [vmem:[#allocation2 + $0xc1] sm:$0xff] %vm333_vm0, %v315_v42  ;;  %v725_v42 = vld [vmem:[#allocation3 + $0x118] sm:$0xff] }
  0x61   : > { %356 = vst.msk [vmem:[#allocation2 + $0x121] sm:$0xff] %vm333_vm0, %v323_v43  ;;  %v919_v43 = vld [vmem:[#allocation3 + $0x198] sm:$0xff]  ;;  %750 = vmatpush.msrb.mxu2 %v725_v42 }
  0x62   : > { %341 = vst.msk [vmem:[#allocation2 + $0x69] sm:$0xff] %vm333_vm0, %v308_v44  ;;  %v1115_v44 = vld [vmem:[#allocation3 + $0x228] sm:$0xff]  ;;  %944 = vmatpush.msrb.mxu3 %v919_v43 }
  0x63   : > { %349 = vst.msk [vmem:[#allocation2 + $0xc9] sm:$0xff] %vm333_vm0, %v316_v45  ;;  %v401_v45 = vld [vmem:[#allocation3 + $0x18] sm:$0xff]  ;;  %1136 = vmatpush.msrb.mxu0 %v1115_v44  ;;  %v1511_v44 = vld [vmem:[#allocation3 + $0x360] sm:$0xff] }
  0x64   : > { %357 = vst.msk [vmem:[#allocation2 + $0x129] sm:$0xff] %vm333_vm0, %v324_v46  ;;  %v724_v46 = vld [vmem:[#allocation3 + $0x110] sm:$0xff]  ;;  %588 = vmatpush.msrb.mxu1 %v401_v45  ;;  %v1316_v45 = vld [vmem:[#allocation3 + $0x2e0] sm:$0xff] }
  0x65   : > { %342 = vst.msk [vmem:[#allocation2 + $0x79] sm:$0xff] %vm333_vm0, %v309_v47  ;;  %v918_v47 = vld [vmem:[#allocation3 + $0x190] sm:$0xff]  ;;  %751 = vmatpush.msrb.mxu2 %v724_v46  ;;  %1137 = vmatpush.msrb.mxu0 %v1114_v48 }
  0x66   : > { %350 = vst.msk [vmem:[#allocation2 + $0xd9] sm:$0xff] %vm333_vm0, %v317_v56  ;;  %945 = vmatpush.msrb.mxu3 %v918_v47  ;;  %v723_v56 = vld [vmem:[#allocation3 + $0x108] sm:$0xff]  ;;  %589 = vmatpush.msrb.mxu1 %v400_v55  ;;  %v1899_v47 = vld [vmem:[#allocation3 + $0x460] sm:$0xff] }
  0x67   : > { %v2877_v61 = vld [vmem:[#allocation2 + $0xc1] sm:$0xff]  ;;  %358 = vst.msk [vmem:[#allocation2 + $0x139] sm:$0xff] %vm333_vm0, %v325_v57  ;;  %v917_v57 = vld [vmem:[#allocation3 + $0x188] sm:$0xff]  ;;  %752 = vmatpush.msrb.mxu2 %v723_v56 }
  0x68   : > { %527 = vmatmul.f32.vlgmr.msra.gmra.mxu2 %v2877_v61  ;;  %v438_v1 = vld [vmem:[#allocation2 + $0x121] sm:$0xff]  ;;  %343 = vst.msk [vmem:[#allocation2 + $0x81] sm:$0xff] %vm333_vm0, %v310_v58  ;;  %946 = vmatpush.msrb.mxu3 %v917_v57 }
  0x69   : > { %551 = vmatmul.f32.vlgmr.msra.gmra.mxu3 %v438_v1  ;;  %v2884_v4 = vld [vmem:[#allocation2 + $0x69] sm:$0xff]  ;;  %351 = vst.msk [vmem:[#allocation2 + $0xe1] sm:$0xff] %vm333_vm0, %v318_v59  ;;  %v399_v59 = vld [vmem:[#allocation3 + $0x8] sm:$0xff] }
  0x6a   : > { %506 = vmatmul.f32.gmra.mxu1 %v2884_v4  ;;  %334 = vst.msk [vmem:[#allocation2 + $0x19] sm:$0xff] %vm333_vm0, %v301_v60  ;;  %v2894_v14 = vld [vmem:[#allocation2 + $0xc9] sm:$0xff] }
  0x6b   : > { %359 = vst.msk [vmem:[#allocation2 + $0x141] sm:$0xff] %vm333_vm0, %v326_v62  ;;  %v439_v16 = vld [vmem:[#allocation2 + $0x129] sm:$0xff]  ;;  %590 = vmatpush.msrb.mxu1 %v399_v59  ;;  %v889_v59 = vld [vmem:[#allocation2 + $0x60] sm:$0xff] }
  0x6c   : > { %344 = vst.msk [vmem:[#allocation2 + $0x91] sm:$0xff] %vm333_vm0, %v311_v63  ;;  %v2900_v19 = vld [vmem:[#allocation2 + $0x79] sm:$0xff]  ;;  %v1113_v58 = vld [vmem:[#allocation3 + $0x218] sm:$0xff]  ;;  %v722_v60 = vld [vmem:[#allocation3 + $0x100] sm:$0xff] }
  0x6d   : > { %352 = vst.msk [vmem:[#allocation2 + $0xf1] sm:$0xff] %vm333_vm0, %v319_v7  ;;  %v2919_v35 = vld [vmem:[#allocation2 + $0xd9] sm:$0xff]  ;;  %v916_v62 = vld [vmem:[#allocation3 + $0x180] sm:$0xff]  ;;  %1138 = vmatpush.msrb.mxu0 %v1113_v58  ;;  %753 = vmatpush.msrb.mxu2 %v722_v60  ;;  %v1898_v57 = vld [vmem:[#allocation3 + $0x458] sm:$0xff] }
  0x6e   : > { %335 = vst.msk [vmem:[#allocation2 + $0x21] sm:$0xff] %vm333_vm0, %v302_v10  ;;  %v440_v36 = vld [vmem:[#allocation2 + $0x139] sm:$0xff]  ;;  %v398_v1 = vld [vmem:[#allocation3] sm:$0xff]  ;;  %947 = vmatpush.msrb.mxu3 %v916_v62  ;;  %v1708_v10 = vld [vmem:[#allocation3 + $0x3f8] sm:$0xff] }
  0x6f   : > { %360 = vst.msk [vmem:[#allocation2 + $0x151] sm:$0xff] %vm333_vm0, %v327_v13  ;;  %v2922_v37 = vld [vmem:[#allocation2 + $0x81] sm:$0xff]  ;;  %591 = vmatpush.msrb.mxu1 %v398_v1  ;;  %1515 = vmatpush.msra.mxu2 %v1514_v8 }
  0x70   : > { %530 = vmatmul.f32.gmra.mxu2 %v2894_v14  ;;  %345 = vst.msk [vmem:[#allocation2 + $0x99] sm:$0xff] %vm333_vm0, %v312_v15  ;;  %v2937_v51 = vld [vmem:[#allocation2 + $0xe1] sm:$0xff]  ;;  %1709 = vmatpush.msra.mxu3 %v1708_v10 }
  0x71   : > { %554 = vmatmul.f32.gmra.mxu3 %v439_v16  ;;  %v2908_v25 = vld [vmem:[#allocation2 + $0x19] sm:$0xff]  ;;  %353 = vst.msk [vmem:[#allocation2 + $0xf9] sm:$0xff] %vm333_vm0, %v320_v17  ;;  %1320 = vmatpush.msra.mxu1 %v1319_v11  ;;  %v697_v8 = vld [vmem:[#allocation2 + $0x62] sm:$0xff] }
  0x72   : > { %509 = vmatmul.f32.gmra.mxu1 %v2900_v19  ;;  %485 = vmatmul.f32.gmra.mxu0 %v2908_v25  ;;  %336 = vst.msk [vmem:[#allocation2 + $0x31] sm:$0xff] %vm333_vm0, %v303_v20  ;;  %v441_v52 = vld [vmem:[#allocation2 + $0x141] sm:$0xff]  ;;  %v1508_v11 = vld [vmem:[#allocation3 + $0x348] sm:$0xff] }
  0x73   : > { %361 = vst.msk [vmem:[#allocation2 + $0x159] sm:$0xff] %vm333_vm0, %v328_v21  ;;  %v2941_v53 = vld [vmem:[#allocation2 + $0x91] sm:$0xff]  ;;  %v1112_v63 = vld [vmem:[#allocation3 + $0x210] sm:$0xff]  ;;  %v1902_v20 = vld [vmem:[#allocation3 + $0x478] sm:$0xff]  ;;  %1516 = vmatpush.msra.mxu2 %v1513_v26  ;;  %1710 = vmatpush.msra.mxu3 %v1707_v27 }
  0x74   : > { %346 = vst.msk [vmem:[#allocation2 + $0xa9] sm:$0xff] %vm333_vm0, %v313_v24  ;;  %v2950_v3 = vld [vmem:[#allocation2 + $0xf1] sm:$0xff]  ;;  %1139 = vmatpush.msrb.mxu0 %v1112_v63  ;;  %1321 = vmatpush.msra.mxu1 %v1318_v28  ;;  %v1509_v60 = vld [vmem:[#allocation3 + $0x350] sm:$0xff] }
  0x75   : > { %354 = vst.msk [vmem:[#allocation2 + $0x109] sm:$0xff] %vm333_vm0, %v321_v30  ;;  %v2925_v38 = vld [vmem:[#allocation2 + $0x21] sm:$0xff]  ;;  %v1896_v27 = vld [vmem:[#allocation3 + $0x448] sm:$0xff] }
  0x76   : > { %337 = vst.msk [vmem:[#allocation2 + $0x39] sm:$0xff] %vm333_vm0, %v304_v33  ;;  %v442_v5 = vld [vmem:[#allocation2 + $0x151] sm:$0xff]  ;;  %1140 = vmatpush.msrb.mxu0 %v1111_v9  ;;  %v884_v41 = vld [vmem:[#allocation2 + $0x20] sm:$0xff] }
  0x77   : > { %362 = vst.msk [vmem:[#allocation2 + $0x169] sm:$0xff] %vm333_vm0, %v329_v34  ;;  %v2952_v6 = vld [vmem:[#allocation2 + $0x99] sm:$0xff] }
  0x78   : > { %533 = vmatmul.f32.gmra.mxu2 %v2919_v35  ;;  %347 = vst.msk [vmem:[#allocation2 + $0xb1] sm:$0xff] %vm333_vm0, %v314_v39  ;;  %v2959_v13 = vld [vmem:[#allocation2 + $0xf9] sm:$0xff]  ;;  %1141 = vmatpush.msrb.mxu0 %v1110_v12 }
  0x79   : > { %557 = vmatmul.f32.gmra.mxu3 %v440_v36  ;;  %355 = vst.msk [vmem:[#allocation2 + $0x111] sm:$0xff] %vm333_vm0, %v322_v40  ;;  %v2943_v54 = vld [vmem:[#allocation2 + $0x31] sm:$0xff]  ;;  %v691_v42 = vld [vmem:[#allocation2 + $0x1a] sm:$0xff] }
  0x7a   : > { %512 = vmatmul.f32.gmra.mxu1 %v2922_v37  ;;  %488 = vmatmul.f32.gmra.mxu0 %v2925_v38  ;;  %338 = vst.msk [vmem:[#allocation2 + $0x49] sm:$0xff] %vm333_vm0, %v305_v49  ;;  %v443_v15 = vld [vmem:[#allocation2 + $0x159] sm:$0xff]  ;;  %v690_v40 = vld [vmem:[#allocation2 + $0xa] sm:$0xff] }
  0x7b   : > { %363 = vst.msk [vmem:[#allocation2 + $0x171] sm:$0xff] %vm333_vm0, %v330_v50  ;;  %v2961_v16 = vld [vmem:[#allocation2 + $0xa9] sm:$0xff]  ;;  %1903 = vmatpush.msra.mxu0 %v1902_v20  ;;  %v883_v33 = vld [vmem:[#allocation2 + $0x18] sm:$0xff]  ;;  %v1703_v62 = vld [vmem:[#allocation3 + $0x3d0] sm:$0xff] }
  0x7c   : > { %339 = vst.msk [vmem:[#allocation2 + $0x51] sm:$0xff] %vm333_vm0, %v306_v2  ;;  %v2968_v21 = vld [vmem:[#allocation2 + $0x109] sm:$0xff]  ;;  %v1512_v34 = vld [vmem:[#allocation3 + $0x368] sm:$0xff]  ;;  %v1314_v1 = vld [vmem:[#allocation3 + $0x2d0] sm:$0xff] }
  0x7d   : > { %v2954_v7 = vld [vmem:[#allocation2 + $0x39] sm:$0xff]  ;;  %1904 = vmatpush.msra.mxu0 %v1901_v31  ;;  %1517 = vmatpush.msra.mxu2 %v1512_v34  ;;  %v885_v43 = vld [vmem:[#allocation2 + $0x30] sm:$0xff]  ;;  %v1510_v50 = vld [vmem:[#allocation3 + $0x358] sm:$0xff] }
  0x7e   : > { %v444_v22 = vld [vmem:[#allocation2 + $0x169] sm:$0xff]  ;;  %v1706_v36 = vld [vmem:[#allocation3 + $0x3e8] sm:$0xff] }
  0x7f   : > { %v2970_v23 = vld [vmem:[#allocation2 + $0xb1] sm:$0xff]  ;;  %1711 = vmatpush.msra.mxu3 %v1706_v36  ;;  %1518 = vmatpush.msra.mxu2 %v1511_v44  ;;  %v694_v55 = vld [vmem:[#allocation2 + $0x3a] sm:$0xff] }
  0x80   : > { %536 = vmatmul.f32.gmra.mxu2 %v2937_v51  ;;  %v2977_v29 = vld [vmem:[#allocation2 + $0x111] sm:$0xff] }
  0x81   : > { %560 = vmatmul.f32.gmra.mxu3 %v441_v52  ;;  %v2963_v17 = vld [vmem:[#allocation2 + $0x49] sm:$0xff]  ;;  %v1317_v39 = vld [vmem:[#allocation3 + $0x2e8] sm:$0xff]  ;;  %1519 = vmatpush.msra.mxu2 %v1510_v50 }
  0x82   : > { %515 = vmatmul.f32.gmra.mxu1 %v2941_v53  ;;  %491 = vmatmul.f32.gmra.mxu0 %v2943_v54  ;;  %v445_v30 = vld [vmem:[#allocation2 + $0x171] sm:$0xff]  ;;  %v887_v49 = vld [vmem:[#allocation2 + $0x48] sm:$0xff] }
  0x83   : > { %v2972_v24 = vld [vmem:[#allocation2 + $0x51] sm:$0xff]  ;;  %1322 = vmatpush.msra.mxu1 %v1317_v39  ;;  %v1704_v52 = vld [vmem:[#allocation3 + $0x3d8] sm:$0xff]  ;;  %1520 = vmatpush.msra.mxu2 %v1509_v60 }
  0x84   : > { %v886_v46 = vld [vmem:[#allocation2 + $0x38] sm:$0xff]  ;;  %v888_v56 = vld [vmem:[#allocation2 + $0x50] sm:$0xff] }
  0x85   : > { %1323 = vmatpush.msra.mxu1 %v1316_v45  ;;  %v693_v48 = vld [vmem:[#allocation2 + $0x32] sm:$0xff]  ;;  %v695_v58 = vld [vmem:[#allocation2 + $0x4a] sm:$0xff]  ;;  %1521 = vmatpush.msra.mxu2 %v1508_v11 }
  0x86   : > { %v696_v2 = vld [vmem:[#allocation2 + $0x52] sm:$0xff]  ;;  %v698_v20 = vld [vmem:[#allocation2 + $0x6a] sm:$0xff] }
  0x87   : > { %v1702_v12 = vld [vmem:[#allocation3 + $0x3c8] sm:$0xff]  ;;  %v893_v31 = vld [vmem:[#allocation2 + $0x90] sm:$0xff] }
  0x88   : > { %539 = vmatmul.f32.gmra.mxu2 %v2950_v3  ;;  %v1507_v34 = vld [vmem:[#allocation3 + $0x340] sm:$0xff] }
  0x89   : > { %563 = vmatmul.f32.gmra.mxu3 %v442_v5  ;;  %1522 = vmatpush.msra.mxu2 %v1507_v34  ;;  %v1701_v36 = vld [vmem:[#allocation3 + $0x3c0] sm:$0xff] }
  0x8a   : > { %518 = vmatmul.f32.gmra.mxu1 %v2952_v6  ;;  %494 = vmatmul.f32.gmra.mxu0 %v2954_v7  ;;  %v1312_v39 = vld [vmem:[#allocation3 + $0x2c0] sm:$0xff] }
  0x8b   : > { %v1895_v44 = vld [vmem:[#allocation3 + $0x440] sm:$0xff] }
  0x8c   : > { %v701_v45 = vld [vmem:[#allocation2 + $0x92] sm:$0xff]  ;;  %v703_v60 = vld [vmem:[#allocation2 + $0xaa] sm:$0xff] }
  0x8d   : > { %v704_v11 = vld [vmem:[#allocation2 + $0xb2] sm:$0xff] }
  0x90   : > { %542 = vmatmul.f32.gmra.mxu2 %v2959_v13 }
  0x91   : > { %566 = vmatmul.f32.gmra.mxu3 %v443_v15 }
  0x92   : > { %521 = vmatmul.f32.gmra.mxu1 %v2961_v16  ;;  %497 = vmatmul.f32.gmra.mxu0 %v2963_v17 }
  0x98   : > { %545 = vmatmul.f32.gmra.mxu2 %v2968_v21 }
  0x99   : > { %569 = vmatmul.f32.gmra.mxu3 %v444_v22  ;;  %v892_v22 = vld [vmem:[#allocation2 + $0x80] sm:$0xff] }
  0x9a   : > { %524 = vmatmul.f32.gmra.mxu1 %v2970_v23  ;;  %500 = vmatmul.f32.gmra.mxu0 %v2972_v24 }
  0xa0   : > { %548 = vmatmul.f32.gmra.mxu2 %v2977_v29 }
  0xa1   : > { %572 = vmatmul.f32.gmra.mxu3 %v445_v30  ;;  %v699_v30 = vld [vmem:[#allocation2 + $0x7a] sm:$0xff] }
  0xa2   : > { %592 = vmatmul.f32.vlgmr.msrb.gmra.mxu1 %v2689_v0  ;;  %1142 = vmatmul.f32.vlgmr.msrb.gmra.mxu0 %v2908_v25  ;;  %v1900_v25 = vld [vmem:[#allocation3 + $0x468] sm:$0xff] }
  0xa3   : > { %1905 = vmatpush.msra.mxu0 %v1900_v25  ;;  %v894_v25 = vld [vmem:[#allocation2 + $0x98] sm:$0xff] }
  0xa5   : > { %1906 = vmatpush.msra.mxu0 %v1899_v47 }
  0xa7   : > { %1907 = vmatpush.msra.mxu0 %v1898_v57 }
  0xa8   : > { %754 = vmatmul.f32.vlgmr.msrb.gmra.mxu2 %v689_v32 }
  0xa9   : > { %948 = vmatmul.f32.vlgmr.msrb.gmra.mxu3 %v883_v33 }
  0xaa   : > { %595 = vmatmul.f32.gmra.mxu1 %v2689_v0  ;;  %1145 = vmatmul.f32.gmra.mxu0 %v2925_v38  ;;  %v1705_v0 = vld [vmem:[#allocation3 + $0x3e0] sm:$0xff]  ;;  %v692_v38 = vld [vmem:[#allocation2 + $0x22] sm:$0xff] }
  0xab   : > { %1712 = vmatpush.msra.mxu3 %v1705_v0 }
  0xad   : > { %1713 = vmatpush.msra.mxu3 %v1704_v52  ;;  %v1311_v52 = vld [vmem:[#allocation3 + $0x2b8] sm:$0xff] }
  0xaf   : > { %1714 = vmatpush.msra.mxu3 %v1703_v62  ;;  %v897_v62 = vld [vmem:[#allocation2 + $0xc0] sm:$0xff] }
  0xb0   : > { %757 = vmatmul.f32.gmra.mxu2 %v690_v40 }
  0xb1   : > { %951 = vmatmul.f32.gmra.mxu3 %v884_v41 }
  0xb2   : > { %598 = vmatmul.f32.gmra.mxu1 %v883_v33  ;;  %1148 = vmatmul.f32.gmra.mxu0 %v2943_v54  ;;  %v1315_v54 = vld [vmem:[#allocation3 + $0x2d8] sm:$0xff] }
  0xb3   : > { %1324 = vmatpush.msra.mxu1 %v1315_v54  ;;  %1715 = vmatpush.msra.mxu3 %v1702_v12  ;;  %v702_v54 = vld [vmem:[#allocation2 + $0x9a] sm:$0xff]  ;;  %v898_v12 = vld [vmem:[#allocation2 + $0xc8] sm:$0xff] }
  0xb5   : > { %1325 = vmatpush.msra.mxu1 %v1314_v1  ;;  %v2992_v5 = vpop.f32.mrf.mxu1  ;;  %1716 = vmatpush.msra.mxu3 %v1701_v36 }
  0xb8   : > { %760 = vmatmul.f32.gmra.mxu2 %v691_v42  ;;  %v2990_v63 = vpop.f32.mrf.mxu0 }
  0xb9   : > { %954 = vmatmul.f32.gmra.mxu3 %v885_v43 }
  0xba   : > { %601 = vmatmul.f32.gmra.mxu1 %v884_v41  ;;  %1151 = vmatmul.f32.gmra.mxu0 %v2954_v7  ;;  %v1897_v7 = vld [vmem:[#allocation3 + $0x450] sm:$0xff] }
  0xbb   : > { %1908 = vmatpush.msra.mxu0 %v1897_v7  ;;  %v700_v41 = vld [vmem:[#allocation2 + $0x82] sm:$0xff] }
  0xbc   : > { %v1699_v7 = vld [vmem:[#allocation3 + $0x3b0] sm:$0xff] }
  0xbd   : > { %1909 = vmatpush.msra.mxu0 %v1896_v27 }
  0xbf   : > { %1910 = vmatpush.msra.mxu0 %v1895_v44 }
  0xc0   : > { %763 = vmatmul.f32.gmra.mxu2 %v692_v38  ;;  %v2995_v9 = vpop.f32.mrf.mxu0  ;;  %v895_v38 = vld [vmem:[#allocation2 + $0xa8] sm:$0xff] }
  0xc1   : > { %957 = vmatmul.f32.gmra.mxu3 %v886_v46 }
  0xc2   : > { %604 = vmatmul.f32.gmra.mxu1 %v885_v43  ;;  %1154 = vmatmul.f32.gmra.mxu0 %v2963_v17  ;;  %v1313_v17 = vld [vmem:[#allocation3 + $0x2c8] sm:$0xff] }
  0xc3   : > { %1326 = vmatpush.msra.mxu1 %v1313_v17 }
  0xc5   : > { %1327 = vmatpush.msra.mxu1 %v1312_v39  ;;  %v1504_v39 = vld [vmem:[#allocation3 + $0x328] sm:$0xff] }
  0xc7   : > { %1328 = vmatpush.msra.mxu1 %v1311_v52  ;;  %v900_v52 = vld [vmem:[#allocation2 + $0xe0] sm:$0xff] }
  0xc8   : > { %766 = vmatmul.f32.gmra.mxu2 %v693_v48  ;;  %v1506_v48 = vld [vmem:[#allocation3 + $0x338] sm:$0xff] }
  0xc9   : > { %960 = vmatmul.f32.gmra.mxu3 %v887_v49  ;;  %1523 = vmatpush.msra.mxu2 %v1506_v48  ;;  %v706_v48 = vld [vmem:[#allocation2 + $0xca] sm:$0xff] }
  0xca   : > { %607 = vmatmul.f32.gmra.mxu1 %v886_v46  ;;  %1157 = vmatmul.f32.gmra.mxu0 %v2972_v24 }
  0xd0   : > { %769 = vmatmul.f32.gmra.mxu2 %v694_v55  ;;  %v896_v55 = vld [vmem:[#allocation2 + $0xb0] sm:$0xff] }
  0xd1   : > { %963 = vmatmul.f32.gmra.mxu3 %v888_v56 }
  0xd2   : > { %610 = vmatmul.f32.gmra.mxu1 %v887_v49  ;;  %1160 = vmatmul.f32.gmra.mxu0 %v2820_v18  ;;  %v890_v18 = vld [vmem:[#allocation2 + $0x68] sm:$0xff] }
  0xd3   : > { %v1700_v49 = vld [vmem:[#allocation3 + $0x3b8] sm:$0xff] }
  0xd4   : > { %1717 = vmatpush.msra.mxu3 %v1700_v49 }
  0xd6   : > { %1718 = vmatpush.msra.mxu3 %v1699_v7  ;;  %v707_v7 = vld [vmem:[#allocation2 + $0xda] sm:$0xff] }
  0xd8   : > { %772 = vmatmul.f32.gmra.mxu2 %v695_v58  ;;  %v1894_v58 = vld [vmem:[#allocation3 + $0x438] sm:$0xff] }
  0xd9   : > { %966 = vmatmul.f32.gmra.mxu3 %v889_v59  ;;  %1911 = vmatpush.msra.mxu0 %v1894_v58 }
  0xda   : > { %613 = vmatmul.f32.gmra.mxu1 %v888_v56  ;;  %1163 = vmatmul.f32.gmra.mxu0 %v2884_v4  ;;  %v891_v4 = vld [vmem:[#allocation2 + $0x78] sm:$0xff] }
  0xe0   : > { %775 = vmatmul.f32.gmra.mxu2 %v696_v2 }
  0xe1   : > { %969 = vmatmul.f32.gmra.mxu3 %v890_v18 }
  0xe2   : > { %616 = vmatmul.f32.gmra.mxu1 %v889_v59  ;;  %1166 = vmatmul.f32.gmra.mxu0 %v2900_v19 }
  0xe7   : > { %v2997_v10 = vpop.f32.mrf.mxu1 }
  0xe8   : > { %778 = vmatmul.f32.gmra.mxu2 %v697_v8 }
  0xe9   : > { %972 = vmatmul.f32.gmra.mxu3 %v891_v4 }
  0xea   : > { %619 = vmatmul.f32.gmra.mxu1 %v890_v18  ;;  %1169 = vmatmul.f32.gmra.mxu0 %v2922_v37  ;;  %v1505_v18 = vld [vmem:[#allocation3 + $0x330] sm:$0xff] }
  0xeb   : > { %v3000_v15 = vpop.f32.mrf.mxu2  ;;  %1524 = vmatpush.msra.mxu2 %v1505_v18 }
  0xec   : > { %v3002_v19 = vpop.f32.mrf.mxu3 }
  0xed   : > { %1525 = vmatpush.msra.mxu2 %v1504_v39  ;;  %v1308_v39 = vld [vmem:[#allocation3 + $0x2a0] sm:$0xff] }
  0xef   : > { %v3004_v24 = vpop.f32.mrf.mxu1  ;;  %v3006_v26 = vpop.f32.mrf.mxu0 }
  0xf0   : > { %781 = vmatmul.f32.gmra.mxu2 %v698_v20 }
  0xf1   : > { %975 = vmatmul.f32.gmra.mxu3 %v892_v22 }
  0xf2   : > { %622 = vmatmul.f32.gmra.mxu1 %v891_v4  ;;  %1172 = vmatmul.f32.gmra.mxu0 %v2941_v53  ;;  %v1310_v4 = vld [vmem:[#allocation3 + $0x2b0] sm:$0xff] }
  0xf3   : > { %v3009_v37 = vpop.f32.mrf.mxu2  ;;  %1329 = vmatpush.msra.mxu1 %v1310_v4 }
  0xf4   : > { %v3011_v28 = vpop.f32.mrf.mxu3 }
  0xf7   : > { %v3013_v32 = vpop.f32.mrf.mxu1  ;;  %v3015_v33 = vpop.f32.mrf.mxu0 }
  0xf8   : > { %784 = vmatmul.f32.gmra.mxu2 %v699_v30  ;;  %v705_v30 = vld [vmem:[#allocation2 + $0xc2] sm:$0xff] }
  0xf9   : > { %978 = vmatmul.f32.gmra.mxu3 %v893_v31 }
  0xfa   : > { %625 = vmatmul.f32.gmra.mxu1 %v892_v22  ;;  %1175 = vmatmul.f32.gmra.mxu0 %v2952_v6  ;;  %v1893_v22 = vld [vmem:[#allocation3 + $0x430] sm:$0xff] }
  0xfb   : > { %v3018_v53 = vpop.f32.mrf.mxu2  ;;  %1912 = vmatpush.msra.mxu0 %v1893_v22 }
  0xfc   : > { %v3020_v40 = vpop.f32.mrf.mxu3 }
  0xff   : > { %v3022_v42 = vpop.f32.mrf.mxu1  ;;  %v3024_v43 = vpop.f32.mrf.mxu0 }
 0x100   : > { %787 = vmatmul.f32.gmra.mxu2 %v700_v41  ;;  %v1698_v41 = vld [vmem:[#allocation3 + $0x3a8] sm:$0xff] }
 0x101   : > { %981 = vmatmul.f32.gmra.mxu3 %v894_v25 }
 0x102   : > { %628 = vmatmul.f32.gmra.mxu1 %v893_v31  ;;  %1178 = vmatmul.f32.gmra.mxu0 %v2961_v16  ;;  %v899_v31 = vld [vmem:[#allocation2 + $0xd8] sm:$0xff] }
 0x103   : > { %v3027_v6 = vpop.f32.mrf.mxu2  ;;  %1719 = vmatpush.msra.mxu3 %v1698_v41  ;;  %v708_v41 = vld [vmem:[#allocation2 + $0xe2] sm:$0xff] }
 0x104   : > { %v3029_v0 = vpop.f32.mrf.mxu3 }
 0x107   : > { %v3031_v46 = vpop.f32.mrf.mxu1  ;;  %v3033_v47 = vpop.f32.mrf.mxu0 }
 0x108   : > { %790 = vmatmul.f32.gmra.mxu2 %v701_v45 }
 0x109   : > { %984 = vmatmul.f32.gmra.mxu3 %v895_v38 }
 0x10a   : > { %631 = vmatmul.f32.gmra.mxu1 %v894_v25  ;;  %1181 = vmatmul.f32.gmra.mxu0 %v2970_v23 }
 0x10b   : > { %v3036_v16 = vpop.f32.mrf.mxu2 }
 0x10c   : > { %v3038_v50 = vpop.f32.mrf.mxu3 }
 0x10f   : > { %v3040_v56 = vpop.f32.mrf.mxu1  ;;  %v3042_v57 = vpop.f32.mrf.mxu0 }
 0x110   : > { %793 = vmatmul.f32.gmra.mxu2 %v702_v54 }
 0x111   : > { %987 = vmatmul.f32.gmra.mxu3 %v896_v55 }
 0x112   : > { %634 = vmatmul.f32.gmra.mxu1 %v895_v38  ;;  %1184 = vmatmul.f32.gmra.mxu0 %v2877_v61  ;;  %v1309_v38 = vld [vmem:[#allocation3 + $0x2a8] sm:$0xff] }
 0x113   : > { %v3045_v23 = vpop.f32.mrf.mxu2  ;;  %1330 = vmatpush.msra.mxu1 %v1309_v38  ;;  %v1891_v38 = vld [vmem:[#allocation3 + $0x420] sm:$0xff] }
 0x114   : > { %v3047_v59 = vpop.f32.mrf.mxu3 }
 0x115   : > { %1331 = vmatpush.msra.mxu1 %v1308_v39 }
 0x117   : > { %v3049_v1 = vpop.f32.mrf.mxu1  ;;  %v3051_v2 = vpop.f32.mrf.mxu0 }
 0x118   : > { %796 = vmatmul.f32.gmra.mxu2 %v703_v60  ;;  %v1892_v60 = vld [vmem:[#allocation3 + $0x428] sm:$0xff] }
 0x119   : > { %990 = vmatmul.f32.gmra.mxu3 %v897_v62  ;;  %1913 = vmatpush.msra.mxu0 %v1892_v60  ;;  %v903_v60 = vld [vmem:[#allocation2 + $0x108] sm:$0xff] }
 0x11a   : > { %637 = vmatmul.f32.gmra.mxu1 %v896_v55  ;;  %1187 = vmatmul.f32.gmra.mxu0 %v2894_v14 }
 0x11b   : > { %v3054_v61 = vpop.f32.mrf.mxu2  ;;  %1914 = vmatpush.msra.mxu0 %v1891_v38 }
 0x11c   : > { %v3056_v8 = vpop.f32.mrf.mxu3 }
 0x11f   : > { %v593_v17 = vpop.f32.mrf.mxu1  ;;  %v1143_v20 = vpop.f32.mrf.mxu0 }
 0x120   : > { %799 = vmatmul.f32.gmra.mxu2 %v704_v11  ;;  %v594_v25 = vadd.f32 %v593_v17, %v2990_v63  ;;  %v901_v11 = vld [vmem:[#allocation2 + $0xf0] sm:$0xff] }
 0x121   : > { %993 = vmatmul.f32.gmra.mxu3 %v898_v12 }
 0x122   : > { %640 = vmatmul.f32.gmra.mxu1 %v897_v62  ;;  %1190 = vmatmul.f32.gmra.mxu0 %v2919_v35 }
 0x123   : > { %v3059_v27 = vpop.f32.mrf.mxu2 }
 0x124   : > { %v3061_v14 = vpop.f32.mrf.mxu3 }
 0x127   : > { %v596_v34 = vpop.f32.mrf.mxu1  ;;  %v1146_v36 = vpop.f32.mrf.mxu0 }
 0x128   : > { %802 = vmatmul.f32.gmra.mxu2 %v705_v30  ;;  %v597_v63 = vadd.f32 %v596_v34, %v2995_v9  ;;  %v1697_v30 = vld [vmem:[#allocation3 + $0x3a0] sm:$0xff] }
 0x129   : > { %996 = vmatmul.f32.gmra.mxu3 %v899_v31 }
 0x12a   : > { %643 = vmatmul.f32.gmra.mxu1 %v898_v12  ;;  %1193 = vmatmul.f32.gmra.mxu0 %v2937_v51 }
 0x12b   : > { %v755_v35 = vpop.f32.mrf.mxu2  ;;  %1720 = vmatpush.msra.mxu3 %v1697_v30 }
 0x12c   : > { %v851_v44 = vadd.f32 %v755_v35, %v594_v25  ;;  %v949_v45 = vpop.f32.mrf.mxu3 }
 0x12e   : > { %v1045_v49 = vadd.f32 %v949_v45, %v851_v44 }
 0x12f   : > { %v599_v54 = vpop.f32.mrf.mxu1  ;;  %v1149_v55 = vpop.f32.mrf.mxu0 }
 0x130   : > { %v3065_v58 = vadd.f32 %v1143_v20, %v1045_v49  ;;  %805 = vmatmul.f32.gmra.mxu2 %v706_v48  ;;  %v1503_v20 = vld [vmem:[#allocation3 + $0x320] sm:$0xff]  ;;  %v600_v9 = vadd.f32 %v599_v54, %v3006_v26 }
 0x131   : > { %999 = vmatmul.f32.gmra.mxu3 %v900_v52  ;;  %1526 = vmatpush.msra.mxu2 %v1503_v20 }
 0x132   : > { %646 = vmatmul.f32.gmra.mxu1 %v899_v31  ;;  %1196 = vmatmul.f32.gmra.mxu0 %v2950_v3 }
 0x133   : > { %v758_v51 = vpop.f32.mrf.mxu2 }
 0x134   : > { %v852_v62 = vadd.f32 %v758_v51, %v597_v63  ;;  %v952_v18 = vpop.f32.mrf.mxu3 }
 0x136   : > { %v1046_v4 = vadd.f32 %v952_v18, %v852_v62  ;;  %v1696_v18 = vld [vmem:[#allocation3 + $0x398] sm:$0xff] }
 0x137   : > { %v602_v12 = vpop.f32.mrf.mxu1  ;;  %v1152_v17 = vpop.f32.mrf.mxu0  ;;  %1721 = vmatpush.msra.mxu3 %v1696_v18 }
 0x138   : > { %v3069_v22 = vadd.f32 %v1146_v36, %v1046_v4  ;;  %808 = vmatmul.f32.gmra.mxu2 %v707_v7  ;;  %v902_v36 = vld [vmem:[#allocation2 + $0xf8] sm:$0xff]  ;;  %v603_v26 = vadd.f32 %v602_v12, %v3015_v33 }
 0x139   : > { %1002 = vmatmul.f32.gmra.mxu3 %v901_v11  ;;  %v710_v12 = vld [vmem:[#allocation2 + $0xfa] sm:$0xff] }
 0x13a   : > { %649 = vmatmul.f32.gmra.mxu1 %v900_v52  ;;  %1199 = vmatmul.f32.gmra.mxu0 %v2959_v13  ;;  %v709_v52 = vld [vmem:[#allocation2 + $0xf2] sm:$0xff] }
 0x13b   : > { %v761_v3 = vpop.f32.mrf.mxu2 }
 0x13c   : > { %v853_v31 = vadd.f32 %v761_v3, %v600_v9  ;;  %v955_v34 = vpop.f32.mrf.mxu3  ;;  %v3081_v3 = vld [vmem:[#allocation2 + $0x121] sm:$0xff] }
 0x13e   : > { %v1047_v25 = vadd.f32 %v955_v34, %v853_v31 }
 0x13f   : > { %v605_v35 = vpop.f32.mrf.mxu1  ;;  %v1155_v44 = vpop.f32.mrf.mxu0 }
 0x140   : > { %v3073_v45 = vadd.f32 %v1149_v55, %v1047_v25  ;;  %811 = vmatmul.f32.gmra.mxu2 %v708_v41  ;;  %v1502_v55 = vld [vmem:[#allocation3 + $0x318] sm:$0xff]  ;;  %v606_v33 = vadd.f32 %v605_v35, %v3024_v43  ;;  %v905_v35 = vld [vmem:[#allocation2 + $0x120] sm:$0xff] }
 0x141   : > { %1005 = vmatmul.f32.gmra.mxu3 %v902_v36  ;;  %1527 = vmatpush.msra.mxu2 %v1502_v55  ;;  %v1890_v43 = vld [vmem:[#allocation3 + $0x418] sm:$0xff]  ;;  %v712_v55 = vld [vmem:[#allocation2 + $0x112] sm:$0xff] }
 0x142   : > { %652 = vmatmul.f32.gmra.mxu1 %v901_v11  ;;  %1202 = vmatmul.f32.gmra.mxu0 %v2968_v21  ;;  %v1307_v11 = vld [vmem:[#allocation3 + $0x298] sm:$0xff] }
 0x143   : > { %v764_v13 = vpop.f32.mrf.mxu2  ;;  %1332 = vmatpush.msra.mxu1 %v1307_v11  ;;  %1915 = vmatpush.msra.mxu0 %v1890_v43  ;;  %v711_v25 = vld [vmem:[#allocation2 + $0x10a] sm:$0xff] }
 0x144   : > { %v854_v48 = vadd.f32 %v764_v13, %v603_v26  ;;  %v958_v49 = vpop.f32.mrf.mxu3  ;;  %v3087_v13 = vld [vmem:[#allocation2 + $0x129] sm:$0xff] }
 0x146   : > { %v1048_v54 = vadd.f32 %v958_v49, %v854_v48  ;;  %v1501_v48 = vld [vmem:[#allocation3 + $0x310] sm:$0xff] }
 0x147   : > { %v608_v63 = vpop.f32.mrf.mxu1  ;;  %v1158_v51 = vpop.f32.mrf.mxu0  ;;  %1528 = vmatpush.msra.mxu2 %v1501_v48 }
 0x148   : > { %v3077_v62 = vadd.f32 %v1152_v17, %v1048_v54  ;;  %814 = vmatmul.f32.gmra.mxu2 %v709_v52  ;;  %v904_v17 = vld [vmem:[#allocation2 + $0x110] sm:$0xff] }
 0x149   : > { %1008 = vmatmul.f32.gmra.mxu3 %v903_v60 }
 0x14a   : > { %655 = vmatmul.f32.gmra.mxu1 %v902_v36  ;;  %1205 = vmatmul.f32.gmra.mxu0 %v2977_v29  ;;  %v609_v29 = vadd.f32 %v608_v63, %v3033_v47  ;;  %v1695_v47 = vld [vmem:[#allocation3 + $0x390] sm:$0xff] }
 0x14b   : > { %v767_v21 = vpop.f32.mrf.mxu2  ;;  %1722 = vmatpush.msra.mxu3 %v1695_v47  ;;  %v1306_v63 = vld [vmem:[#allocation3 + $0x290] sm:$0xff]  ;;  %v1305_v47 = vld [vmem:[#allocation3 + $0x288] sm:$0xff] }
 0x14c   : > { %v855_v7 = vadd.f32 %v767_v21, %v606_v33  ;;  %v961_v4 = vpop.f32.mrf.mxu3  ;;  %1333 = vmatpush.msra.mxu1 %v1306_v63  ;;  %v3107_v63 = vld [vmem:[#allocation2 + $0x151] sm:$0xff] }
 0x14e   : > { %v1049_v20 = vadd.f32 %v961_v4, %v855_v7  ;;  %v3093_v7 = vld [vmem:[#allocation2 + $0x139] sm:$0xff]  ;;  %1334 = vmatpush.msra.mxu1 %v1305_v47 }
 0x14f   : > { %v611_v30 = vpop.f32.mrf.mxu1  ;;  %v1161_v9 = vpop.f32.mrf.mxu0 }
 0x150   : > { %v3083_v31 = vadd.f32 %v1155_v44, %v1049_v20  ;;  %817 = vmatmul.f32.gmra.mxu2 %v710_v12  ;;  %v612_v49 = vadd.f32 %v611_v30, %v3042_v57  ;;  %v1889_v57 = vld [vmem:[#allocation3 + $0x410] sm:$0xff] }
 0x151   : > { %1011 = vmatmul.f32.gmra.mxu3 %v904_v17  ;;  %1916 = vmatpush.msra.mxu0 %v1889_v57  ;;  %v713_v30 = vld [vmem:[#allocation2 + $0x122] sm:$0xff] }
 0x152   : > { %658 = vmatmul.f32.gmra.mxu1 %v903_v60  ;;  %1208 = vmatmul.f32.gmra.mxu0 %v3081_v3 }
 0x153   : > { %v770_v34 = vpop.f32.mrf.mxu2 }
 0x154   : > { %v856_v39 = vadd.f32 %v770_v34, %v609_v29  ;;  %v964_v41 = vpop.f32.mrf.mxu3  ;;  %v907_v29 = vld [vmem:[#allocation2 + $0x138] sm:$0xff] }
 0x156   : > { %v1050_v36 = vadd.f32 %v964_v41, %v856_v39  ;;  %v3099_v41 = vld [vmem:[#allocation2 + $0x141] sm:$0xff] }
 0x157   : > { %v614_v38 = vpop.f32.mrf.mxu1  ;;  %v1164_v26 = vpop.f32.mrf.mxu0 }
 0x158   : > { %v3089_v44 = vadd.f32 %v1158_v51, %v1050_v36  ;;  %820 = vmatmul.f32.gmra.mxu2 %v711_v25  ;;  %v906_v51 = vld [vmem:[#allocation2 + $0x128] sm:$0xff]  ;;  %v615_v11 = vadd.f32 %v614_v38, %v3051_v2  ;;  %v1500_v25 = vld [vmem:[#allocation3 + $0x308] sm:$0xff] }
 0x159   : > { %1014 = vmatmul.f32.gmra.mxu3 %v905_v35  ;;  %1529 = vmatpush.msra.mxu2 %v1500_v25  ;;  %v1694_v2 = vld [vmem:[#allocation3 + $0x388] sm:$0xff] }
 0x15a   : > { %661 = vmatmul.f32.gmra.mxu1 %v904_v17  ;;  %1211 = vmatmul.f32.gmra.mxu0 %v3087_v13 }
 0x15b   : > { %v773_v52 = vpop.f32.mrf.mxu2  ;;  %1723 = vmatpush.msra.mxu3 %v1694_v2  ;;  %v332_v2 = vld [vmem:[%s2790_s12 + $0xf8] sm:$0xff] }
 0x15c   : > { %v857_v54 = vadd.f32 %v773_v52, %v612_v49  ;;  %v967_v60 = vpop.f32.mrf.mxu3  ;;  %v3105_v49 = vld [vmem:[#allocation2 + $0x12a] sm:$0xff]  ;;  %v908_v52 = vld [vmem:[#allocation2 + $0x140] sm:$0xff]  ;;  %365 = vst.msk [vmem:[#allocation2 + $0x189] sm:$0xff] %vm333_vm0, %v332_v2 }
 0x15d   : > { %v3138_v2 = vld [vmem:[#allocation2 + $0x171] sm:$0xff] }
 0x15e   : > { %v1051_v18 = vadd.f32 %v967_v60, %v857_v54  ;;  %3610 = vst [vmem:[#allocation13_spill] sm:$0xff] %v3138_v2 }
 0x15f   : > { %v617_v33 = vpop.f32.mrf.mxu1  ;;  %v1167_v21 = vpop.f32.mrf.mxu0 }
 0x160   : > { %v3095_v4 = vadd.f32 %v1161_v9, %v1051_v18  ;;  %823 = vmatmul.f32.gmra.mxu2 %v712_v55  ;;  %v618_v36 = vadd.f32 %v617_v33, %v2992_v5  ;;  %v1888_v5 = vld [vmem:[#allocation3 + $0x408] sm:$0xff]  ;;  %v331_v18 = vld [vmem:[%s2790_s12 + $0xf0] sm:$0xff] }
 0x161   : > { %1017 = vmatmul.f32.gmra.mxu3 %v906_v51  ;;  %364 = vst.msk [vmem:[#allocation2 + $0x181] sm:$0xff] %vm333_vm0, %v331_v18  ;;  %1917 = vmatpush.msra.mxu0 %v1888_v5 }
 0x162   : > { %664 = vmatmul.f32.gmra.mxu1 %v905_v35  ;;  %1214 = vmatmul.f32.gmra.mxu0 %v3093_v7 }
 0x163   : > { %v776_v12 = vpop.f32.mrf.mxu2 }
 0x164   : > { %v858_v20 = vadd.f32 %v776_v12, %v615_v11  ;;  %v970_v17 = vpop.f32.mrf.mxu3  ;;  %v3116_v12 = vld [vmem:[#allocation2 + $0x13a] sm:$0xff] }
 0x166   : > { %v1052_v43 = vadd.f32 %v970_v17, %v858_v20  ;;  %v909_v20 = vld [vmem:[#allocation2 + $0x150] sm:$0xff] }
 0x167   : > { %v620_v34 = vpop.f32.mrf.mxu1  ;;  %v1170_v39 = vpop.f32.mrf.mxu0 }
 0x168   : > { %v3101_v9 = vadd.f32 %v1164_v26, %v1052_v43  ;;  %826 = vmatmul.f32.gmra.mxu2 %v713_v30  ;;  %v3118_v43 = vld [vmem:[#allocation2 + $0x159] sm:$0xff] }
 0x169   : > { %1020 = vmatmul.f32.gmra.mxu3 %v907_v29 }
 0x16a   : > { %667 = vmatmul.f32.gmra.mxu1 %v906_v51  ;;  %1217 = vmatmul.f32.gmra.mxu0 %v3099_v41  ;;  %v621_v51 = vadd.f32 %v620_v34, %v2997_v10  ;;  %v1499_v10 = vld [vmem:[#allocation3 + $0x300] sm:$0xff] }
 0x16b   : > { %v779_v35 = vpop.f32.mrf.mxu2  ;;  %1530 = vmatpush.msra.mxu2 %v1499_v10 }
 0x16c   : > { %v859_v38 = vadd.f32 %v779_v35, %v618_v36  ;;  %v973_v48 = vpop.f32.mrf.mxu3 }
 0x16e   : > { %v1053_v26 = vadd.f32 %v973_v48, %v859_v38  ;;  %v3127_v48 = vld [vmem:[#allocation2 + $0x142] sm:$0xff] }
 0x16f   : > { %v623_v54 = vpop.f32.mrf.mxu1  ;;  %v1173_v60 = vpop.f32.mrf.mxu0 }
 0x170   : > { %v3109_v55 = vadd.f32 %v1167_v21, %v1053_v26  ;;  %829 = vmatmul.f32.gmra.mxu2 %v3105_v49  ;;  %v624_v34 = vadd.f32 %v623_v54, %v3004_v24  ;;  %v910_v26 = vld [vmem:[#allocation2 + $0x158] sm:$0xff] }
 0x171   : > { %1023 = vmatmul.f32.gmra.mxu3 %v908_v52 }
 0x172   : > { %670 = vmatmul.f32.gmra.mxu1 %v907_v29  ;;  %1220 = vmatmul.f32.gmra.mxu0 %v3107_v63  ;;  %v1693_v29 = vld [vmem:[#allocation3 + $0x380] sm:$0xff] }
 0x173   : > { %v782_v33 = vpop.f32.mrf.mxu2  ;;  %1724 = vmatpush.msra.mxu3 %v1693_v29  ;;  %v911_v29 = vld [vmem:[#allocation2 + $0x168] sm:$0xff] }
 0x174   : > { %v860_v57 = vadd.f32 %v782_v33, %v621_v51  ;;  %v976_v11 = vpop.f32.mrf.mxu3  ;;  %v3129_v51 = vld [vmem:[#allocation2 + $0x169] sm:$0xff] }
 0x176   : > { %v1054_v21 = vadd.f32 %v976_v11, %v860_v57 }
 0x177   : > { %v626_v17 = vpop.f32.mrf.mxu1  ;;  %v1176_v30 = vpop.f32.mrf.mxu0 }
 0x178   : > { %v3120_v25 = vadd.f32 %v1170_v39, %v1054_v21  ;;  %832 = vmatmul.f32.gmra.mxu2 %v3116_v12  ;;  %v1304_v39 = vld [vmem:[#allocation3 + $0x280] sm:$0xff]  ;;  %v627_v54 = vadd.f32 %v626_v17, %v3013_v32 }
 0x179   : > { %1026 = vmatmul.f32.gmra.mxu3 %v909_v20  ;;  %1335 = vmatpush.msra.mxu1 %v1304_v39  ;;  %v3136_v21 = vld [vmem:[#allocation2 + $0x152] sm:$0xff] }
 0x17a   : > { %673 = vmatmul.f32.gmra.mxu1 %v908_v52  ;;  %1223 = vmatmul.f32.gmra.mxu0 %v3118_v43  ;;  %v1887_v52 = vld [vmem:[#allocation3 + $0x400] sm:$0xff] }
 0x17b   : > { %v785_v36 = vpop.f32.mrf.mxu2  ;;  %1918 = vmatpush.msra.mxu0 %v1887_v52 }
 0x17c   : > { %v861_v35 = vadd.f32 %v785_v36, %v624_v34  ;;  %v979_v38 = vpop.f32.mrf.mxu3 }
 0x17e   : > { %v1055_v47 = vadd.f32 %v979_v38, %v861_v35  ;;  %v3145_v38 = vld [vmem:[#allocation2 + $0x15a] sm:$0xff] }
 0x17f   : > { %v629_v5 = vpop.f32.mrf.mxu1  ;;  %v1179_v18 = vpop.f32.mrf.mxu0 }
 0x180   : > { %v3131_v24 = vadd.f32 %v1173_v60, %v1055_v47  ;;  %835 = vmatmul.f32.gmra.mxu2 %v3127_v48  ;;  %v630_v32 = vadd.f32 %v629_v5, %v3022_v42  ;;  %v912_v47 = vld [vmem:[#allocation2 + $0x170] sm:$0xff] }
 0x181   : > { %1029 = vmatmul.f32.gmra.mxu3 %v910_v26 }
 0x182   : > { %676 = vmatmul.f32.gmra.mxu1 %v909_v20  ;;  %1226 = vmatmul.f32.gmra.mxu0 %v3129_v51 }
 0x183   : > { %v788_v33 = vpop.f32.mrf.mxu2 }
 0x184   : > { %v862_v57 = vadd.f32 %v788_v33, %v627_v54  ;;  %v982_v11 = vpop.f32.mrf.mxu3  ;;  %v3147_v33 = vld [vmem:[#allocation2 + $0x181] sm:$0xff] }
 0x185   : > { %3612 = vst [vmem:[#allocation15_spill] sm:$0xff] %v3147_v33 }
 0x186   : > { %v1056_v10 = vadd.f32 %v982_v11, %v862_v57  ;;  %v3154_v11 = vld [vmem:[#allocation2 + $0x16a] sm:$0xff] }
 0x187   : > { %v632_v34 = vpop.f32.mrf.mxu1  ;;  %v1182_v60 = vpop.f32.mrf.mxu0 }
 0x188   : > { %v3140_v36 = vadd.f32 %v1176_v30, %v1056_v10  ;;  %838 = vmatmul.f32.gmra.mxu2 %v3136_v21  ;;  %v633_v42 = vadd.f32 %v632_v34, %v3031_v46 }
 0x189   : > { %1032 = vmatmul.f32.gmra.mxu3 %v911_v29 }
 0x18a   : > { %3611 = vst [vmem:[#allocation14_spill] sm:$0xff] %v3140_v36  ;;  %679 = vmatmul.f32.gmra.mxu1 %v910_v26  ;;  %1229 = vmatmul.f32.gmra.mxu0 %v3138_v2  ;;  %v1855_v36 = vld [vmem:[#allocation2 + $0x3a] sm:$0xff] }
 0x18b   : > { %v791_v20 = vpop.f32.mrf.mxu2 }
 0x18c   : > { %v863_v17 = vadd.f32 %v791_v20, %v630_v32  ;;  %v985_v35 = vpop.f32.mrf.mxu3  ;;  %v3156_v32 = vld [vmem:[#allocation2 + $0x180] sm:$0xff] }
 0x18d   : > { %3614 = vst [vmem:[#allocation17_spill] sm:$0xff] %v3156_v32 }
 0x18e   : > { %v1057_v39 = vadd.f32 %v985_v35, %v863_v17 }
 0x18f   : > { %v635_v52 = vpop.f32.mrf.mxu1  ;;  %v1185_v54 = vpop.f32.mrf.mxu0 }
 0x190   : > { %v3149_v30 = vadd.f32 %v1179_v18, %v1057_v39  ;;  %841 = vmatmul.f32.gmra.mxu2 %v3145_v38  ;;  %v3158_v18 = vld [vmem:[#allocation2 + $0x189] sm:$0xff]  ;;  %v636_v46 = vadd.f32 %v635_v52, %v3040_v56 }
 0x191   : > { %1035 = vmatmul.f32.gmra.mxu3 %v912_v47  ;;  %3615 = vst [vmem:[#allocation18_spill] sm:$0xff] %v3158_v18 }
 0x192   : > { %3613 = vst [vmem:[#allocation16_spill] sm:$0xff] %v3149_v30  ;;  %682 = vmatmul.f32.gmra.mxu1 %v911_v29  ;;  %1232 = vmatmul.f32.gmra.mxu0 %v3147_v33  ;;  %v1272_v33 = vld [vmem:[#allocation2 + $0x22] sm:$0xff] }
 0x193   : > { %v794_v26 = vpop.f32.mrf.mxu2 }
 0x194   : > { %v864_v5 = vadd.f32 %v794_v26, %v633_v42  ;;  %v988_v57 = vpop.f32.mrf.mxu3  ;;  %v3166_v42 = vld [vmem:[#allocation2 + $0x172] sm:$0xff] }
 0x196   : > { %v1058_v10 = vadd.f32 %v988_v57, %v864_v5  ;;  %v3168_v5 = vld [vmem:[#allocation2 + $0x188] sm:$0xff] }
 0x197   : > { %v638_v20 = vpop.f32.mrf.mxu1  ;;  %v1188_v17 = vpop.f32.mrf.mxu0  ;;  %3617 = vst [vmem:[#allocation20_spill] sm:$0xff] %v3168_v5 }
 0x198   : > { %v3160_v35 = vadd.f32 %v1182_v60, %v1058_v10  ;;  %844 = vmatmul.f32.gmra.mxu2 %v3154_v11  ;;  %v1271_v60 = vld [vmem:[#allocation2 + $0x1a] sm:$0xff]  ;;  %v639_v56 = vadd.f32 %v638_v20, %v3049_v1 }
 0x199   : > { %1038 = vmatmul.f32.gmra.mxu3 %v3156_v32 }
 0x19a   : > { %3616 = vst [vmem:[#allocation19_spill] sm:$0xff] %v3160_v35  ;;  %685 = vmatmul.f32.gmra.mxu1 %v912_v47  ;;  %1235 = vmatmul.f32.gmra.mxu0 %v3158_v18  ;;  %v1854_v35 = vld [vmem:[#allocation2 + $0x32] sm:$0xff] }
 0x19b   : > { %v797_v29 = vpop.f32.mrf.mxu2 }
 0x19c   : > { %v865_v34 = vadd.f32 %v797_v29, %v636_v46  ;;  %v991_v39 = vpop.f32.mrf.mxu3  ;;  %v1466_v29 = vld [vmem:[#allocation2 + $0x30] sm:$0xff] }
 0x19e   : > { %v1059_v26 = vadd.f32 %v991_v39, %v865_v34  ;;  %v1660_v39 = vld [vmem:[#allocation2 + $0x31] sm:$0xff] }
 0x19f   : > { %v641_v57 = vpop.f32.mrf.mxu1  ;;  %v1191_v10 = vpop.f32.mrf.mxu0 }
 0x1a0   : > { %v3170_v30 = vadd.f32 %v1185_v54, %v1059_v26  ;;  %847 = vmatmul.f32.gmra.mxu2 %v3166_v42  ;;  %v642_v26 = vadd.f32 %v641_v57, %v3000_v15 }
 0x1a1   : > { %1041 = vmatmul.f32.gmra.mxu3 %v3168_v5  ;;  %v1856_v5 = vld [vmem:[#allocation2 + $0x4a] sm:$0xff] }
 0x1a2   : > { %3618 = vst [vmem:[#allocation21_spill] sm:$0xff] %v3170_v30  ;;  %1336 = vmatmul.f32.vlgmr.msra.gmra.mxu1 %v1271_v60  ;;  %1919 = vmatmul.f32.vlgmr.msra.gmra.mxu0 %v1854_v35  ;;  %v1661_v30 = vld [vmem:[#allocation2 + $0x39] sm:$0xff] }
 0x1a3   : > { %v800_v47 = vpop.f32.mrf.mxu2 }
 0x1a4   : > { %v866_v52 = vadd.f32 %v800_v47, %v639_v56  ;;  %v994_v46 = vpop.f32.mrf.mxu3  ;;  %v1467_v56 = vld [vmem:[#allocation2 + $0x38] sm:$0xff] }
 0x1a6   : > { %v1060_v34 = vadd.f32 %v994_v46, %v866_v52 }
 0x1a7   : > { %v644_v18 = vpop.f32.mrf.mxu1  ;;  %v1194_v32 = vpop.f32.mrf.mxu0 }
 0x1a8   : > { %v3175_v54 = vadd.f32 %v1188_v17, %v1060_v34  ;;  %1531 = vmatmul.f32.vlgmr.msra.gmra.mxu2 %v1466_v29  ;;  %v645_v17 = vadd.f32 %v644_v18, %v3009_v37  ;;  %v1468_v29 = vld [vmem:[#allocation2 + $0x48] sm:$0xff] }
 0x1a9   : > { %1725 = vmatmul.f32.vlgmr.msra.gmra.mxu3 %v1660_v39  ;;  %v1662_v39 = vld [vmem:[#allocation2 + $0x49] sm:$0xff] }
 0x1aa   : > { %1339 = vmatmul.f32.gmra.mxu1 %v1272_v33  ;;  %1922 = vmatmul.f32.gmra.mxu0 %v1855_v36 }
 0x1ab   : > { %v803_v1 = vpop.f32.mrf.mxu2 }
 0x1ac   : > { %v867_v20 = vadd.f32 %v803_v1, %v642_v26  ;;  %v997_v60 = vpop.f32.mrf.mxu3 }
 0x1ae   : > { %v1061_v47 = vadd.f32 %v997_v60, %v867_v20  ;;  %v1857_v20 = vld [vmem:[#allocation2 + $0x52] sm:$0xff] }
 0x1af   : > { %v647_v52 = vpop.f32.mrf.mxu1  ;;  %v1197_v46 = vpop.f32.mrf.mxu0 }
 0x1b0   : > { %v3178_v2 = vadd.f32 %v1191_v10, %v1061_v47  ;;  %1534 = vmatmul.f32.gmra.mxu2 %v1467_v56  ;;  %v648_v10 = vadd.f32 %v647_v52, %v3018_v53  ;;  %v1663_v47 = vld [vmem:[#allocation2 + $0x51] sm:$0xff] }
 0x1b1   : > { %1728 = vmatmul.f32.gmra.mxu3 %v1661_v30 }
 0x1b2   : > { %1342 = vmatmul.f32.gmra.mxu1 %v1854_v35  ;;  %1925 = vmatmul.f32.gmra.mxu0 %v1856_v5  ;;  %v1469_v35 = vld [vmem:[#allocation2 + $0x50] sm:$0xff] }
 0x1b3   : > { %v806_v15 = vpop.f32.mrf.mxu2 }
 0x1b4   : > { %v868_v33 = vadd.f32 %v806_v15, %v645_v17  ;;  %v1000_v57 = vpop.f32.mrf.mxu3 }
 0x1b6   : > { %v1062_v34 = vadd.f32 %v1000_v57, %v868_v33  ;;  %v1858_v33 = vld [vmem:[#allocation2 + $0x62] sm:$0xff] }
 0x1b7   : > { %v650_v26 = vpop.f32.mrf.mxu1  ;;  %v1200_v1 = vpop.f32.mrf.mxu0 }
 0x1b8   : > { %v3181_v60 = vadd.f32 %v1194_v32, %v1062_v34  ;;  %1537 = vmatmul.f32.gmra.mxu2 %v1468_v29  ;;  %v651_v32 = vadd.f32 %v650_v26, %v3027_v6  ;;  %v1470_v29 = vld [vmem:[#allocation2 + $0x60] sm:$0xff] }
 0x1b9   : > { %1731 = vmatmul.f32.gmra.mxu3 %v1662_v39  ;;  %v1664_v39 = vld [vmem:[#allocation2 + $0x61] sm:$0xff] }
 0x1ba   : > { %1345 = vmatmul.f32.gmra.mxu1 %v1855_v36  ;;  %1928 = vmatmul.f32.gmra.mxu0 %v1857_v20 }
 0x1bb   : > { %v809_v37 = vpop.f32.mrf.mxu2 }
 0x1bc   : > { %v869_v30 = vadd.f32 %v809_v37, %v648_v10  ;;  %v1003_v18 = vpop.f32.mrf.mxu3 }
 0x1be   : > { %v1063_v56 = vadd.f32 %v1003_v18, %v869_v30  ;;  %v1859_v30 = vld [vmem:[#allocation2 + $0x6a] sm:$0xff] }
 0x1bf   : > { %v653_v17 = vpop.f32.mrf.mxu1  ;;  %v1203_v15 = vpop.f32.mrf.mxu0 }
 0x1c0   : > { %v3184_v57 = vadd.f32 %v1197_v46, %v1063_v56  ;;  %1540 = vmatmul.f32.gmra.mxu2 %v1469_v35  ;;  %v654_v46 = vadd.f32 %v653_v17, %v3036_v16  ;;  %v1471_v35 = vld [vmem:[#allocation2 + $0x68] sm:$0xff] }
 0x1c1   : > { %1734 = vmatmul.f32.gmra.mxu3 %v1663_v47  ;;  %v1665_v47 = vld [vmem:[#allocation2 + $0x69] sm:$0xff] }
 0x1c2   : > { %1348 = vmatmul.f32.gmra.mxu1 %v1856_v5  ;;  %1931 = vmatmul.f32.gmra.mxu0 %v1858_v33 }
 0x1c3   : > { %v812_v53 = vpop.f32.mrf.mxu2 }
 0x1c4   : > { %v870_v36 = vadd.f32 %v812_v53, %v651_v32  ;;  %v1006_v52 = vpop.f32.mrf.mxu3 }
 0x1c6   : > { %v1064_v34 = vadd.f32 %v1006_v52, %v870_v36  ;;  %v1860_v36 = vld [vmem:[#allocation2 + $0x7a] sm:$0xff] }
 0x1c7   : > { %v656_v10 = vpop.f32.mrf.mxu1  ;;  %v1206_v37 = vpop.f32.mrf.mxu0 }
 0x1c8   : > { %v3187_v18 = vadd.f32 %v1200_v1, %v1064_v34  ;;  %1543 = vmatmul.f32.gmra.mxu2 %v1470_v29  ;;  %v657_v1 = vadd.f32 %v656_v10, %v3045_v23  ;;  %v1472_v29 = vld [vmem:[#allocation2 + $0x78] sm:$0xff] }
 0x1c9   : > { %1737 = vmatmul.f32.gmra.mxu3 %v1664_v39  ;;  %v1666_v39 = vld [vmem:[#allocation2 + $0x79] sm:$0xff] }
 0x1ca   : > { %1351 = vmatmul.f32.gmra.mxu1 %v1857_v20  ;;  %1934 = vmatmul.f32.gmra.mxu0 %v1859_v30 }
 0x1cb   : > { %v815_v6 = vpop.f32.mrf.mxu2 }
 0x1cc   : > { %v871_v5 = vadd.f32 %v815_v6, %v654_v46  ;;  %v1009_v26 = vpop.f32.mrf.mxu3 }
 0x1ce   : > { %v1065_v56 = vadd.f32 %v1009_v26, %v871_v5  ;;  %v1861_v5 = vld [vmem:[#allocation2 + $0x82] sm:$0xff] }
 0x1cf   : > { %v659_v32 = vpop.f32.mrf.mxu1  ;;  %v1209_v53 = vpop.f32.mrf.mxu0 }
 0x1d0   : > { %v3190_v52 = vadd.f32 %v1203_v15, %v1065_v56  ;;  %1546 = vmatmul.f32.gmra.mxu2 %v1471_v35  ;;  %v660_v15 = vadd.f32 %v659_v32, %v3054_v61  ;;  %v1473_v35 = vld [vmem:[#allocation2 + $0x80] sm:$0xff] }
 0x1d1   : > { %1740 = vmatmul.f32.gmra.mxu3 %v1665_v47  ;;  %v1667_v47 = vld [vmem:[#allocation2 + $0x81] sm:$0xff] }
 0x1d2   : > { %1354 = vmatmul.f32.gmra.mxu1 %v1858_v33  ;;  %1937 = vmatmul.f32.gmra.mxu0 %v1860_v36 }
 0x1d3   : > { %v818_v16 = vpop.f32.mrf.mxu2 }
 0x1d4   : > { %v872_v20 = vadd.f32 %v818_v16, %v657_v1  ;;  %v1012_v17 = vpop.f32.mrf.mxu3 }
 0x1d6   : > { %v1066_v34 = vadd.f32 %v1012_v17, %v872_v20  ;;  %v1862_v20 = vld [vmem:[#allocation2 + $0x92] sm:$0xff] }
 0x1d7   : > { %v662_v46 = vpop.f32.mrf.mxu1  ;;  %v1212_v6 = vpop.f32.mrf.mxu0 }
 0x1d8   : > { %v3193_v26 = vadd.f32 %v1206_v37, %v1066_v34  ;;  %1549 = vmatmul.f32.gmra.mxu2 %v1472_v29  ;;  %v663_v37 = vadd.f32 %v662_v46, %v3059_v27  ;;  %v1474_v29 = vld [vmem:[#allocation2 + $0x90] sm:$0xff] }
 0x1d9   : > { %1743 = vmatmul.f32.gmra.mxu3 %v1666_v39  ;;  %v1668_v39 = vld [vmem:[#allocation2 + $0x91] sm:$0xff] }
 0x1da   : > { %1357 = vmatmul.f32.gmra.mxu1 %v1859_v30  ;;  %1940 = vmatmul.f32.gmra.mxu0 %v1861_v5 }
 0x1db   : > { %v821_v23 = vpop.f32.mrf.mxu2 }
 0x1dc   : > { %v873_v33 = vadd.f32 %v821_v23, %v660_v15  ;;  %v1015_v10 = vpop.f32.mrf.mxu3 }
 0x1de   : > { %v1067_v56 = vadd.f32 %v1015_v10, %v873_v33  ;;  %v1863_v33 = vld [vmem:[#allocation2 + $0x9a] sm:$0xff] }
 0x1df   : > { %v665_v1 = vpop.f32.mrf.mxu1  ;;  %v1215_v16 = vpop.f32.mrf.mxu0 }
 0x1e0   : > { %v3196_v17 = vadd.f32 %v1209_v53, %v1067_v56  ;;  %1552 = vmatmul.f32.gmra.mxu2 %v1473_v35  ;;  %v666_v53 = vadd.f32 %v665_v1, %v3002_v19  ;;  %v1475_v35 = vld [vmem:[#allocation2 + $0x98] sm:$0xff] }
 0x1e1   : > { %1746 = vmatmul.f32.gmra.mxu3 %v1667_v47  ;;  %v1669_v47 = vld [vmem:[#allocation2 + $0x99] sm:$0xff] }
 0x1e2   : > { %1360 = vmatmul.f32.gmra.mxu1 %v1860_v36  ;;  %1943 = vmatmul.f32.gmra.mxu0 %v1862_v20 }
 0x1e3   : > { %v824_v61 = vpop.f32.mrf.mxu2 }
 0x1e4   : > { %v874_v30 = vadd.f32 %v824_v61, %v663_v37  ;;  %v1018_v32 = vpop.f32.mrf.mxu3 }
 0x1e6   : > { %v1068_v34 = vadd.f32 %v1018_v32, %v874_v30  ;;  %v1864_v30 = vld [vmem:[#allocation2 + $0xaa] sm:$0xff] }
 0x1e7   : > { %v668_v15 = vpop.f32.mrf.mxu1  ;;  %v1218_v23 = vpop.f32.mrf.mxu0 }
 0x1e8   : > { %v3199_v10 = vadd.f32 %v1212_v6, %v1068_v34  ;;  %1555 = vmatmul.f32.gmra.mxu2 %v1474_v29  ;;  %v669_v6 = vadd.f32 %v668_v15, %v3011_v28  ;;  %v1476_v29 = vld [vmem:[#allocation2 + $0xa8] sm:$0xff] }
 0x1e9   : > { %1749 = vmatmul.f32.gmra.mxu3 %v1668_v39  ;;  %v1670_v39 = vld [vmem:[#allocation2 + $0xa9] sm:$0xff] }
 0x1ea   : > { %1363 = vmatmul.f32.gmra.mxu1 %v1861_v5  ;;  %1946 = vmatmul.f32.gmra.mxu0 %v1863_v33 }
 0x1eb   : > { %v827_v27 = vpop.f32.mrf.mxu2 }
 0x1ec   : > { %v875_v36 = vadd.f32 %v827_v27, %v666_v53  ;;  %v1021_v46 = vpop.f32.mrf.mxu3 }
 0x1ee   : > { %v1069_v56 = vadd.f32 %v1021_v46, %v875_v36  ;;  %v1865_v36 = vld [vmem:[#allocation2 + $0xb2] sm:$0xff] }
 0x1ef   : > { %v671_v37 = vpop.f32.mrf.mxu1  ;;  %v1221_v61 = vpop.f32.mrf.mxu0 }
 0x1f0   : > { %v3202_v32 = vadd.f32 %v1215_v16, %v1069_v56  ;;  %1558 = vmatmul.f32.gmra.mxu2 %v1475_v35  ;;  %v672_v16 = vadd.f32 %v671_v37, %v3020_v40  ;;  %v1477_v35 = vld [vmem:[#allocation2 + $0xb0] sm:$0xff] }
 0x1f1   : > { %1752 = vmatmul.f32.gmra.mxu3 %v1669_v47  ;;  %v1671_v47 = vld [vmem:[#allocation2 + $0xb1] sm:$0xff] }
 0x1f2   : > { %1366 = vmatmul.f32.gmra.mxu1 %v1862_v20  ;;  %1949 = vmatmul.f32.gmra.mxu0 %v1864_v30 }
 0x1f3   : > { %v830_v19 = vpop.f32.mrf.mxu2 }
 0x1f4   : > { %v876_v5 = vadd.f32 %v830_v19, %v669_v6  ;;  %v1024_v1 = vpop.f32.mrf.mxu3 }
 0x1f6   : > { %v1070_v34 = vadd.f32 %v1024_v1, %v876_v5  ;;  %v1866_v5 = vld [vmem:[#allocation2 + $0xc2] sm:$0xff] }
 0x1f7   : > { %v674_v53 = vpop.f32.mrf.mxu1  ;;  %v1224_v27 = vpop.f32.mrf.mxu0 }
 0x1f8   : > { %v3205_v46 = vadd.f32 %v1218_v23, %v1070_v34  ;;  %1561 = vmatmul.f32.gmra.mxu2 %v1476_v29  ;;  %v675_v23 = vadd.f32 %v674_v53, %v3029_v0  ;;  %v1478_v29 = vld [vmem:[#allocation2 + $0xc0] sm:$0xff] }
 0x1f9   : > { %1755 = vmatmul.f32.gmra.mxu3 %v1670_v39  ;;  %v1672_v39 = vld [vmem:[#allocation2 + $0xc1] sm:$0xff] }
 0x1fa   : > { %1369 = vmatmul.f32.gmra.mxu1 %v1863_v33  ;;  %1952 = vmatmul.f32.gmra.mxu0 %v1865_v36 }
 0x1fb   : > { %v833_v28 = vpop.f32.mrf.mxu2 }
 0x1fc   : > { %v877_v20 = vadd.f32 %v833_v28, %v672_v16  ;;  %v1027_v15 = vpop.f32.mrf.mxu3 }
 0x1fe   : > { %v1071_v56 = vadd.f32 %v1027_v15, %v877_v20  ;;  %v1867_v20 = vld [vmem:[#allocation2 + $0xca] sm:$0xff] }
 0x1ff   : > { %v677_v6 = vpop.f32.mrf.mxu1  ;;  %v1227_v19 = vpop.f32.mrf.mxu0 }
 0x200   : > { %v3208_v1 = vadd.f32 %v1221_v61, %v1071_v56  ;;  %1564 = vmatmul.f32.gmra.mxu2 %v1477_v35  ;;  %v678_v61 = vadd.f32 %v677_v6, %v3038_v50  ;;  %v1479_v35 = vld [vmem:[#allocation2 + $0xc8] sm:$0xff] }
 0x201   : > { %1758 = vmatmul.f32.gmra.mxu3 %v1671_v47  ;;  %v1673_v47 = vld [vmem:[#allocation2 + $0xc9] sm:$0xff] }
 0x202   : > { %1372 = vmatmul.f32.gmra.mxu1 %v1864_v30  ;;  %1955 = vmatmul.f32.gmra.mxu0 %v1866_v5 }
 0x203   : > { %v836_v40 = vpop.f32.mrf.mxu2 }
 0x204   : > { %v878_v33 = vadd.f32 %v836_v40, %v675_v23  ;;  %v1030_v37 = vpop.f32.mrf.mxu3 }
 0x206   : > { %v1072_v34 = vadd.f32 %v1030_v37, %v878_v33  ;;  %v1868_v33 = vld [vmem:[#allocation2 + $0xda] sm:$0xff] }
 0x207   : > { %v680_v16 = vpop.f32.mrf.mxu1  ;;  %v1230_v28 = vpop.f32.mrf.mxu0 }
 0x208   : > { %v3211_v15 = vadd.f32 %v1224_v27, %v1072_v34  ;;  %1567 = vmatmul.f32.gmra.mxu2 %v1478_v29  ;;  %v681_v27 = vadd.f32 %v680_v16, %v3047_v59  ;;  %v1480_v29 = vld [vmem:[#allocation2 + $0xd8] sm:$0xff] }
 0x209   : > { %1761 = vmatmul.f32.gmra.mxu3 %v1672_v39  ;;  %v1674_v39 = vld [vmem:[#allocation2 + $0xd9] sm:$0xff] }
 0x20a   : > { %1375 = vmatmul.f32.gmra.mxu1 %v1865_v36  ;;  %1958 = vmatmul.f32.gmra.mxu0 %v1867_v20 }
 0x20b   : > { %v839_v0 = vpop.f32.mrf.mxu2 }
 0x20c   : > { %v879_v30 = vadd.f32 %v839_v0, %v678_v61  ;;  %v1033_v53 = vpop.f32.mrf.mxu3 }
 0x20e   : > { %v1073_v56 = vadd.f32 %v1033_v53, %v879_v30  ;;  %v1869_v30 = vld [vmem:[#allocation2 + $0xe2] sm:$0xff] }
 0x20f   : > { %v683_v23 = vpop.f32.mrf.mxu1  ;;  %v1233_v40 = vpop.f32.mrf.mxu0 }
 0x210   : > { %v3214_v37 = vadd.f32 %v1227_v19, %v1073_v56  ;;  %1570 = vmatmul.f32.gmra.mxu2 %v1479_v35  ;;  %v684_v19 = vadd.f32 %v683_v23, %v3056_v8  ;;  %v1481_v35 = vld [vmem:[#allocation2 + $0xe0] sm:$0xff] }
 0x211   : > { %1764 = vmatmul.f32.gmra.mxu3 %v1673_v47  ;;  %v1675_v47 = vld [vmem:[#allocation2 + $0xe1] sm:$0xff] }
 0x212   : > { %1378 = vmatmul.f32.gmra.mxu1 %v1866_v5  ;;  %1961 = vmatmul.f32.gmra.mxu0 %v1868_v33 }
 0x213   : > { %v842_v50 = vpop.f32.mrf.mxu2 }
 0x214   : > { %v880_v36 = vadd.f32 %v842_v50, %v681_v27  ;;  %v1036_v6 = vpop.f32.mrf.mxu3 }
 0x216   : > { %v1074_v34 = vadd.f32 %v1036_v6, %v880_v36  ;;  %v1870_v36 = vld [vmem:[#allocation2 + $0xf2] sm:$0xff] }
 0x217   : > { %v686_v61 = vpop.f32.mrf.mxu1  ;;  %v1236_v0 = vpop.f32.mrf.mxu0 }
 0x218   : > { %v3217_v53 = vadd.f32 %v1230_v28, %v1074_v34  ;;  %1573 = vmatmul.f32.gmra.mxu2 %v1480_v29  ;;  %v687_v28 = vadd.f32 %v686_v61, %v3061_v14  ;;  %v1482_v29 = vld [vmem:[#allocation2 + $0xf0] sm:$0xff] }
 0x219   : > { %1767 = vmatmul.f32.gmra.mxu3 %v1674_v39  ;;  %v1676_v39 = vld [vmem:[#allocation2 + $0xf1] sm:$0xff] }
 0x21a   : > { %1381 = vmatmul.f32.gmra.mxu1 %v1867_v20  ;;  %1964 = vmatmul.f32.gmra.mxu0 %v1869_v30 }
 0x21b   : > { %v845_v59 = vpop.f32.mrf.mxu2 }
 0x21c   : > { %v881_v5 = vadd.f32 %v845_v59, %v684_v19  ;;  %v1039_v16 = vpop.f32.mrf.mxu3 }
 0x21e   : > { %v1075_v56 = vadd.f32 %v1039_v16, %v881_v5  ;;  %v1871_v5 = vld [vmem:[#allocation2 + $0xfa] sm:$0xff] }
 0x21f   : > { %v1337_v27 = vpop.f32.mrf.mxu1  ;;  %v1920_v50 = vpop.f32.mrf.mxu0 }
 0x220   : > { %v3220_v6 = vadd.f32 %v1233_v40, %v1075_v56  ;;  %1576 = vmatmul.f32.gmra.mxu2 %v1481_v35  ;;  %v1433_v14 = vadd.f32 %v1337_v27, %v3065_v58  ;;  %v1483_v35 = vld [vmem:[#allocation2 + $0xf8] sm:$0xff] }
 0x221   : > { %1770 = vmatmul.f32.gmra.mxu3 %v1675_v47  ;;  %v1677_v47 = vld [vmem:[#allocation2 + $0xf9] sm:$0xff] }
 0x222   : > { %1384 = vmatmul.f32.gmra.mxu1 %v1868_v33  ;;  %1967 = vmatmul.f32.gmra.mxu0 %v1870_v36 }
 0x223   : > { %v848_v8 = vpop.f32.mrf.mxu2 }
 0x224   : > { %v882_v20 = vadd.f32 %v848_v8, %v687_v28  ;;  %v1042_v23 = vpop.f32.mrf.mxu3 }
 0x226   : > { %v1076_v34 = vadd.f32 %v1042_v23, %v882_v20 }
 0x227   : > { %v1340_v19 = vpop.f32.mrf.mxu1  ;;  %v1923_v59 = vpop.f32.mrf.mxu0 }
 0x228   : > { %v3223_v16 = vadd.f32 %v1236_v0, %v1076_v34  ;;  %1579 = vmatmul.f32.gmra.mxu2 %v1482_v29  ;;  %v1872_v0 = vld [vmem:[#allocation2 + $0x10a] sm:$0xff]  ;;  %v1434_v23 = vadd.f32 %v1340_v19, %v3069_v22 }
 0x229   : > { %1773 = vmatmul.f32.gmra.mxu3 %v1676_v39  ;;  %v1484_v29 = vld [vmem:[#allocation2 + $0x108] sm:$0xff] }
 0x22a   : > { %1387 = vmatmul.f32.gmra.mxu1 %v1869_v30  ;;  %1970 = vmatmul.f32.gmra.mxu0 %v1871_v5  ;;  %v1678_v39 = vld [vmem:[#allocation2 + $0x109] sm:$0xff] }
 0x22b   : > { %v1532_v40 = vpop.f32.mrf.mxu2 }
 0x22c   : > { %v1628_v33 = vadd.f32 %v1532_v40, %v1433_v14  ;;  %v1726_v61 = vpop.f32.mrf.mxu3  ;;  %v1873_v40 = vld [vmem:[#allocation2 + $0x112] sm:$0xff] }
 0x22e   : > { %v1822_v56 = vadd.f32 %v1726_v61, %v1628_v33 }
 0x22f   : > { %v1343_v28 = vpop.f32.mrf.mxu1  ;;  %v1926_v8 = vpop.f32.mrf.mxu0 }
 0x230   : > { %v3230_v20 = vadd.f32 %v1920_v50, %v1822_v56  ;;  %1582 = vmatmul.f32.gmra.mxu2 %v1483_v35  ;;  %v1435_v22 = vadd.f32 %v1343_v28, %v3073_v45  ;;  %v1485_v35 = vld [vmem:[#allocation2 + $0x110] sm:$0xff] }
 0x231   : > { %1776 = vmatmul.f32.gmra.mxu3 %v1677_v47  ;;  %v1679_v47 = vld [vmem:[#allocation2 + $0x111] sm:$0xff] }
 0x232   : > { %2187 = vst [vmem:[%s3233_s22] sm:$0xff] %v3230_v20  ;;  %1390 = vmatmul.f32.gmra.mxu1 %v1870_v36  ;;  %1973 = vmatmul.f32.gmra.mxu0 %v1872_v0 }
 0x233   : > { %v1535_v58 = vpop.f32.mrf.mxu2 }
 0x234   : > { %v1629_v30 = vadd.f32 %v1535_v58, %v1434_v23  ;;  %v1729_v27 = vpop.f32.mrf.mxu3 }
 0x236   : > { %v1823_v34 = vadd.f32 %v1729_v27, %v1629_v30  ;;  %v1874_v30 = vld [vmem:[#allocation2 + $0x122] sm:$0xff] }
 0x237   : > { %v1346_v50 = vpop.f32.mrf.mxu1  ;;  %v1929_v14 = vpop.f32.mrf.mxu0 }
 0x238   : > { %v3237_v33 = vadd.f32 %v1923_v59, %v1823_v34  ;;  %1585 = vmatmul.f32.gmra.mxu2 %v1484_v29  ;;  %v1436_v45 = vadd.f32 %v1346_v50, %v3077_v62  ;;  %v1486_v29 = vld [vmem:[#allocation2 + $0x120] sm:$0xff] }
 0x239   : > { %1779 = vmatmul.f32.gmra.mxu3 %v1678_v39 }
 0x23a   : > { %2188 = vst [vmem:[%s3233_s22 + $0x8] sm:$0xff] %v3237_v33  ;;  %1393 = vmatmul.f32.gmra.mxu1 %v1871_v5  ;;  %1976 = vmatmul.f32.gmra.mxu0 %v1873_v40 }
 0x23b   : > { %v1538_v36 = vpop.f32.mrf.mxu2 }
 0x23c   : > { %v1630_v19 = vadd.f32 %v1538_v36, %v1435_v22  ;;  %v1732_v61 = vpop.f32.mrf.mxu3 }
 0x23e   : > { %v1824_v56 = vadd.f32 %v1732_v61, %v1630_v19  ;;  %v1487_v19 = vld [vmem:[#allocation2 + $0x128] sm:$0xff] }
 0x23f   : > { %v1349_v23 = vpop.f32.mrf.mxu1  ;;  %v1932_v58 = vpop.f32.mrf.mxu0 }
 0x240   : > { %v3242_v59 = vadd.f32 %v1926_v8, %v1824_v56  ;;  %1588 = vmatmul.f32.gmra.mxu2 %v1485_v35  ;;  %v1437_v8 = vadd.f32 %v1349_v23, %v3083_v31 }
 0x241   : > { %1782 = vmatmul.f32.gmra.mxu3 %v1679_v47  ;;  %v1488_v47 = vld [vmem:[#allocation2 + $0x138] sm:$0xff] }
 0x242   : > { %2189 = vst [vmem:[%s3233_s22 + $0x10] sm:$0xff] %v3242_v59  ;;  %1396 = vmatmul.f32.gmra.mxu1 %v1872_v0  ;;  %1979 = vmatmul.f32.gmra.mxu0 %v1874_v30 }
 0x243   : > { %v1541_v5 = vpop.f32.mrf.mxu2 }
 0x244   : > { %v1631_v28 = vadd.f32 %v1541_v5, %v1436_v45  ;;  %v1735_v27 = vpop.f32.mrf.mxu3  ;;  %v1294_v5 = vld [vmem:[#allocation2 + $0x12a] sm:$0xff] }
 0x246   : > { %v1825_v34 = vadd.f32 %v1735_v27, %v1631_v28  ;;  %v1489_v27 = vld [vmem:[#allocation2 + $0x140] sm:$0xff] }
 0x247   : > { %v1352_v39 = vpop.f32.mrf.mxu1  ;;  %v1935_v22 = vpop.f32.mrf.mxu0 }
 0x248   : > { %v3247_v36 = vadd.f32 %v1929_v14, %v1825_v34  ;;  %1591 = vmatmul.f32.gmra.mxu2 %v1486_v29 }
 0x249   : > { %1785 = vmatmul.f32.gmra.mxu3 %v3081_v3  ;;  %v1438_v3 = vadd.f32 %v1352_v39, %v3089_v44  ;;  %v1295_v39 = vld [vmem:[#allocation2 + $0x13a] sm:$0xff] }
 0x24a   : > { %2190 = vst [vmem:[%s3233_s22 + $0x18] sm:$0xff] %v3247_v36  ;;  %1399 = vmatmul.f32.gmra.mxu1 %v1873_v40  ;;  %1982 = vmatmul.f32.gmra.mxu0 %v3105_v49 }
 0x24b   : > { %v1544_v62 = vpop.f32.mrf.mxu2 }
 0x24c   : > { %v1632_v0 = vadd.f32 %v1544_v62, %v1437_v8  ;;  %v1738_v50 = vpop.f32.mrf.mxu3 }
 0x24e   : > { %v1826_v61 = vadd.f32 %v1738_v50, %v1632_v0  ;;  %v1490_v0 = vld [vmem:[#allocation2 + $0x150] sm:$0xff] }
 0x24f   : > { %v1355_v35 = vpop.f32.mrf.mxu1  ;;  %v1938_v56 = vpop.f32.mrf.mxu0 }
 0x250   : > { %v3254_v14 = vadd.f32 %v1932_v58, %v1826_v61  ;;  %1594 = vmatmul.f32.gmra.mxu2 %v1487_v19  ;;  %v1296_v61 = vld [vmem:[#allocation2 + $0x142] sm:$0xff] }
 0x251   : > { %1788 = vmatmul.f32.gmra.mxu3 %v3087_v13  ;;  %v1439_v13 = vadd.f32 %v1355_v35, %v3095_v4 }
 0x252   : > { %2191 = vst [vmem:[%s3233_s22 + $0x20] sm:$0xff] %v3254_v14  ;;  %1402 = vmatmul.f32.gmra.mxu1 %v1874_v30  ;;  %1985 = vmatmul.f32.gmra.mxu0 %v3116_v12 }
 0x253   : > { %v1547_v31 = vpop.f32.mrf.mxu2 }
 0x254   : > { %v1633_v49 = vadd.f32 %v1547_v31, %v1438_v3  ;;  %v1741_v40 = vpop.f32.mrf.mxu3  ;;  %v1491_v31 = vld [vmem:[#allocation2 + $0x158] sm:$0xff] }
 0x256   : > { %v1827_v23 = vadd.f32 %v1741_v40, %v1633_v49 }
 0x257   : > { %v1358_v45 = vpop.f32.mrf.mxu1  ;;  %v1941_v58 = vpop.f32.mrf.mxu0 }
 0x258   : > { %v3261_v28 = vadd.f32 %v1935_v22, %v1827_v23  ;;  %1597 = vmatmul.f32.gmra.mxu2 %v1488_v47  ;;  %v1297_v47 = vld [vmem:[#allocation2 + $0x152] sm:$0xff] }
 0x259   : > { %1791 = vmatmul.f32.gmra.mxu3 %v3093_v7  ;;  %v1440_v7 = vadd.f32 %v1358_v45, %v3101_v9 }
 0x25a   : > { %2192 = vst [vmem:[%s3233_s22 + $0x28] sm:$0xff] %v3261_v28  ;;  %1405 = vmatmul.f32.gmra.mxu1 %v1294_v5  ;;  %1988 = vmatmul.f32.gmra.mxu0 %v3127_v48 }
 0x25b   : > { %v1550_v44 = vpop.f32.mrf.mxu2 }
 0x25c   : > { %v1634_v12 = vadd.f32 %v1550_v44, %v1439_v13  ;;  %v1744_v30 = vpop.f32.mrf.mxu3 }
 0x25e   : > { %v1828_v29 = vadd.f32 %v1744_v30, %v1634_v12  ;;  %v1298_v12 = vld [vmem:[#allocation2 + $0x15a] sm:$0xff] }
 0x25f   : > { %v1361_v34 = vpop.f32.mrf.mxu1  ;;  %v1944_v22 = vpop.f32.mrf.mxu0 }
 0x260   : > { %v3268_v8 = vadd.f32 %v1938_v56, %v1828_v29  ;;  %1600 = vmatmul.f32.gmra.mxu2 %v1489_v27 }
 0x261   : > { %1794 = vmatmul.f32.gmra.mxu3 %v3099_v41  ;;  %v1441_v41 = vadd.f32 %v1361_v34, %v3109_v55  ;;  %v1493_v34 = vld [vmem:[#allocation2 + $0x170] sm:$0xff] }
 0x262   : > { %2193 = vst [vmem:[%s3233_s22 + $0x30] sm:$0xff] %v3268_v8  ;;  %1408 = vmatmul.f32.gmra.mxu1 %v1295_v39  ;;  %1991 = vmatmul.f32.gmra.mxu0 %v3136_v21 }
 0x263   : > { %v1553_v4 = vpop.f32.mrf.mxu2 }
 0x264   : > { %v1635_v48 = vadd.f32 %v1553_v4, %v1440_v7  ;;  %v1747_v62 = vpop.f32.mrf.mxu3  ;;  %v1299_v7 = vld [vmem:[#allocation2 + $0x16a] sm:$0xff] }
 0x266   : > { %v1829_v50 = vadd.f32 %v1747_v62, %v1635_v48  ;;  %v1882_v48 = vld [vmem:[#allocation2 + $0x182] sm:$0xff] }
 0x267   : > { %v1364_v19 = vpop.f32.mrf.mxu1  ;;  %v1947_v35 = vpop.f32.mrf.mxu0 }
 0x268   : > { %v3275_v56 = vadd.f32 %v1941_v58, %v1829_v50  ;;  %1603 = vmatmul.f32.gmra.mxu2 %v1490_v0  ;;  %v1492_v58 = vld [vmem:[#allocation2 + $0x168] sm:$0xff] }
 0x269   : > { %1797 = vmatmul.f32.gmra.mxu3 %v3107_v63  ;;  %v1442_v63 = vadd.f32 %v1364_v19, %v3120_v25 }
 0x26a   : > { %2194 = vst [vmem:[%s3233_s22 + $0x38] sm:$0xff] %v3275_v56  ;;  %1411 = vmatmul.f32.gmra.mxu1 %v1296_v61  ;;  %1994 = vmatmul.f32.gmra.mxu0 %v3145_v38 }
 0x26b   : > { %v1556_v9 = vpop.f32.mrf.mxu2 }
 0x26c   : > { %v1636_v21 = vadd.f32 %v1556_v9, %v1441_v41  ;;  %v1750_v3 = vpop.f32.mrf.mxu3 }
 0x26e   : > { %v1830_v49 = vadd.f32 %v1750_v3, %v1636_v21  ;;  %v1883_v21 = vld [vmem:[#allocation2 + $0x18a] sm:$0xff] }
 0x26f   : > { %v1367_v40 = vpop.f32.mrf.mxu1  ;;  %v1950_v23 = vpop.f32.mrf.mxu0 }
 0x270   : > { %v3282_v45 = vadd.f32 %v1944_v22, %v1830_v49  ;;  %1606 = vmatmul.f32.gmra.mxu2 %v1491_v31  ;;  %v3621_v31 = vld [vmem:[#allocation17_spill] sm:$0xff]  ;;  %v3622_v49 = vld [vmem:[#allocation15_spill] sm:$0xff] }
 0x271   : > { %1800 = vmatmul.f32.gmra.mxu3 %v3118_v43  ;;  %v1443_v43 = vadd.f32 %v1367_v40, %v3131_v24  ;;  %v3620_v24 = vld [vmem:[#allocation14_spill] sm:$0xff]  ;;  %v3623_v40 = vld [vmem:[#allocation16_spill] sm:$0xff] }
 0x272   : > { %2195 = vst [vmem:[%s3233_s22 + $0x40] sm:$0xff] %v3282_v45  ;;  %1414 = vmatmul.f32.gmra.mxu1 %v1297_v47  ;;  %1997 = vmatmul.f32.gmra.mxu0 %v3154_v11 }
 0x273   : > { %v1559_v55 = vpop.f32.mrf.mxu2 }
 0x274   : > { %v1637_v38 = vadd.f32 %v1559_v55, %v1442_v63  ;;  %v1753_v5 = vpop.f32.mrf.mxu3 }
 0x276   : > { %v1831_v13 = vadd.f32 %v1753_v5, %v1637_v38 }
 0x277   : > { %v1370_v44 = vpop.f32.mrf.mxu1  ;;  %v1953_v30 = vpop.f32.mrf.mxu0 }
 0x278   : > { %v3289_v27 = vadd.f32 %v1947_v35, %v1831_v13  ;;  %1609 = vmatmul.f32.gmra.mxu2 %v1492_v58  ;;  %v1444_v0 = vadd.f32 %v1370_v44, %v3620_v24  ;;  %v1884_v13 = vld [vmem:[#allocation2 + $0x19a] sm:$0xff] }
 0x279   : > { %1803 = vmatmul.f32.gmra.mxu3 %v3129_v51  ;;  %v3619_v51 = vld [vmem:[#allocation13_spill] sm:$0xff]  ;;  %v2527_v24 = vld [vmem:[#allocation2] sm:$0xff] }
 0x27a   : > { %2196 = vst [vmem:[%s3233_s22 + $0x48] sm:$0xff] %v3289_v27  ;;  %1417 = vmatmul.f32.gmra.mxu1 %v1298_v12  ;;  %2000 = vmatmul.f32.gmra.mxu0 %v3166_v42  ;;  %v3624_v12 = vld [vmem:[#allocation20_spill] sm:$0xff] }
 0x27b   : > { %v1562_v25 = vpop.f32.mrf.mxu2 }
 0x27c   : > { %v1638_v11 = vadd.f32 %v1562_v25, %v1443_v43  ;;  %v1756_v29 = vpop.f32.mrf.mxu3  ;;  %v3626_v43 = vld [vmem:[#allocation19_spill] sm:$0xff] }
 0x27e   : > { %v1832_v39 = vadd.f32 %v1756_v29, %v1638_v11 }
 0x27f   : > { %v1373_v22 = vpop.f32.mrf.mxu1  ;;  %v1956_v4 = vpop.f32.mrf.mxu0 }
 0x280   : > { %v3296_v62 = vadd.f32 %v1950_v23, %v1832_v39  ;;  %1612 = vmatmul.f32.gmra.mxu2 %v1493_v34  ;;  %v1445_v47 = vadd.f32 %v1373_v22, %v3623_v40  ;;  %v1690_v39 = vld [vmem:[#allocation2 + $0x199] sm:$0xff] }
 0x281   : > { %1806 = vmatmul.f32.gmra.mxu3 %v3619_v51 }
 0x282   : > { %2197 = vst [vmem:[%s3233_s22 + $0x50] sm:$0xff] %v3296_v62  ;;  %1420 = vmatmul.f32.gmra.mxu1 %v1299_v7  ;;  %2003 = vmatmul.f32.gmra.mxu0 %v1882_v48 }
 0x283   : > { %v1565_v50 = vpop.f32.mrf.mxu2 }
 0x284   : > { %v1639_v19 = vadd.f32 %v1565_v50, %v1444_v0  ;;  %v1759_v61 = vpop.f32.mrf.mxu3  ;;  %v3627_v0 = vld [vmem:[#allocation21_spill] sm:$0xff] }
 0x286   : > { %v1833_v35 = vadd.f32 %v1759_v61, %v1639_v19 }
 0x287   : > { %v1376_v41 = vpop.f32.mrf.mxu1  ;;  %v1959_v9 = vpop.f32.mrf.mxu0 }
 0x288   : > { %v3302_v3 = vadd.f32 %v1953_v30, %v1833_v35  ;;  %1615 = vmatmul.f32.gmra.mxu2 %v3621_v31  ;;  %v3625_v30 = vld [vmem:[#allocation18_spill] sm:$0xff]  ;;  %v1446_v25 = vadd.f32 %v1376_v41, %v3626_v43 }
 0x289   : > { %1809 = vmatmul.f32.gmra.mxu3 %v3622_v49  ;;  %v1691_v41 = vld [vmem:[#allocation2 + $0x1a1] sm:$0xff] }
 0x28a   : > { %2198 = vst [vmem:[%s3233_s22 + $0x58] sm:$0xff] %v3302_v3  ;;  %1423 = vmatmul.f32.gmra.mxu1 %v3166_v42  ;;  %2006 = vmatmul.f32.gmra.mxu0 %v1883_v21 }
 0x28b   : > { %v1568_v23 = vpop.f32.mrf.mxu2 }
 0x28c   : > { %v1640_v63 = vadd.f32 %v1568_v23, %v1445_v47  ;;  %v1762_v55 = vpop.f32.mrf.mxu3 }
 0x28e   : > { %v1834_v38 = vadd.f32 %v1762_v55, %v1640_v63 }
 0x28f   : > { %v1379_v5 = vpop.f32.mrf.mxu1  ;;  %v1962_v58 = vpop.f32.mrf.mxu0 }
 0x290   : > { %v3310_v44 = vadd.f32 %v1956_v4, %v1834_v38  ;;  %1618 = vmatmul.f32.gmra.mxu2 %v3624_v12  ;;  %v1885_v4 = vld [vmem:[#allocation2 + $0x1a2] sm:$0xff]  ;;  %v1447_v50 = vadd.f32 %v1379_v5, %v3627_v0 }
 0x291   : > { %1812 = vmatmul.f32.gmra.mxu3 %v3625_v30 }
 0x292   : > { %2199 = vst [vmem:[%s3233_s22 + $0x60] sm:$0xff] %v3310_v44  ;;  %1426 = vmatmul.f32.gmra.mxu1 %v1882_v48  ;;  %2009 = vmatmul.f32.gmra.mxu0 %v1884_v13 }
 0x293   : > { %v1571_v42 = vpop.f32.mrf.mxu2 }
 0x294   : > { %v1641_v11 = vadd.f32 %v1571_v42, %v1446_v25  ;;  %v1765_v29 = vpop.f32.mrf.mxu3 }
 0x296   : > { %v1835_v34 = vadd.f32 %v1765_v29, %v1641_v11 }
 0x297   : > { %v1382_v22 = vpop.f32.mrf.mxu1  ;;  %v1965_v7 = vpop.f32.mrf.mxu0 }
 0x298   : > { %v3317_v51 = vadd.f32 %v1959_v9, %v1835_v34  ;;  %1621 = vmatmul.f32.gmra.mxu2 %v2527_v24  ;;  %v1448_v40 = vadd.f32 %v1382_v22, %v3175_v54 }
 0x299   : > { %1815 = vmatmul.f32.gmra.mxu3 %v1690_v39 }
 0x29a   : > { %2200 = vst [vmem:[%s3233_s22 + $0x68] sm:$0xff] %v3317_v51  ;;  %1429 = vmatmul.f32.gmra.mxu1 %v1883_v21  ;;  %2012 = vmatmul.f32.gmra.mxu0 %v1885_v4 }
 0x29b   : > { %v1574_v48 = vpop.f32.mrf.mxu2 }
 0x29c   : > { %v1642_v19 = vadd.f32 %v1574_v48, %v1447_v50  ;;  %v1768_v61 = vpop.f32.mrf.mxu3 }
 0x29e   : > { %v1836_v35 = vadd.f32 %v1768_v61, %v1642_v19 }
 0x29f   : > { %v1385_v31 = vpop.f32.mrf.mxu1  ;;  %v1968_v49 = vpop.f32.mrf.mxu0 }
 0x2a0   : > { %v3322_v9 = vadd.f32 %v1962_v58, %v1836_v35  ;;  %1624 = vmatmul.f32.gmra.mxu2 %v2527_v24  ;;  %v1449_v13 = vadd.f32 %v1385_v31, %v3178_v2 }
 0x2a1   : > { %1818 = vmatmul.f32.gmra.mxu3 %v1691_v41 }
 0x2a2   : > { %2201 = vst [vmem:[%s3233_s22 + $0x70] sm:$0xff] %v3322_v9 }
 0x2a3   : > { %v1577_v47 = vpop.f32.mrf.mxu2 }
 0x2a4   : > { %v1643_v23 = vadd.f32 %v1577_v47, %v1448_v40  ;;  %v1771_v21 = vpop.f32.mrf.mxu3 }
 0x2a6   : > { %v1837_v63 = vadd.f32 %v1771_v21, %v1643_v23 }
 0x2a7   : > { %v1388_v55 = vpop.f32.mrf.mxu1  ;;  %v1971_v38 = vpop.f32.mrf.mxu0 }
 0x2a8   : > { %v3327_v5 = vadd.f32 %v1965_v7, %v1837_v63  ;;  %v1450_v11 = vadd.f32 %v1388_v55, %v3181_v60 }
 0x2aa   : > { %2202 = vst [vmem:[%s3233_s22 + $0x78] sm:$0xff] %v3327_v5 }
 0x2ab   : > { %v1580_v58 = vpop.f32.mrf.mxu2 }
 0x2ac   : > { %v1644_v12 = vadd.f32 %v1580_v58, %v1449_v13  ;;  %v1774_v30 = vpop.f32.mrf.mxu3 }
 0x2ae   : > { %v1838_v54 = vadd.f32 %v1774_v30, %v1644_v12 }
 0x2af   : > { %v1391_v43 = vpop.f32.mrf.mxu1  ;;  %v1974_v25 = vpop.f32.mrf.mxu0 }
 0x2b0   : > { %v3332_v42 = vadd.f32 %v1968_v49, %v1838_v54  ;;  %v1451_v24 = vadd.f32 %v1391_v43, %v3184_v57 }
 0x2b2   : > { %2203 = vst [vmem:[%s3233_s22 + $0x80] sm:$0xff] %v3332_v42 }
 0x2b3   : > { %v1583_v29 = vpop.f32.mrf.mxu2 }
 0x2b4   : > { %v1645_v34 = vadd.f32 %v1583_v29, %v1450_v11  ;;  %v1777_v39 = vpop.f32.mrf.mxu3 }
 0x2b6   : > { %v1839_v2 = vadd.f32 %v1777_v39, %v1645_v34 }
 0x2b7   : > { %v1394_v22 = vpop.f32.mrf.mxu1  ;;  %v1977_v7 = vpop.f32.mrf.mxu0 }
 0x2b8   : > { %v3337_v4 = vadd.f32 %v1971_v38, %v1839_v2  ;;  %v1452_v41 = vadd.f32 %v1394_v22, %v3187_v18 }
 0x2ba   : > { %2204 = vst [vmem:[%s3233_s22 + $0x88] sm:$0xff] %v3337_v4 }
 0x2bb   : > { %v1586_v0 = vpop.f32.mrf.mxu2 }
 0x2bc   : > { %v1646_v50 = vadd.f32 %v1586_v0, %v1451_v24  ;;  %v1780_v48 = vpop.f32.mrf.mxu3 }
 0x2be   : > { %v1840_v60 = vadd.f32 %v1780_v48, %v1646_v50 }
 0x2bf   : > { %v1397_v19 = vpop.f32.mrf.mxu1  ;;  %v1980_v61 = vpop.f32.mrf.mxu0 }
 0x2c0   : > { %v3342_v35 = vadd.f32 %v1974_v25, %v1840_v60  ;;  %v1453_v63 = vadd.f32 %v1397_v19, %v3190_v52  ;;  %v2048_v52 = vadd.f32 %v3237_v33, %v3230_v20 }
 0x2c2   : > { %2205 = vst [vmem:[%s3233_s22 + $0x90] sm:$0xff] %v3342_v35  ;;  %v2049_v2 = vadd.f32 %v2048_v52, %v3242_v59 }
 0x2c3   : > { %v1589_v31 = vpop.f32.mrf.mxu2 }
 0x2c4   : > { %v1647_v49 = vadd.f32 %v1589_v31, %v1452_v41  ;;  %v1783_v40 = vpop.f32.mrf.mxu3 }
 0x2c6   : > { %v1841_v57 = vadd.f32 %v1783_v40, %v1647_v49 }
 0x2c7   : > { %v1400_v47 = vpop.f32.mrf.mxu1  ;;  %v1983_v23 = vpop.f32.mrf.mxu0 }
 0x2c8   : > { %v3347_v21 = vadd.f32 %v1977_v7, %v1841_v57  ;;  %v1454_v54 = vadd.f32 %v1400_v47, %v3193_v26  ;;  %v2050_v7 = vadd.f32 %v2049_v2, %v3247_v36 }
 0x2ca   : > { %2206 = vst [vmem:[%s3233_s22 + $0x98] sm:$0xff] %v3347_v21  ;;  %v2051_v0 = vadd.f32 %v2050_v7, %v3254_v14 }
 0x2cb   : > { %v1592_v55 = vpop.f32.mrf.mxu2 }
 0x2cc   : > { %v1648_v38 = vadd.f32 %v1592_v55, %v1453_v63  ;;  %v1786_v13 = vpop.f32.mrf.mxu3  ;;  %v2052_v60 = vadd.f32 %v2051_v0, %v3261_v28 }
 0x2ce   : > { %v1842_v58 = vadd.f32 %v1786_v13, %v1648_v38  ;;  %v2053_v31 = vadd.f32 %v2052_v60, %v3268_v8 }
 0x2cf   : > { %v1403_v18 = vpop.f32.mrf.mxu1  ;;  %v1986_v12 = vpop.f32.mrf.mxu0 }
 0x2d0   : > { %v3352_v30 = vadd.f32 %v1980_v61, %v1842_v58  ;;  %v1455_v26 = vadd.f32 %v1403_v18, %v3196_v17  ;;  %v2054_v40 = vadd.f32 %v2053_v31, %v3275_v56 }
 0x2d2   : > { %2207 = vst [vmem:[%s3233_s22 + $0xa0] sm:$0xff] %v3352_v30  ;;  %v2055_v47 = vadd.f32 %v2054_v40, %v3282_v45 }
 0x2d3   : > { %v1595_v43 = vpop.f32.mrf.mxu2 }
 0x2d4   : > { %v1649_v25 = vadd.f32 %v1595_v43, %v1454_v54  ;;  %v1789_v11 = vpop.f32.mrf.mxu3  ;;  %v2056_v55 = vadd.f32 %v2055_v47, %v3289_v27 }
 0x2d6   : > { %v1843_v29 = vadd.f32 %v1789_v11, %v1649_v25  ;;  %v2057_v58 = vadd.f32 %v2056_v55, %v3296_v62 }
 0x2d7   : > { %v1406_v34 = vpop.f32.mrf.mxu1  ;;  %v1989_v39 = vpop.f32.mrf.mxu0 }
 0x2d8   : > { %v3360_v22 = vadd.f32 %v1983_v23, %v1843_v29  ;;  %v1456_v17 = vadd.f32 %v1406_v34, %v3199_v10  ;;  %v2058_v54 = vadd.f32 %v2057_v58, %v3302_v3 }
 0x2da   : > { %2208 = vst [vmem:[%s3233_s22 + $0xa8] sm:$0xff] %v3360_v22  ;;  %v2059_v25 = vadd.f32 %v2058_v54, %v3310_v44 }
 0x2db   : > { %v1598_v24 = vpop.f32.mrf.mxu2 }
 0x2dc   : > { %v1650_v50 = vadd.f32 %v1598_v24, %v1455_v26  ;;  %v1792_v48 = vpop.f32.mrf.mxu3  ;;  %v2060_v29 = vadd.f32 %v2059_v25, %v3317_v51 }
 0x2de   : > { %v1844_v19 = vadd.f32 %v1792_v48, %v1650_v50 }
 0x2df   : > { %v1409_v61 = vpop.f32.mrf.mxu1  ;;  %v1992_v41 = vpop.f32.mrf.mxu0 }
 0x2e0   : > { %v3369_v49 = vadd.f32 %v1986_v12, %v1844_v19  ;;  %v1457_v10 = vadd.f32 %v1409_v61, %v3202_v32 }
 0x2e2   : > { %2209 = vst [vmem:[%s3233_s22 + $0xb0] sm:$0xff] %v3369_v49 }
 0x2e3   : > { %v1601_v57 = vpop.f32.mrf.mxu2 }
 0x2e4   : > { %v1651_v23 = vadd.f32 %v1601_v57, %v1456_v17  ;;  %v1795_v63 = vpop.f32.mrf.mxu3 }
 0x2e6   : > { %v1845_v38 = vadd.f32 %v1795_v63, %v1651_v23 }
 0x2e7   : > { %v1412_v13 = vpop.f32.mrf.mxu1  ;;  %v1995_v12 = vpop.f32.mrf.mxu0 }
 0x2e8   : > { %v3378_v18 = vadd.f32 %v1989_v39, %v1845_v38  ;;  %v2061_v39 = vadd.f32 %v2060_v29, %v3322_v9  ;;  %v1458_v32 = vadd.f32 %v1412_v13, %v3205_v46 }
 0x2ea   : > { %2210 = vst [vmem:[%s3233_s22 + $0xb8] sm:$0xff] %v3378_v18  ;;  %v2062_v26 = vadd.f32 %v2061_v39, %v3327_v5 }
 0x2eb   : > { %v1604_v43 = vpop.f32.mrf.mxu2 }
 0x2ec   : > { %v1652_v11 = vadd.f32 %v1604_v43, %v1457_v10  ;;  %v1798_v52 = vpop.f32.mrf.mxu3  ;;  %v2063_v50 = vadd.f32 %v2062_v26, %v3332_v42 }
 0x2ee   : > { %v1846_v34 = vadd.f32 %v1798_v52, %v1652_v11  ;;  %v2064_v19 = vadd.f32 %v2063_v50, %v3337_v4 }
 0x2ef   : > { %v1415_v2 = vpop.f32.mrf.mxu1  ;;  %v1998_v0 = vpop.f32.mrf.mxu0 }
 0x2f0   : > { %v3387_v7 = vadd.f32 %v1992_v41, %v1846_v34  ;;  %v2065_v41 = vadd.f32 %v2064_v19, %v3342_v35  ;;  %v1459_v46 = vadd.f32 %v1415_v2, %v3208_v1 }
 0x2f2   : > { %2211 = vst [vmem:[%s3233_s22 + $0xc0] sm:$0xff] %v3387_v7  ;;  %v2066_v17 = vadd.f32 %v2065_v41, %v3347_v21 }
 0x2f3   : > { %v1607_v24 = vpop.f32.mrf.mxu2 }
 0x2f4   : > { %v1653_v48 = vadd.f32 %v1607_v24, %v1458_v32  ;;  %v1801_v60 = vpop.f32.mrf.mxu3  ;;  %v2067_v47 = vadd.f32 %v2066_v17, %v3352_v30 }
 0x2f6   : > { %v1847_v61 = vadd.f32 %v1801_v60, %v1653_v48  ;;  %v2068_v38 = vadd.f32 %v2067_v47, %v3360_v22 }
 0x2f7   : > { %v1418_v31 = vpop.f32.mrf.mxu1  ;;  %v2001_v55 = vpop.f32.mrf.mxu0 }
 0x2f8   : > { %v3396_v40 = vadd.f32 %v1995_v12, %v1847_v61  ;;  %v2069_v58 = vadd.f32 %v2068_v38, %v3369_v49  ;;  %v1460_v1 = vadd.f32 %v1418_v31, %v3211_v15 }
 0x2fa   : > { %2212 = vst [vmem:[%s3233_s22 + $0xc8] sm:$0xff] %v3396_v40  ;;  %v2070_v10 = vadd.f32 %v2069_v58, %v3378_v18 }
 0x2fb   : > { %v1610_v57 = vpop.f32.mrf.mxu2 }
 0x2fc   : > { %v1654_v23 = vadd.f32 %v1610_v57, %v1459_v46  ;;  %v1804_v63 = vpop.f32.mrf.mxu3  ;;  %v2071_v25 = vadd.f32 %v2070_v10, %v3387_v7 }
 0x2fe   : > { %v1848_v13 = vadd.f32 %v1804_v63, %v1654_v23  ;;  %v2072_v29 = vadd.f32 %v2071_v25, %v3396_v40 }
 0x2ff   : > { %v1421_v54 = vpop.f32.mrf.mxu1  ;;  %v2004_v2 = vpop.f32.mrf.mxu0 }
 0x300   : > { %v3405_v12 = vadd.f32 %v1998_v0, %v1848_v13  ;;  %v1461_v32 = vadd.f32 %v1421_v54, %v3214_v37 }
 0x302   : > { %2213 = vst [vmem:[%s3233_s22 + $0xd0] sm:$0xff] %v3405_v12  ;;  %v2073_v39 = vadd.f32 %v2072_v29, %v3405_v12 }
 0x303   : > { %v1613_v43 = vpop.f32.mrf.mxu2 }
 0x304   : > { %v1655_v11 = vadd.f32 %v1613_v43, %v1460_v1  ;;  %v1807_v52 = vpop.f32.mrf.mxu3 }
 0x306   : > { %v1849_v34 = vadd.f32 %v1807_v52, %v1655_v11 }
 0x307   : > { %v1424_v0 = vpop.f32.mrf.mxu1  ;;  %v2007_v61 = vpop.f32.mrf.mxu0 }
 0x308   : > { %v3414_v26 = vadd.f32 %v2001_v55, %v1849_v34  ;;  %v1462_v31 = vadd.f32 %v1424_v0, %v3217_v53 }
 0x30a   : > { %v2074_v15 = vadd.f32 %v2073_v39, %v3414_v26  ;;  %2214 = vst [vmem:[%s3233_s22 + $0xd8] sm:$0xff] %v3414_v26 }
 0x30b   : > { %v1616_v24 = vpop.f32.mrf.mxu2 }
 0x30c   : > { %v1656_v50 = vadd.f32 %v1616_v24, %v1461_v32  ;;  %v1810_v48 = vpop.f32.mrf.mxu3 }
 0x30e   : > { %v1850_v60 = vadd.f32 %v1810_v48, %v1656_v50 }
 0x30f   : > { %v1427_v57 = vpop.f32.mrf.mxu1  ;;  %v2010_v38 = vpop.f32.mrf.mxu0 }
 0x310   : > { %v3420_v19 = vadd.f32 %v2004_v2, %v1850_v60  ;;  %v1463_v63 = vadd.f32 %v1427_v57, %v3220_v6 }
 0x312   : > { %v2075_v41 = vadd.f32 %v2074_v15, %v3420_v19  ;;  %2215 = vst [vmem:[%s3233_s22 + $0xe0] sm:$0xff] %v3420_v19 }
 0x313   : > { %v1619_v37 = vpop.f32.mrf.mxu2 }
 0x314   : > { %v1657_v17 = vadd.f32 %v1619_v37, %v1462_v31  ;;  %v1813_v46 = vpop.f32.mrf.mxu3 }
 0x316   : > { %v1851_v47 = vadd.f32 %v1813_v46, %v1657_v17 }
 0x317   : > { %v1430_v10 = vpop.f32.mrf.mxu1  ;;  %v2013_v29 = vpop.f32.mrf.mxu0 }
 0x318   : > { %v3426_v23 = vadd.f32 %v2007_v61, %v1851_v47  ;;  %v1464_v43 = vadd.f32 %v1430_v10, %v3223_v16 }
 0x31a   : > { %v2076_v55 = vadd.f32 %v2075_v41, %v3426_v23  ;;  %2216 = vst [vmem:[%s3233_s22 + $0xe8] sm:$0xff] %v3426_v23 }
 0x31b   : > { %v1622_v53 = vpop.f32.mrf.mxu2 }
 0x31c   : > { %v1658_v13 = vadd.f32 %v1622_v53, %v1463_v63  ;;  %v1816_v58 = vpop.f32.mrf.mxu3 }
 0x31e   : > { %v1852_v54 = vadd.f32 %v1816_v58, %v1658_v13 }
 0x320   : > { %v3433_v1 = vadd.f32 %v2010_v38, %v1852_v54 }
 0x322   : > { %v2077_v6 = vadd.f32 %v2076_v55, %v3433_v1  ;;  %2217 = vst [vmem:[%s3233_s22 + $0xf0] sm:$0xff] %v3433_v1 }
 0x323   : > { %v1625_v25 = vpop.f32.mrf.mxu2 }
 0x324   : > { %v1659_v11 = vadd.f32 %v1625_v25, %v1464_v43  ;;  %v1819_v52 = vpop.f32.mrf.mxu3 }
 0x326   : > { %v1853_v34 = vadd.f32 %v1819_v52, %v1659_v11 }
 0x328   : > { %v2047_v2 = vadd.f32 %v2013_v29, %v1853_v34 }
 0x32a   : > { %v2078_v16 = vadd.f32 %v2077_v6, %v2047_v2  ;;  %2218 = vst [vmem:[%s3233_s22 + $0xf8] sm:$0xff] %v2047_v2 }
 0x32b   : > { %2585 = shalt.err (!%p2582_p8)
}
 0x32c   : > { %s2690_s22 = smov 128   ;;  %s2691_s23 = smov 8   ;;  %v2079_v39 = vrot.slane %v2078_v16, 4 }
 0x32d   : > { %2466 = dma.vmem_to_hbm [thread:$0]  (%p2757_p5), %s2243_s30, 4096, %s2245_s5, %s2222_s6, %s2690_s22, %s2690_s22, %s2691_s23  }
 0x32e   : > { %v2080_v32 = vadd.f32 %v2079_v39, %v2078_v16  ;;  %s2256_s29 = scalar_lea.hbm %s3601_s3, %s2738_s19  ;;  %s2226_s7 = sand.u32 1, %s2738_s19  }
 0x32f   : > { %s217_s8 = scalar_lea.vmem [#allocation7], %s3226_s13  ;;  %s2260_s10 = sshll.u32 %s2256_s29, 4  ;;  %s2261_s10 = int_to_ptr.hbm [resolvable:$true] %s2260_s10 }
 0x330   : > { %v2081_v15 = vrot.slane %v2080_v32, 2  ;;  %s2258_s9 = sshll.u32 %s217_s8, 4  ;;  %s3461_s11 = scalar_lea.sflag [#allocation8], %s2226_s7  ;;  %s2259_s9 = int_to_ptr.vmem [resolvable:$true] %s2258_s9 }
 0x331   : > { %s2600_s30 = sshra.s32 %s2261_s10, 4  ;;  %s2606_s14 = scalar_lea.hbm %s3601_s3, 2  ;;  %s2601_s30 = int_to_ptr.hbm [resolvable:$true] %s2600_s30 }
 0x332   : > { %v2082_v24 = vadd.f32 %v2081_v15, %v2080_v32  ;;  %s2602_s5 = scalar_lea.hbm %s2601_s30, 1  ;;  %p2607_p12 = scmp.lt.s32.totalorder %s2601_s30, %s3601_s3 }
 0x333   : > { %p2603_p9 = scmp.ne.s32.totalorder %s2601_s30, %s2602_s5  ;;  %p2608_p13 = scmp.lt.s32.totalorder %s2606_s14, %s2602_s5 }
 0x334   : > { %v2083_v0 = vrot.slane %v2082_v24, 1 }
 0x335   : > { %p2604_p10 = pnand %p2603_p9, %p2757_p5  ;;  %p2609_p0 = por %p2608_p13, %p2607_p12 }
 0x336   : > { %v2084_v50 = vadd.f32 %v2083_v0, %v2082_v24 }
 0x337   : > { %p2605_p11 = pneg %p2604_p10 }
 0x338   : > { %2219 = vst [vmem:[%s217_s8] sm:$0x1] %v2084_v50 }
 0x339   : > { %p2610_p1 = pnand %p2609_p0, %p2605_p11 }
 0x33b   : > { %2613 = shalt.err (!%p2610_p1)
}
 0x33c   : > { %2467 = dma.vmem_to_hbm [thread:$0]  (%p2757_p5), %s2259_s9, 16, %s2261_s10, %s3461_s11   ;;  %v3474_v48 = vmul.f32 0.00390625, %v2084_v50 }
 0x33d   : > { %s2269_s29 = scalar_lea.hbm %s3602_s4, %s2738_s19  ;;  %s223_s7 = scalar_lea.vmem [#allocation9], %s3226_s13 }
 0x33e   : > { %v3478_v60 = vsub.f32 %v3405_v12, %v3474_v48  ;;  %v3482_v61 = vsub.f32 %v3414_v26, %v3474_v48  ;;  %v3486_v31 = vsub.f32 %v3420_v19, %v3474_v48  ;;  %v3490_v41 = vsub.f32 %v3426_v23, %v3474_v48  ;;  %s2271_s8 = sshll.u32 %s223_s7, 4  ;;  %s2273_s9 = sshll.u32 %s2269_s29, 4  ;;  %s2272_s8 = int_to_ptr.vmem [resolvable:$true] %s2271_s8  ;;  %s2274_s9 = int_to_ptr.hbm [resolvable:$true] %s2273_s9 }
 0x33f   : > { %v3494_v37 = vsub.f32 %v3433_v1, %v3474_v48  ;;  %v3497_v17 = vsub.f32 %v2047_v2, %v3474_v48  ;;  %v2086_v12 = vsub.f32 %v3230_v20, %v3474_v48  ;;  %v2087_v26 = vsub.f32 %v3237_v33, %v3474_v48  ;;  %s2628_s10 = sshra.s32 %s2274_s9, 4  ;;  %s2634_s19 = scalar_lea.hbm %s3602_s4, 2  ;;  %s2629_s10 = int_to_ptr.hbm [resolvable:$true] %s2628_s10 }
 0x340   : > { %v2088_v19 = vsub.f32 %v3242_v59, %v3474_v48  ;;  %v2089_v47 = vsub.f32 %v3247_v36, %v3474_v48  ;;  %v2090_v23 = vsub.f32 %v3254_v14, %v3474_v48  ;;  %v2091_v53 = vsub.f32 %v3261_v28, %v3474_v48  ;;  %s2630_s30 = scalar_lea.hbm %s2629_s10, 1  ;;  %p2635_p7 = scmp.lt.s32.totalorder %s2629_s10, %s3602_s4 }
 0x341   : > { %v2118_v46 = vmul.f32 %v2086_v12, %v2086_v12  ;;  %v2119_v57 = vmul.f32 %v2087_v26, %v2087_v26  ;;  %v2092_v33 = vsub.f32 %v3268_v8, %v3474_v48  ;;  %v2093_v58 = vsub.f32 %v3275_v56, %v3474_v48  ;;  %p2631_p2 = scmp.ne.s32.totalorder %s2629_s10, %s2630_s30  ;;  %p2636_p8 = scmp.lt.s32.totalorder %s2634_s19, %s2630_s30 }
 0x342   : > { %v2120_v63 = vmul.f32 %v2088_v19, %v2088_v19  ;;  %v2121_v20 = vmul.f32 %v2089_v47, %v2089_v47  ;;  %v2122_v13 = vmul.f32 %v2090_v23, %v2090_v23  ;;  %v2123_v54 = vmul.f32 %v2091_v53, %v2091_v53 }
 0x343   : > { %v2150_v55 = vadd.f32 %v2119_v57, %v2118_v46  ;;  %v2094_v14 = vsub.f32 %v3282_v45, %v3474_v48  ;;  %v2124_v10 = vmul.f32 %v2092_v33, %v2092_v33  ;;  %v2095_v28 = vsub.f32 %v3289_v27, %v3474_v48  ;;  %p2632_p3 = pnand %p2631_p2, %p2757_p5  ;;  %p2637_p9 = por %p2636_p8, %p2635_p7 }
 0x344   : > { %v2125_v43 = vmul.f32 %v2093_v58, %v2093_v58  ;;  %v2096_v8 = vsub.f32 %v3296_v62, %v3474_v48  ;;  %v2097_v56 = vsub.f32 %v3302_v3, %v3474_v48  ;;  %v2098_v45 = vsub.f32 %v3310_v44, %v3474_v48 }
 0x345   : > { %v2151_v38 = vadd.f32 %v2150_v55, %v2120_v63  ;;  %v2126_v25 = vmul.f32 %v2094_v14, %v2094_v14  ;;  %v2127_v52 = vmul.f32 %v2095_v28, %v2095_v28  ;;  %v2099_v27 = vsub.f32 %v3317_v51, %v3474_v48  ;;  %p2633_p4 = pneg %p2632_p3 }
 0x346   : > { %v2128_v34 = vmul.f32 %v2096_v8, %v2096_v8  ;;  %v2129_v16 = vmul.f32 %v2097_v56, %v2097_v56  ;;  %v2100_v62 = vsub.f32 %v3322_v9, %v3474_v48  ;;  %v2130_v32 = vmul.f32 %v2098_v45, %v2098_v45 }
 0x347   : > { %v2152_v59 = vadd.f32 %v2151_v38, %v2121_v20  ;;  %v2101_v3 = vsub.f32 %v3327_v5, %v3474_v48  ;;  %v2131_v24 = vmul.f32 %v2099_v27, %v2099_v27  ;;  %v2102_v44 = vsub.f32 %v3332_v42, %v3474_v48  ;;  %p2638_p10 = pnand %p2637_p9, %p2633_p4 }
 0x348   : > { %v2132_v50 = vmul.f32 %v2100_v62, %v2100_v62  ;;  %v2103_v51 = vsub.f32 %v3337_v4, %v3474_v48  ;;  %v2104_v9 = vsub.f32 %v3342_v35, %v3474_v48  ;;  %v2105_v5 = vsub.f32 %v3347_v21, %v3474_v48 }
 0x349   : > { %v2153_v36 = vadd.f32 %v2152_v59, %v2122_v13  ;;  %v2133_v26 = vmul.f32 %v2101_v3, %v2101_v3  ;;  %v2134_v46 = vmul.f32 %v2102_v44, %v2102_v44  ;;  %v2106_v42 = vsub.f32 %v3352_v30, %v3474_v48 }
 0x34a   : > { %v2135_v47 = vmul.f32 %v2103_v51, %v2103_v51  ;;  %v2136_v63 = vmul.f32 %v2104_v9, %v2104_v9  ;;  %v2107_v4 = vsub.f32 %v3360_v22, %v3474_v48  ;;  %v2137_v53 = vmul.f32 %v2105_v5, %v2105_v5 }
 0x34b   : > { %v2154_v1 = vadd.f32 %v2153_v36, %v2123_v54  ;;  %v2108_v35 = vsub.f32 %v3369_v49, %v3474_v48  ;;  %v2138_v38 = vmul.f32 %v2106_v42, %v2106_v42  ;;  %v2109_v21 = vsub.f32 %v3378_v18, %v3474_v48 }
 0x34c   : > { %v2139_v13 = vmul.f32 %v2107_v4, %v2107_v4  ;;  %v2110_v30 = vsub.f32 %v3387_v7, %v3474_v48  ;;  %v2111_v22 = vsub.f32 %v3396_v40, %v3474_v48  ;;  %v2146_v8 = vmul.f32 %v3486_v31, %v3486_v31 }
 0x34d   : > { %v2155_v6 = vadd.f32 %v2154_v1, %v2124_v10  ;;  %v2140_v58 = vmul.f32 %v2108_v35, %v2108_v35  ;;  %v2141_v36 = vmul.f32 %v2109_v21, %v2109_v21  ;;  %v2147_v48 = vmul.f32 %v3490_v41, %v3490_v41 }
 0x34e   : > { %v2142_v10 = vmul.f32 %v2110_v30, %v2110_v30  ;;  %v2143_v49 = vmul.f32 %v2111_v22, %v2111_v22 }
 0x34f   : > { %v2156_v11 = vadd.f32 %v2155_v6, %v2125_v43  ;;  %v2144_v43 = vmul.f32 %v3478_v60, %v3478_v60  ;;  %v2145_v6 = vmul.f32 %v3482_v61, %v3482_v61  ;;  %v2149_v60 = vmul.f32 %v3497_v17, %v3497_v17 }
 0x351   : > { %v2157_v29 = vadd.f32 %v2156_v11, %v2126_v25  ;;  %v2148_v11 = vmul.f32 %v3494_v37, %v3494_v37 }
 0x353   : > { %v2158_v2 = vadd.f32 %v2157_v29, %v2127_v52 }
 0x355   : > { %v2159_v39 = vadd.f32 %v2158_v2, %v2128_v34 }
 0x357   : > { %v2160_v15 = vadd.f32 %v2159_v39, %v2129_v16 }
 0x359   : > { %v2161_v0 = vadd.f32 %v2160_v15, %v2130_v32 }
 0x35b   : > { %v2162_v12 = vadd.f32 %v2161_v0, %v2131_v24 }
 0x35d   : > { %v2163_v19 = vadd.f32 %v2162_v12, %v2132_v50 }
 0x35f   : > { %v2164_v57 = vadd.f32 %v2163_v19, %v2133_v26 }
 0x361   : > { %v2165_v23 = vadd.f32 %v2164_v57, %v2134_v46 }
 0x363   : > { %v2166_v55 = vadd.f32 %v2165_v23, %v2135_v47 }
 0x365   : > { %v2167_v20 = vadd.f32 %v2166_v55, %v2136_v63 }
 0x367   : > { %v2168_v33 = vadd.f32 %v2167_v20, %v2137_v53 }
 0x369   : > { %v2169_v59 = vadd.f32 %v2168_v33, %v2138_v38 }
 0x36b   : > { %v2170_v54 = vadd.f32 %v2169_v59, %v2139_v13 }
 0x36d   : > { %v2171_v14 = vadd.f32 %v2170_v54, %v2140_v58 }
 0x36f   : > { %v2172_v1 = vadd.f32 %v2171_v14, %v2141_v36 }
 0x371   : > { %v2173_v28 = vadd.f32 %v2172_v1, %v2142_v10 }
 0x373   : > { %v2174_v18 = vadd.f32 %v2173_v28, %v2143_v49 }
 0x375   : > { %v2175_v7 = vadd.f32 %v2174_v18, %v2144_v43 }
 0x377   : > { %v2176_v40 = vadd.f32 %v2175_v7, %v2145_v6 }
 0x379   : > { %v2177_v25 = vadd.f32 %v2176_v40, %v2146_v8 }
 0x37b   : > { %v2178_v56 = vadd.f32 %v2177_v25, %v2147_v48 }
 0x37d   : > { %v2179_v52 = vadd.f32 %v2178_v56, %v2148_v11 }
 0x37f   : > { %v2180_v29 = vadd.f32 %v2179_v52, %v2149_v60 }
 0x381   : > { %v2181_v61 = vrot.slane %v2180_v29, 4 }
 0x383   : > { %v2182_v45 = vadd.f32 %v2181_v61, %v2180_v29 }
 0x385   : > { %v2183_v34 = vrot.slane %v2182_v45, 2 }
 0x387   : > { %v2184_v31 = vadd.f32 %v2183_v34, %v2182_v45 }
 0x389   : > { %v2185_v41 = vrot.slane %v2184_v31, 1 }
 0x38b   : > { %v2186_v37 = vadd.f32 %v2185_v41, %v2184_v31 }
 0x38d   : > { %2220 = vst [vmem:[%s223_s7] sm:$0x1] %v2186_v37 }
 0x38e   : > { %2641 = shalt.err (!%p2638_p10)
}
 0x38f   : > { %2468 = dma.vmem_to_hbm [thread:$0]  (%p2757_p5), %s2272_s8, 16, %s2274_s9, %s3461_s11  }
 0x390 PF: > { %p2488_p11 = scmp.ge.s32.totalorder %s2684_s18, 2  ;;  %s2285_s14 = sand.u32 1, %s2672_s15  }
 0x391   : > { %s2286_s22 = scalar_lea.sflag [#allocation5], %s2285_s14 }
 0x392   : > { %p2477_p12 = pnand %p2488_p11, %p2761_p6 }
 0x394   : > { %p2478_p13 = pneg %p2477_p12 }
 0x396   : > { %2663 = dma.done.wait (%p2478_p13), %s2286_s22, 4096  }
 0x397   : > { %2665 = vsyncadd (%p2478_p13), %s2286_s22, 4294963200  ;;  %s2295_s23 = sand.u32 1, %s2398_s20  }
 0x398   : > { %s2296_s27 = scalar_lea.sflag [#allocation8], %s2295_s23 }
 0x399   : > { %2667 = dma.done.wait (%p2478_p13), %s2296_s27, 32  }
 0x39a   : > { %2669 = vsyncadd (%p2478_p13), %s2296_s27, 4294967264  ;;  %p19_p5 = scmp.ge.s32.totalorder %s2742_s21, 4   ;;  %s3628_s15 = smov %s2676_s16 }
 0x39b   : > { %s3629_s16 = smov %s2680_s17  ;;  %s3630_s17 = smov %s2755_s24 }
 0x39c   : > { %s3631_s18 = smov %s2742_s21  ;;  %21 = sbr.rel (!%p19_p5) target bundleno = 6 (0x6), region = 111 }
 0x3a1   :  { %2310 = vsyncpa [#allocation4], 1 }
 0x3a2   :  { %2312 = vsyncpa [#allocation4 + $0x1], 1 }
 0x3a3   :  { %2313 = vsyncpa [#allocation5], 1 }
 0x3a4   :  { %2315 = vsyncpa [#allocation5 + $0x1], 1 }
 0x3a5   :  { %2316 = vsyncpa [#allocation8], 1 }
 0x3a6   :  { %2318 = vsyncpa [#allocation8 + $0x1], 1 }

</bundles_post_ra>
